<compile_context>
chip_gen: v5e
topology: v5e:2x2
jax: 0.10.0
libtpu: 0.0.40
codegen_flags: <defaults>
</compile_context>

<pallas_src>
import jax
import jax.numpy as jnp
import numpy as np
from jax.experimental import pallas as pl
from jax.experimental.pallas import tpu as pltpu

# ----- model config (small, consistent with MultVAE_Expert.__init__) -----
NUM_ITEMS = 256          # self.num_items
ENC_DIMS = [128, 32]     # model_conf['enc_dims']  -> enc_dims = [256, 128, 32]
HIDDEN = ENC_DIMS[0]     # 128
LATENT = ENC_DIMS[1]     # 32
BATCH = 200              # deliberately not a multiple of 128/16 to exercise padding


def _round_up(n, m):
    return ((n + m - 1) // m) * m


def _num_tensorcores():
    """v7x is the only targeted generation with 2 TensorCores per chip."""
    try:
        kind = jax.devices()[0].device_kind.lower()
    except Exception:
        return 1
    return 2 if "v7" in kind else 1


def multvae_kernel(x_ref, w0_ref, b0_ref, w12_ref, b12_ref, w3_ref, b3_ref,
                   out_ref):
    # x arrives as bf16 (halves HBM->VMEM DMA bytes); normalize in f32.
    x = x_ref[...].astype(jnp.float32)

    # F.normalize(x, p=2, dim=1):  x * rsqrt(max(||x||^2, 1e-24))
    # (same clamp as x / max(||x||, 1e-12)); rsqrt runs on the EUP slot.
    ss = jnp.sum(x * x, axis=1, keepdims=True)
    h = (x * jax.lax.rsqrt(jnp.maximum(ss, 1e-24))).astype(jnp.bfloat16)

    # encoder hidden: Linear -> Tanh        (bf16 operands, f32 accumulate)
    h1 = jnp.tanh(jnp.dot(h, w0_ref[...],
                          preferred_element_type=jnp.float32) + b0_ref[...])

    # fused encoder-head + decoder-first-layer (eval: z == mu): Linear -> Tanh
    h2 = jnp.tanh(jnp.dot(h1.astype(jnp.bfloat16), w12_ref[...],
                          preferred_element_type=jnp.float32) + b12_ref[...])

    # decoder output layer: logits over items (lane-dense, emitted in bf16)
    o = jnp.dot(h2.astype(jnp.bfloat16), w3_ref[...],
                preferred_element_type=jnp.float32) + b3_ref[...]

    out_ref[...] = o.astype(out_ref.dtype)


def multvae_forward(x, params):
    (w0, b0, w1, b1, w2, b2, w3, b3) = params

    # --- wrapper-side fusion (exact in eval mode; done once in f32) ---
    w12 = w1[:, :LATENT] @ w2                    # (HIDDEN, HIDDEN)
    b12 = b1[:, :LATENT] @ w2 + b2               # (1, HIDDEN)

    # bf16 weights halve weight DMA bytes and double MXU throughput;
    # biases stay f32 (added after f32 accumulation).
    w0b, w12b, w3b = (w.astype(jnp.bfloat16) for w in (w0, w12, w3))

    B, num_items = x.shape

    # Chip-adaptive grid: one step on single-TC chips (v5e/v6e), two parallel
    # TB=128 steps on v7x so both TensorCores get work.
    n_tiles = _num_tensorcores()
    if n_tiles > 1:
        tb = 128
        b_pad = _round_up(B, tb * n_tiles)
        n_tiles = b_pad // tb
    else:
        tb = b_pad = _round_up(B, 16)            # bf16 sublane multiple, 1 step
        n_tiles = 1

    # bf16 input halves x DMA bytes; padded zero rows are sliced off below.
    xb = x.astype(jnp.bfloat16)
    if b_pad != B:
        xb = jnp.pad(xb, ((0, b_pad - B), (0, 0)))

    flops = 2 * b_pad * (num_items * HIDDEN + HIDDEN * HIDDEN + HIDDEN * num_items)
    transcendentals = b_pad * (2 * HIDDEN + 1)                   # 2x tanh + rsqrt
    bytes_accessed = (xb.size * 2                                # bf16 x
                      + (w0b.size + w12b.size + w3b.size) * 2    # bf16 weights
                      + (b0.size + b12.size + b3.size) * 4       # f32 biases
                      + b_pad * num_items * 2)                   # bf16 logits
    cost = pl.CostEstimate(flops=int(flops),
                           transcendentals=int(transcendentals),
                           bytes_accessed=int(bytes_accessed))

    def run(single_buffer_weights):
        def rep(shape):
            # replicated (weight/bias) spec: constant index_map => fetched once
            idx = lambda i: tuple(0 for _ in shape)
            if single_buffer_weights:
                # constant index_map => never re-fetched; 2nd buffer is waste
                return pl.BlockSpec(shape, idx, pipeline_mode=pl.Buffered(1))
            return pl.BlockSpec(shape, idx)

        call = pl.pallas_call(
            multvae_kernel,
            out_shape=jax.ShapeDtypeStruct((b_pad, num_items), jnp.bfloat16),
            grid=(n_tiles,),
            in_specs=[
                pl.BlockSpec((tb, num_items), lambda i: (i, 0)),   # x
                rep(w0b.shape), rep(b0.shape),
                rep(w12b.shape), rep(b12.shape),
                rep(w3b.shape), rep(b3.shape),
            ],
            out_specs=pl.BlockSpec((tb, num_items), lambda i: (i, 0)),
            compiler_params=pltpu.CompilerParams(
                dimension_semantics=("parallel",)),
            cost_estimate=cost,
        )
        return call(xb, w0b, b0, w12b, b12, w3b, b3)

    try:
        out = run(True)
    except Exception:
        # pipeline_mode=pl.Buffered(1) not supported in this jax version;
        # fall back to default (double-buffered) replicated specs.
        out = run(False)

    return out[:B] if b_pad != B else out


def init_params(key):
    """Deterministic init; Linear(d_in, d_out) stored as W:(d_in, d_out), b:(1, d_out)."""
    dims = [
        (NUM_ITEMS, HIDDEN),       # encoder[0]
        (HIDDEN, 2 * LATENT),      # encoder[-1] (d_out *= 2)
        (LATENT, HIDDEN),          # decoder[0]
        (HIDDEN, NUM_ITEMS),       # decoder[-1]
    ]
    params = []
    for (d_in, d_out) in dims:
        key, kw, kb = jax.random.split(key, 3)
        bound = 1.0 / np.sqrt(d_in)
        w = jax.random.uniform(kw, (d_in, d_out), jnp.float32, -bound, bound)
        b = jax.random.uniform(kb, (1, d_out), jnp.float32, -bound, bound)
        params += [w, b]
    return tuple(params)


def reference_forward_f32(x, params):
    """Original module math: unfused, full f32."""
    (w0, b0, w1, b1, w2, b2, w3, b3) = params
    norm = jnp.sqrt(jnp.sum(x * x, axis=1, keepdims=True))
    h = x / jnp.maximum(norm, 1e-12)
    h = jnp.tanh(h @ w0 + b0)
    h = h @ w1 + b1
    mu = h[:, :LATENT]
    o = jnp.tanh(mu @ w2 + b2)
    return o @ w3 + b3


def reference_forward_mixed(x, params):
    """Same fused / bf16-operand / bf16-I/O math as the kernel (tight check)."""
    (w0, b0, w1, b1, w2, b2, w3, b3) = params
    w12 = w1[:, :LATENT] @ w2
    b12 = b1[:, :LATENT] @ w2 + b2
    w0b, w12b, w3b = (w.astype(jnp.bfloat16) for w in (w0, w12, w3))
    xb = x.astype(jnp.bfloat16).astype(jnp.float32)
    ss = jnp.sum(xb * xb, axis=1, keepdims=True)
    h = (xb * jax.lax.rsqrt(jnp.maximum(ss, 1e-24))).astype(jnp.bfloat16)
    h1 = jnp.tanh(jnp.dot(h, w0b, preferred_element_type=jnp.float32) + b0)
    h2 = jnp.tanh(jnp.dot(h1.astype(jnp.bfloat16), w12b,
                          preferred_element_type=jnp.float32) + b12)
    o = jnp.dot(h2.astype(jnp.bfloat16), w3b,
                preferred_element_type=jnp.float32) + b3
    return o.astype(jnp.bfloat16)


if __name__ == "__main__":
    key = jax.random.PRNGKey(0)
    kx, kp = jax.random.split(key)
    x = jax.random.uniform(kx, (BATCH, NUM_ITEMS), jnp.float32)  # implicit-feedback-like input
    params = init_params(kp)

    out = multvae_forward(x, params)
    out = jax.block_until_ready(out)
    assert out.shape == (BATCH, NUM_ITEMS)
    assert out.dtype == jnp.bfloat16

    out_f32 = np.asarray(out.astype(jnp.float32))

    # Tight check: kernel vs identical (fused, bf16-operand/IO, f32-accum) math.
    ref_mixed = np.asarray(reference_forward_mixed(x, params).astype(jnp.float32))
    np.testing.assert_allclose(out_f32, ref_mixed, rtol=2e-2, atol=2e-2)

    # Semantic check: kernel vs original unfused f32 module math (bf16 slack).
    ref_f32 = np.asarray(reference_forward_f32(x, params))
    np.testing.assert_allclose(out_f32, ref_f32, rtol=8e-2, atol=8e-2)

    print("KERNEL_OK")
</pallas_src>

<mosaic_0001>
module attributes {stable_mosaic.version = 11 : i64} {
  func.func @multvae_kernel(%arg0: i32, %arg1: memref<208x256xbf16, #tpu.memory_space<vmem>>, %arg2: memref<256x128xbf16, #tpu.memory_space<vmem>>, %arg3: memref<1x128xf32, #tpu.memory_space<vmem>>, %arg4: memref<128x128xbf16, #tpu.memory_space<vmem>>, %arg5: memref<1x128xf32, #tpu.memory_space<vmem>>, %arg6: memref<128x256xbf16, #tpu.memory_space<vmem>>, %arg7: memref<1x256xf32, #tpu.memory_space<vmem>>, %arg8: memref<208x256xbf16, #tpu.memory_space<vmem>>) attributes {dimension_semantics = [#tpu.dimension_semantics<parallel>], iteration_bounds = array<i64: 1>, scalar_prefetch = 0 : i64, scratch_operands = 0 : i64, tpu.core_type = #tpu.core_type<tc>, window_params = [{transform_indices = @transform_0, window_bounds = array<i64: 208, 256>}, {pipeline_mode = #tpu.pipeline_mode<synchronous>, transform_indices = @transform_1, window_bounds = array<i64: 256, 128>}, {pipeline_mode = #tpu.pipeline_mode<synchronous>, transform_indices = @transform_2, window_bounds = array<i64: 1, 128>}, {pipeline_mode = #tpu.pipeline_mode<synchronous>, transform_indices = @transform_3, window_bounds = array<i64: 128, 128>}, {pipeline_mode = #tpu.pipeline_mode<synchronous>, transform_indices = @transform_4, window_bounds = array<i64: 1, 128>}, {pipeline_mode = #tpu.pipeline_mode<synchronous>, transform_indices = @transform_5, window_bounds = array<i64: 128, 256>}, {pipeline_mode = #tpu.pipeline_mode<synchronous>, transform_indices = @transform_6, window_bounds = array<i64: 1, 256>}, {transform_indices = @transform_7, window_bounds = array<i64: 208, 256>}]} {
    %c0 = arith.constant 0 : index
    %c0_0 = arith.constant 0 : index
    %0 = vector.load %arg1[%c0, %c0_0] : memref<208x256xbf16, #tpu.memory_space<vmem>>, vector<208x256xbf16>
    %1 = arith.extf %0 : vector<208x256xbf16> to vector<208x256xf32>
    %2 = arith.mulf %1, %1 : vector<208x256xf32>
    %cst = arith.constant dense<0.000000e+00> : vector<208xf32>
    %3 = vector.multi_reduction <add>, %2, %cst [1] : vector<208x256xf32> to vector<208xf32>
    %4 = vector.shape_cast %3 : vector<208xf32> to vector<208x1xf32>
    %cst_1 = arith.constant 1.000000e-24 : f32
    %5 = vector.broadcast %cst_1 : f32 to vector<208x1xf32>
    %6 = arith.maximumf %4, %5 : vector<208x1xf32>
    %7 = math.rsqrt %6 : vector<208x1xf32>
    %8 = vector.broadcast %7 : vector<208x1xf32> to vector<208x256xf32>
    %9 = arith.mulf %1, %8 : vector<208x256xf32>
    %10 = arith.truncf %9 : vector<208x256xf32> to vector<208x256xbf16>
    %c0_2 = arith.constant 0 : index
    %c0_3 = arith.constant 0 : index
    %11 = vector.load %arg2[%c0_2, %c0_3] : memref<256x128xbf16, #tpu.memory_space<vmem>>, vector<256x128xbf16>
    %cst_4 = arith.constant dense<0.000000e+00> : vector<208x128xf32>
    %12 = tpu.matmul %10, %11, %cst_4 {dimension_numbers = #tpu.dot_dimension_numbers<[1], [0], [0], [1], [0, 0, 1, 1], [], []>} : vector<208x256xbf16>, vector<256x128xbf16>, vector<208x128xf32> -> vector<208x128xf32>
    %c0_5 = arith.constant 0 : index
    %c0_6 = arith.constant 0 : index
    %13 = vector.load %arg3[%c0_5, %c0_6] : memref<1x128xf32, #tpu.memory_space<vmem>>, vector<1x128xf32>
    %14 = vector.broadcast %13 : vector<1x128xf32> to vector<208x128xf32>
    %15 = arith.addf %12, %14 : vector<208x128xf32>
    %16 = math.tanh %15 : vector<208x128xf32>
    %17 = arith.truncf %16 : vector<208x128xf32> to vector<208x128xbf16>
    %c0_7 = arith.constant 0 : index
    %c0_8 = arith.constant 0 : index
    %18 = vector.load %arg4[%c0_7, %c0_8] : memref<128x128xbf16, #tpu.memory_space<vmem>>, vector<128x128xbf16>
    %cst_9 = arith.constant dense<0.000000e+00> : vector<208x128xf32>
    %19 = tpu.matmul %17, %18, %cst_9 {dimension_numbers = #tpu.dot_dimension_numbers<[1], [0], [0], [1], [0, 0, 1, 1], [], []>} : vector<208x128xbf16>, vector<128x128xbf16>, vector<208x128xf32> -> vector<208x128xf32>
    %c0_10 = arith.constant 0 : index
    %c0_11 = arith.constant 0 : index
    %20 = vector.load %arg5[%c0_10, %c0_11] : memref<1x128xf32, #tpu.memory_space<vmem>>, vector<1x128xf32>
    %21 = vector.broadcast %20 : vector<1x128xf32> to vector<208x128xf32>
    %22 = arith.addf %19, %21 : vector<208x128xf32>
    %23 = math.tanh %22 : vector<208x128xf32>
    %24 = arith.truncf %23 : vector<208x128xf32> to vector<208x128xbf16>
    %c0_12 = arith.constant 0 : index
    %c0_13 = arith.constant 0 : index
    %25 = vector.load %arg6[%c0_12, %c0_13] : memref<128x256xbf16, #tpu.memory_space<vmem>>, vector<128x256xbf16>
    %cst_14 = arith.constant dense<0.000000e+00> : vector<208x256xf32>
    %26 = tpu.matmul %24, %25, %cst_14 {dimension_numbers = #tpu.dot_dimension_numbers<[1], [0], [0], [1], [0, 0, 1, 1], [], []>} : vector<208x128xbf16>, vector<128x256xbf16>, vector<208x256xf32> -> vector<208x256xf32>
    %c0_15 = arith.constant 0 : index
    %c0_16 = arith.constant 0 : index
    %27 = vector.load %arg7[%c0_15, %c0_16] : memref<1x256xf32, #tpu.memory_space<vmem>>, vector<1x256xf32>
    %28 = vector.broadcast %27 : vector<1x256xf32> to vector<208x256xf32>
    %29 = arith.addf %26, %28 : vector<208x256xf32>
    %30 = arith.truncf %29 : vector<208x256xf32> to vector<208x256xbf16>
    %c0_17 = arith.constant 0 : index
    %c0_18 = arith.constant 0 : index
    %31 = vector.load %arg8[%c0_17, %c0_18] : memref<208x256xbf16, #tpu.memory_space<vmem>>, vector<208x256xbf16>
    tpu.vector_store %arg8[%c0_17, %c0_18], %30 {strides = array<i32>} : memref<208x256xbf16, #tpu.memory_space<vmem>>, vector<208x256xbf16>,
    return
  }
  func.func @transform_0(%arg0: i32) -> (i32, i32) {
    %c0_i32 = arith.constant 0 : i32
    %c0_i32_0 = arith.constant 0 : i32
    return %arg0, %c0_i32 : i32, i32
  }
  func.func @transform_1(%arg0: i32) -> (i32, i32) {
    %c0_i32 = arith.constant 0 : i32
    %c0_i32_0 = arith.constant 0 : i32
    %c0_i32_1 = arith.constant 0 : i32
    return %c0_i32, %c0_i32_0 : i32, i32
  }
  func.func @transform_2(%arg0: i32) -> (i32, i32) {
    %c0_i32 = arith.constant 0 : i32
    %c0_i32_0 = arith.constant 0 : i32
    %c0_i32_1 = arith.constant 0 : i32
    return %c0_i32, %c0_i32_0 : i32, i32
  }
  func.func @transform_3(%arg0: i32) -> (i32, i32) {
    %c0_i32 = arith.constant 0 : i32
    %c0_i32_0 = arith.constant 0 : i32
    %c0_i32_1 = arith.constant 0 : i32
    return %c0_i32, %c0_i32_0 : i32, i32
  }
  func.func @transform_4(%arg0: i32) -> (i32, i32) {
    %c0_i32 = arith.constant 0 : i32
    %c0_i32_0 = arith.constant 0 : i32
    %c0_i32_1 = arith.constant 0 : i32
    return %c0_i32, %c0_i32_0 : i32, i32
  }
  func.func @transform_5(%arg0: i32) -> (i32, i32) {
    %c0_i32 = arith.constant 0 : i32
    %c0_i32_0 = arith.constant 0 : i32
    %c0_i32_1 = arith.constant 0 : i32
    return %c0_i32, %c0_i32_0 : i32, i32
  }
  func.func @transform_6(%arg0: i32) -> (i32, i32) {
    %c0_i32 = arith.constant 0 : i32
    %c0_i32_0 = arith.constant 0 : i32
    %c0_i32_1 = arith.constant 0 : i32
    return %c0_i32, %c0_i32_0 : i32, i32
  }
  func.func @transform_7(%arg0: i32) -> (i32, i32) {
    %c0_i32 = arith.constant 0 : i32
    %c0_i32_0 = arith.constant 0 : i32
    return %arg0, %c0_i32 : i32, i32
  }
}

module attributes {stable_mosaic.version = 11 : i64} {
  func.func @multvae_kernel(%arg0: i32, %arg1: memref<208x256xbf16, #tpu.memory_space<vmem>>, %arg2: memref<256x128xbf16, #tpu.memory_space<vmem>>, %arg3: memref<1x128xf32, #tpu.memory_space<vmem>>, %arg4: memref<128x128xbf16, #tpu.memory_space<vmem>>, %arg5: memref<1x128xf32, #tpu.memory_space<vmem>>, %arg6: memref<128x256xbf16, #tpu.memory_space<vmem>>, %arg7: memref<1x256xf32, #tpu.memory_space<vmem>>, %arg8: memref<208x256xbf16, #tpu.memory_space<vmem>>) attributes {dimension_semantics = [#tpu.dimension_semantics<parallel>], iteration_bounds = array<i64: 1>, scalar_prefetch = 0 : i64, scratch_operands = 0 : i64, tpu.core_type = #tpu.core_type<tc>, window_params = [{transform_indices = @transform_0, window_bounds = array<i64: 208, 256>}, {pipeline_mode = #tpu.pipeline_mode<synchronous>, transform_indices = @transform_1, window_bounds = array<i64: 256, 128>}, {pipeline_mode = #tpu.pipeline_mode<synchronous>, transform_indices = @transform_2, window_bounds = array<i64: 1, 128>}, {pipeline_mode = #tpu.pipeline_mode<synchronous>, transform_indices = @transform_3, window_bounds = array<i64: 128, 128>}, {pipeline_mode = #tpu.pipeline_mode<synchronous>, transform_indices = @transform_4, window_bounds = array<i64: 1, 128>}, {pipeline_mode = #tpu.pipeline_mode<synchronous>, transform_indices = @transform_5, window_bounds = array<i64: 128, 256>}, {pipeline_mode = #tpu.pipeline_mode<synchronous>, transform_indices = @transform_6, window_bounds = array<i64: 1, 256>}, {transform_indices = @transform_7, window_bounds = array<i64: 208, 256>}]} {
    %c0 = arith.constant 0 : index
    %c0_0 = arith.constant 0 : index
    %0 = vector.load %arg1[%c0, %c0_0] : memref<208x256xbf16, #tpu.memory_space<vmem>>, vector<208x256xbf16>
    %1 = arith.extf %0 : vector<208x256xbf16> to vector<208x256xf32>
    %2 = arith.mulf %1, %1 : vector<208x256xf32>
    %cst = arith.constant dense<0.000000e+00> : vector<208xf32>
    %3 = vector.multi_reduction <add>, %2, %cst [1] : vector<208x256xf32> to vector<208xf32>
    %4 = vector.shape_cast %3 : vector<208xf32> to vector<208x1xf32>
    %cst_1 = arith.constant 1.000000e-24 : f32
    %5 = vector.broadcast %cst_1 : f32 to vector<208x1xf32>
    %6 = arith.maximumf %4, %5 : vector<208x1xf32>
    %7 = math.rsqrt %6 : vector<208x1xf32>
    %8 = vector.broadcast %7 : vector<208x1xf32> to vector<208x256xf32>
    %9 = arith.mulf %1, %8 : vector<208x256xf32>
    %10 = arith.truncf %9 : vector<208x256xf32> to vector<208x256xbf16>
    %c0_2 = arith.constant 0 : index
    %c0_3 = arith.constant 0 : index
    %11 = vector.load %arg2[%c0_2, %c0_3] : memref<256x128xbf16, #tpu.memory_space<vmem>>, vector<256x128xbf16>
    %cst_4 = arith.constant dense<0.000000e+00> : vector<208x128xf32>
    %12 = tpu.matmul %10, %11, %cst_4 {dimension_numbers = #tpu.dot_dimension_numbers<[1], [0], [0], [1], [0, 0, 1, 1], [], []>} : vector<208x256xbf16>, vector<256x128xbf16>, vector<208x128xf32> -> vector<208x128xf32>
    %c0_5 = arith.constant 0 : index
    %c0_6 = arith.constant 0 : index
    %13 = vector.load %arg3[%c0_5, %c0_6] : memref<1x128xf32, #tpu.memory_space<vmem>>, vector<1x128xf32>
    %14 = vector.broadcast %13 : vector<1x128xf32> to vector<208x128xf32>
    %15 = arith.addf %12, %14 : vector<208x128xf32>
    %16 = math.tanh %15 : vector<208x128xf32>
    %17 = arith.truncf %16 : vector<208x128xf32> to vector<208x128xbf16>
    %c0_7 = arith.constant 0 : index
    %c0_8 = arith.constant 0 : index
    %18 = vector.load %arg4[%c0_7, %c0_8] : memref<128x128xbf16, #tpu.memory_space<vmem>>, vector<128x128xbf16>
    %cst_9 = arith.constant dense<0.000000e+00> : vector<208x128xf32>
    %19 = tpu.matmul %17, %18, %cst_9 {dimension_numbers = #tpu.dot_dimension_numbers<[1], [0], [0], [1], [0, 0, 1, 1], [], []>} : vector<208x128xbf16>, vector<128x128xbf16>, vector<208x128xf32> -> vector<208x128xf32>
    %c0_10 = arith.constant 0 : index
    %c0_11 = arith.constant 0 : index
    %20 = vector.load %arg5[%c0_10, %c0_11] : memref<1x128xf32, #tpu.memory_space<vmem>>, vector<1x128xf32>
    %21 = vector.broadcast %20 : vector<1x128xf32> to vector<208x128xf32>
    %22 = arith.addf %19, %21 : vector<208x128xf32>
    %23 = math.tanh %22 : vector<208x128xf32>
    %24 = arith.truncf %23 : vector<208x128xf32> to vector<208x128xbf16>
    %c0_12 = arith.constant 0 : index
    %c0_13 = arith.constant 0 : index
    %25 = vector.load %arg6[%c0_12, %c0_13] : memref<128x256xbf16, #tpu.memory_space<vmem>>, vector<128x256xbf16>
    %cst_14 = arith.constant dense<0.000000e+00> : vector<208x256xf32>
    %26 = tpu.matmul %24, %25, %cst_14 {dimension_numbers = #tpu.dot_dimension_numbers<[1], [0], [0], [1], [0, 0, 1, 1], [], []>} : vector<208x128xbf16>, vector<128x256xbf16>, vector<208x256xf32> -> vector<208x256xf32>
    %c0_15 = arith.constant 0 : index
    %c0_16 = arith.constant 0 : index
    %27 = vector.load %arg7[%c0_15, %c0_16] : memref<1x256xf32, #tpu.memory_space<vmem>>, vector<1x256xf32>
    %28 = vector.broadcast %27 : vector<1x256xf32> to vector<208x256xf32>
    %29 = arith.addf %26, %28 : vector<208x256xf32>
    %30 = arith.truncf %29 : vector<208x256xf32> to vector<208x256xbf16>
    %c0_17 = arith.constant 0 : index
    %c0_18 = arith.constant 0 : index
    %31 = vector.load %arg8[%c0_17, %c0_18] : memref<208x256xbf16, #tpu.memory_space<vmem>>, vector<208x256xbf16>
    tpu.vector_store %arg8[%c0_17, %c0_18], %30 {strides = array<i32>} : memref<208x256xbf16, #tpu.memory_space<vmem>>, vector<208x256xbf16>,
    return
  }
  func.func @transform_0(%arg0: i32) -> (i32, i32) {
    %c0_i32 = arith.constant 0 : i32
    %c0_i32_0 = arith.constant 0 : i32
    return %arg0, %c0_i32 : i32, i32
  }
  func.func @transform_1(%arg0: i32) -> (i32, i32) {
    %c0_i32 = arith.constant 0 : i32
    %c0_i32_0 = arith.constant 0 : i32
    %c0_i32_1 = arith.constant 0 : i32
    return %c0_i32, %c0_i32_0 : i32, i32
  }
  func.func @transform_2(%arg0: i32) -> (i32, i32) {
    %c0_i32 = arith.constant 0 : i32
    %c0_i32_0 = arith.constant 0 : i32
    %c0_i32_1 = arith.constant 0 : i32
    return %c0_i32, %c0_i32_0 : i32, i32
  }
  func.func @transform_3(%arg0: i32) -> (i32, i32) {
    %c0_i32 = arith.constant 0 : i32
    %c0_i32_0 = arith.constant 0 : i32
    %c0_i32_1 = arith.constant 0 : i32
    return %c0_i32, %c0_i32_0 : i32, i32
  }
  func.func @transform_4(%arg0: i32) -> (i32, i32) {
    %c0_i32 = arith.constant 0 : i32
    %c0_i32_0 = arith.constant 0 : i32
    %c0_i32_1 = arith.constant 0 : i32
    return %c0_i32, %c0_i32_0 : i32, i32
  }
  func.func @transform_5(%arg0: i32) -> (i32, i32) {
    %c0_i32 = arith.constant 0 : i32
    %c0_i32_0 = arith.constant 0 : i32
    %c0_i32_1 = arith.constant 0 : i32
    return %c0_i32, %c0_i32_0 : i32, i32
  }
  func.func @transform_6(%arg0: i32) -> (i32, i32) {
    %c0_i32 = arith.constant 0 : i32
    %c0_i32_0 = arith.constant 0 : i32
    %c0_i32_1 = arith.constant 0 : i32
    return %c0_i32, %c0_i32_0 : i32, i32
  }
  func.func @transform_7(%arg0: i32) -> (i32, i32) {
    %c0_i32 = arith.constant 0 : i32
    %c0_i32_0 = arith.constant 0 : i32
    return %arg0, %c0_i32 : i32, i32
  }
}

</mosaic_0001>

<bundles_post_ra>
// kernel: tpu_custom_call.1
= control target key start
LH: loop header
LB: loop body
LE: loop exit
PB: predicated region body
PF: predicated region fallthrough
CT: control target
= control target key end

     0   :  { %12 = vsyncpa [#allocation3], 0  ;;  %s2922_s0 = inlined_call_operand.hbm [shape: bf16[208,256], index: 0, kind: input, shape index: {}]   ;;  %s2923_s1 = inlined_call_operand.hbm [shape: bf16[256,128], index: 1, kind: input, shape index: {}]   ;;  %s2924_s2 = inlined_call_operand.vmem [shape: f32[1,128], index: 2, kind: input, shape index: {}]   ;;  %s2925_s3 = inlined_call_operand.hbm [shape: bf16[128,128], index: 3, kind: input, shape index: {}]   ;;  %s2926_s4 = inlined_call_operand.hbm [shape: f32[1,128], index: 4, kind: input, shape index: {}]   ;;  %s2927_s5 = inlined_call_operand.hbm [shape: bf16[128,256], index: 5, kind: input, shape index: {}]   ;;  %s2928_s6 = inlined_call_operand.vmem [shape: f32[1,256], index: 6, kind: input, shape index: {}]   ;;  %s2929_s7 = inlined_call_operand.hbm [shape: bf16[208,256], index: 7, kind: output, shape index: {}]  }
   0x1   :  { %13 = vsyncpa [#allocation6], 0 }
   0x2   :  { %14 = vsyncpa [#allocation9], 0  ;;  %s33_s26 = sshll.u32 %s2923_s1, 4  ;;  %s34_s26 = int_to_ptr.hbm [resolvable:$true] %s33_s26 }
   0x3   :  { %15 = vsyncpa [#allocation4], 0  ;;  %s2042_s27 = smov [#allocation5]   ;;  %s62_s8 = sshll.u32 %s2926_s4, 4  ;;  %s63_s8 = int_to_ptr.hbm [resolvable:$true] %s62_s8 }
   0x4   :  { %s35_s28 = sshll.u32 %s2042_s27, 4  ;;  %s2043_s9 = smov 64   ;;  %s36_s28 = int_to_ptr.vmem [resolvable:$true] %s35_s28 }
   0x5   :  { %s2044_s10 = smov 4   ;;  %s2045_s11 = smov [#allocation8]  }
   0x6   :  { %41 = dma.hbm_to_vmem [thread:$0]  %s34_s26, 2048, %s36_s28, [#allocation6], %s2043_s9, %s2043_s9, %s2044_s10  }
   0x7   :  { %s64_s12 = sshll.u32 %s2045_s11, 4  ;;  %s20_s15 = sshll.u32 %s2922_s0, 4  ;;  %s65_s12 = int_to_ptr.vmem [resolvable:$true] %s64_s12  ;;  %s21_s15 = int_to_ptr.hbm [resolvable:$true] %s20_s15 }
   0x8   :  { %67 = dma.hbm_to_vmem [thread:$0]  %s63_s8, 16, %s65_s12, [#allocation9]  }
   0x9   :  { %s2046_s1 = smov [#allocation2]   ;;  %s48_s4 = sshll.u32 %s2925_s3, 4  ;;  %s49_s4 = int_to_ptr.hbm [resolvable:$true] %s48_s4 }
   0xa   :  { %s22_s16 = sshll.u32 %s2046_s1, 4  ;;  %s2047_s19 = smov 128   ;;  %s23_s16 = int_to_ptr.vmem [resolvable:$true] %s22_s16 }
   0xb   :  { %s2048_s20 = smov 8   ;;  %s2049_s21 = smov [#allocation7]  }
   0xc   :  { %28 = dma.hbm_to_vmem [thread:$0]  %s21_s15, 3328, %s23_s16, [#allocation3], %s2047_s19, %s2047_s19, %s2048_s20  }
   0xd   :  { %s50_s22 = sshll.u32 %s2049_s21, 4  ;;  %s72_s24 = sshll.u32 %s2927_s5, 4  ;;  %s51_s22 = int_to_ptr.vmem [resolvable:$true] %s50_s22  ;;  %s73_s24 = int_to_ptr.hbm [resolvable:$true] %s72_s24 }
   0xe   :  { %56 = dma.hbm_to_vmem [thread:$0]  %s49_s4, 1024, %s51_s22, [#allocation6], %s2043_s9, %s2043_s9, %s2044_s10  }
   0xf   :  { %s2050_s25 = smov [#allocation10]  }
  0x10   :  { %s74_s26 = sshll.u32 %s2050_s25, 4  ;;  %s75_s26 = int_to_ptr.vmem [resolvable:$true] %s74_s26 }
  0x11   :  { %80 = dma.hbm_to_vmem [thread:$0]  %s73_s24, 2048, %s75_s26, [#allocation9], %s2047_s19, %s2047_s19, %s2048_s20  }
  0x12   :  { %2034 = dma.done.wait [#allocation3], 3328  }
  0x13   :  { %2035 = vsyncadd [#allocation3], 4294963968 }
  0x14   :  { %2036 = dma.done.wait [#allocation6], 3072  }
  0x15   :  { %2037 = vsyncadd [#allocation6], 4294964224 }
  0x16   :  { %2038 = dma.done.wait [#allocation9], 2064  }
  0x17   :  { %2039 = vsyncadd [#allocation9], 4294965232  ;;  %v113_v0 = vld [vmem:[#allocation2 + $0x50] sm:$0xff]  ;;  %v111_v1 = vld [vmem:[#allocation2 + $0x40] sm:$0xff]  ;;  %s1483_s8 = sshll.u32 %s2929_s7, 4  ;;  %s1484_s8 = int_to_ptr.hbm [resolvable:$true] %s1483_s8 }
  0x18   :  { %v114_v2 = vld [vmem:[#allocation2 + $0x58] sm:$0xff]  ;;  %v2113_v3 = vunpack.c.l.bf16 %v113_v0  ;;  %v2115_v4 = vunpack.c.h.bf16 %v113_v0  ;;  %v2117_v5 = vunpack.c.l.bf16 %v111_v1  ;;  %v2119_v6 = vunpack.c.h.bf16 %v111_v1  ;;  %v112_v7 = vld [vmem:[#allocation2 + $0x48] sm:$0xff]  ;;  %v115_v12 = vld [vmem:[#allocation2 + $0x60] sm:$0xff] }
  0x19   :  { %v2121_v8 = vunpack.c.l.bf16 %v114_v2  ;;  %v2123_v9 = vunpack.c.h.bf16 %v114_v2  ;;  %v2125_v10 = vunpack.c.l.bf16 %v112_v7  ;;  %v2127_v11 = vunpack.c.h.bf16 %v112_v7  ;;  %v116_v17 = vld [vmem:[#allocation2 + $0x68] sm:$0xff]  ;;  %v117_v30 = vld [vmem:[#allocation2 + $0x70] sm:$0xff]  ;;  %v118_v31 = vld [vmem:[#allocation2 + $0x78] sm:$0xff] }
  0x1a   :  { %v201_v13 = vmul.f32 %v2113_v3, %v2113_v3  ;;  %v202_v14 = vmul.f32 %v2115_v4, %v2115_v4  ;;  %v197_v15 = vmul.f32 %v2117_v5, %v2117_v5  ;;  %v198_v16 = vmul.f32 %v2119_v6, %v2119_v6  ;;  %v103_v41 = vld [vmem:[#allocation2] sm:$0xff]  ;;  %v104_v47 = vld [vmem:[#allocation2 + $0x8] sm:$0xff]  ;;  %v105_v50 = vld [vmem:[#allocation2 + $0x10] sm:$0xff] }
  0x1b   :  { %v2137_v20 = vunpack.c.l.bf16 %v115_v12  ;;  %v2139_v21 = vunpack.c.h.bf16 %v115_v12  ;;  %v203_v22 = vmul.f32 %v2121_v8, %v2121_v8  ;;  %v204_v23 = vmul.f32 %v2123_v9, %v2123_v9  ;;  %v106_v59 = vld [vmem:[#allocation2 + $0x18] sm:$0xff]  ;;  %v108_v7 = vld [vmem:[#allocation2 + $0x28] sm:$0xff]  ;;  %v107_v12 = vld [vmem:[#allocation2 + $0x20] sm:$0xff] }
  0x1c   :  { %v263_v18 = vadd.f32 %v202_v14, %v201_v13  ;;  %v257_v19 = vadd.f32 %v198_v16, %v197_v15  ;;  %v199_v24 = vmul.f32 %v2125_v10, %v2125_v10  ;;  %v200_v25 = vmul.f32 %v2127_v11, %v2127_v11 }
  0x1d   :  { %v205_v26 = vmul.f32 %v2137_v20, %v2137_v20  ;;  %v206_v27 = vmul.f32 %v2139_v21, %v2139_v21  ;;  %v2153_v28 = vunpack.c.l.bf16 %v116_v17  ;;  %v2155_v29 = vunpack.c.h.bf16 %v116_v17 }
  0x1e   :  { %264 = vadd.xlane.f32.xlu1 %v263_v18  ;;  %258 = vadd.xlane.f32.xlu0 %v257_v19  ;;  %v2157_v33 = vunpack.c.l.bf16 %v117_v30  ;;  %v2159_v34 = vunpack.c.h.bf16 %v117_v30  ;;  %v2161_v35 = vunpack.c.l.bf16 %v118_v31  ;;  %v2163_v36 = vunpack.c.h.bf16 %v118_v31  ;;  %v110_v31 = vld [vmem:[#allocation2 + $0x38] sm:$0xff] }
  0x1f   :  { %v269_v32 = vadd.f32 %v206_v27, %v205_v26  ;;  %v266_v37 = vadd.f32 %v204_v23, %v203_v22  ;;  %v260_v38 = vadd.f32 %v200_v25, %v199_v24  ;;  %v207_v39 = vmul.f32 %v2153_v28, %v2153_v28  ;;  %v109_v23 = vld [vmem:[#allocation2 + $0x30] sm:$0xff] }
  0x20   :  { %v208_v40 = vmul.f32 %v2155_v29, %v2155_v29  ;;  %v209_v42 = vmul.f32 %v2157_v33, %v2157_v33  ;;  %v210_v43 = vmul.f32 %v2159_v34, %v2159_v34  ;;  %v211_v44 = vmul.f32 %v2161_v35, %v2161_v35 }
  0x21   :  { %270 = vadd.xlane.f32.xlu2 %v269_v32  ;;  %v212_v45 = vmul.f32 %v2163_v36, %v2163_v36  ;;  %v2177_v48 = vunpack.c.l.bf16 %v103_v41  ;;  %v2179_v49 = vunpack.c.h.bf16 %v103_v41  ;;  %v2181_v53 = vunpack.c.l.bf16 %v104_v47 }
  0x22   :  { %v272_v46 = vadd.f32 %v208_v40, %v207_v39  ;;  %v275_v51 = vadd.f32 %v210_v43, %v209_v42  ;;  %v2183_v54 = vunpack.c.h.bf16 %v104_v47  ;;  %v2189_v57 = vunpack.c.l.bf16 %v105_v50 }
  0x23   :  { %v278_v52 = vadd.f32 %v212_v45, %v211_v44  ;;  %v181_v55 = vmul.f32 %v2177_v48, %v2177_v48  ;;  %v182_v56 = vmul.f32 %v2179_v49, %v2179_v49  ;;  %v2191_v58 = vunpack.c.h.bf16 %v105_v50  ;;  %v1665_v50 = vld [vmem:[#allocation5 + $0x38] sm:$0xff] }
  0x24   :  { %v183_v60 = vmul.f32 %v2181_v53, %v2181_v53  ;;  %v184_v61 = vmul.f32 %v2183_v54, %v2183_v54  ;;  %v2197_v62 = vunpack.c.l.bf16 %v106_v59  ;;  %v2199_v63 = vunpack.c.h.bf16 %v106_v59  ;;  %1698 = vmatpush.bf16.msra.mxu1 %v1665_v50  ;;  %807 = vmatpush.bf16.msra.mxu0 %v1665_v50  ;;  %v1660_v59 = vld [vmem:[#allocation5 + $0x10] sm:$0xff] }
  0x25   :  { %v233_v0 = vadd.f32 %v182_v56, %v181_v55  ;;  %v185_v1 = vmul.f32 %v2189_v57, %v2189_v57  ;;  %v186_v2 = vmul.f32 %v2191_v58, %v2191_v58  ;;  %v2209_v15 = vunpack.c.l.bf16 %v108_v7  ;;  %1699 = vmatpush.bf16.msra.mxu2 %v1665_v50  ;;  %1700 = vmatpush.bf16.msra.mxu3 %v1665_v50  ;;  %v1662_v55 = vld [vmem:[#allocation5 + $0x20] sm:$0xff]  ;;  %v1661_v56 = vld [vmem:[#allocation5 + $0x18] sm:$0xff] }
  0x26   :  { %267 = vadd.xlane.f32.xlu1 %v266_v37  ;;  %261 = vadd.xlane.f32.xlu0 %v260_v38  ;;  %2942 = vst [vmem:[#allocation16_spill] sm:$0xff] %v2199_v63  ;;  %v187_v13 = vmul.f32 %v2197_v62, %v2197_v62  ;;  %v188_v14 = vmul.f32 %v2199_v63, %v2199_v63  ;;  %v2211_v16 = vunpack.c.h.bf16 %v108_v7  ;;  %v2213_v19 = vunpack.c.l.bf16 %v107_v12 }
  0x27   :  { %v236_v17 = vadd.f32 %v184_v61, %v183_v60  ;;  %v239_v18 = vadd.f32 %v186_v2, %v185_v1  ;;  %v2215_v22 = vunpack.c.h.bf16 %v107_v12  ;;  %v191_v25 = vmul.f32 %v2209_v15, %v2209_v15  ;;  %v1659_v60 = vld [vmem:[#allocation5 + $0x8] sm:$0xff]  ;;  %v1658_v61 = vld [vmem:[#allocation5] sm:$0xff]  ;;  %v1673_v12 = vld [vmem:[#allocation5 + $0x78] sm:$0xff] }
  0x28   :  { %2943 = vst [vmem:[#allocation17_spill] sm:$0xff] %v2211_v16  ;;  %v242_v24 = vadd.f32 %v188_v14, %v187_v13  ;;  %v192_v26 = vmul.f32 %v2211_v16, %v2211_v16  ;;  %v189_v27 = vmul.f32 %v2213_v19, %v2213_v19  ;;  %v2225_v32 = vunpack.c.l.bf16 %v109_v23  ;;  %v119_v13 = vld [vmem:[#allocation2 + $0x80] sm:$0xff] }
  0x29   :  { %273 = vadd.xlane.f32.xlu2 %v272_v46  ;;  %2944 = vst [vmem:[#allocation18_spill] sm:$0xff] %v2215_v22  ;;  %v190_v30 = vmul.f32 %v2215_v22, %v2215_v22  ;;  %v2227_v37 = vunpack.c.h.bf16 %v109_v23  ;;  %v2229_v38 = vunpack.c.l.bf16 %v110_v31  ;;  %v2231_v39 = vunpack.c.h.bf16 %v110_v31 }
  0x2a   :  { %v248_v40 = vadd.f32 %v192_v26, %v191_v25  ;;  %v193_v42 = vmul.f32 %v2225_v32, %v2225_v32  ;;  %v2246_v14 = vunpack.c.l.bf16 %v119_v13  ;;  %v2249_v23 = vunpack.c.h.bf16 %v119_v13 }
  0x2b   :  { %2945 = vst [vmem:[#allocation19_spill] sm:$0xff] %v2227_v37  ;;  %v245_v41 = vadd.f32 %v190_v30, %v189_v27  ;;  %v194_v43 = vmul.f32 %v2227_v37, %v2227_v37  ;;  %v195_v44 = vmul.f32 %v2229_v38, %v2229_v38  ;;  %v196_v45 = vmul.f32 %v2231_v39, %v2231_v39 }
  0x2c   :  { %2946 = vst [vmem:[#allocation20_spill] sm:$0xff] %v2231_v39  ;;  %v213_v25 = vmul.f32 %v2246_v14, %v2246_v14  ;;  %v214_v26 = vmul.f32 %v2249_v23, %v2249_v23 }
  0x2d   :  { %v251_v46 = vadd.f32 %v194_v43, %v193_v42  ;;  %v254_v47 = vadd.f32 %v196_v45, %v195_v44  ;;  %2947 = vst [vmem:[#allocation21_spill] sm:$0xff] %v2246_v14  ;;  %v121_v14 = vld [vmem:[#allocation2 + $0x90] sm:$0xff] }
  0x2e   :  { %276 = vadd.xlane.f32.xlu0 %v275_v51  ;;  %279 = vadd.xlane.f32.xlu1 %v278_v52  ;;  %v1664_v51 = vld [vmem:[#allocation5 + $0x30] sm:$0xff]  ;;  %v1663_v52 = vld [vmem:[#allocation5 + $0x28] sm:$0xff]  ;;  %2948 = vst [vmem:[#allocation22_spill] sm:$0xff] %v2249_v23  ;;  %v281_v31 = vadd.f32 %v214_v26, %v213_v25  ;;  %v2377_v22 = vunpack.c.l.bf16 %v121_v14  ;;  %v2379_v63 = vunpack.c.h.bf16 %v121_v14 }
  0x2f   :  { %1701 = vmatpush.bf16.msra.mxu1 %v1664_v51  ;;  %808 = vmatpush.bf16.msra.mxu0 %v1664_v51 }
  0x30   :  { %1702 = vmatpush.bf16.msra.mxu2 %v1664_v51  ;;  %1703 = vmatpush.bf16.msra.mxu3 %v1664_v51  ;;  %2957 = vst [vmem:[#allocation27_spill] sm:$0xff] %v2379_v63 }
  0x31   :  { %234 = vadd.xlane.f32.xlu2 %v233_v0 }
  0x33   :  { %1704 = vmatpush.bf16.msra.mxu1 %v1663_v52  ;;  %809 = vmatpush.bf16.msra.mxu0 %v1663_v52 }
  0x34   :  { %1705 = vmatpush.bf16.msra.mxu2 %v1663_v52  ;;  %1706 = vmatpush.bf16.msra.mxu3 %v1663_v52 }
  0x36   :  { %237 = vadd.xlane.f32.xlu0 %v236_v17  ;;  %240 = vadd.xlane.f32.xlu1 %v239_v18  ;;  %v1672_v18 = vld [vmem:[#allocation5 + $0x70] sm:$0xff] }
  0x37   :  { %1707 = vmatpush.bf16.msra.mxu1 %v1662_v55  ;;  %810 = vmatpush.bf16.msra.mxu0 %v1662_v55 }
  0x38   :  { %1708 = vmatpush.bf16.msra.mxu2 %v1662_v55  ;;  %1709 = vmatpush.bf16.msra.mxu3 %v1662_v55 }
  0x39   :  { %243 = vadd.xlane.f32.xlu2 %v242_v24 }
  0x3b   :  { %1710 = vmatpush.bf16.msra.mxu1 %v1661_v56  ;;  %811 = vmatpush.bf16.msra.mxu0 %v1661_v56 }
  0x3c   :  { %1711 = vmatpush.bf16.msra.mxu2 %v1661_v56  ;;  %1712 = vmatpush.bf16.msra.mxu3 %v1661_v56 }
  0x3e   :  { %249 = vadd.xlane.f32.xlu1 %v248_v40  ;;  %246 = vadd.xlane.f32.xlu0 %v245_v41  ;;  %v120_v40 = vld [vmem:[#allocation2 + $0x88] sm:$0xff] }
  0x3f   :  { %1713 = vmatpush.bf16.msra.mxu1 %v1660_v59  ;;  %812 = vmatpush.bf16.msra.mxu0 %v1660_v59  ;;  %v2264_v44 = vunpack.c.l.bf16 %v120_v40  ;;  %v2266_v45 = vunpack.c.h.bf16 %v120_v40  ;;  %v1671_v40 = vld [vmem:[#allocation5 + $0x68] sm:$0xff] }
  0x40   :  { %1714 = vmatpush.bf16.msra.mxu2 %v1660_v59  ;;  %1715 = vmatpush.bf16.msra.mxu3 %v1660_v59 }
  0x41   :  { %252 = vadd.xlane.f32.xlu2 %v251_v46  ;;  %2949 = vst [vmem:[#allocation23_spill] sm:$0xff] %v2264_v44  ;;  %v215_v52 = vmul.f32 %v2264_v44, %v2264_v44  ;;  %v216_v59 = vmul.f32 %v2266_v45, %v2266_v45 }
  0x42   :  { %2950 = vst [vmem:[#allocation24_spill] sm:$0xff] %v2266_v45 }
  0x43   :  { %1716 = vmatpush.bf16.msra.mxu1 %v1659_v60  ;;  %813 = vmatpush.bf16.msra.mxu0 %v1659_v60 }
  0x44   :  { %1717 = vmatpush.bf16.msra.mxu2 %v1659_v60  ;;  %1718 = vmatpush.bf16.msra.mxu3 %v1659_v60 }
  0x46   :  { %255 = vadd.xlane.f32.xlu0 %v254_v47  ;;  %282 = vadd.xlane.f32.xlu1 %v281_v31 }
  0x47   :  { %1719 = vmatpush.bf16.msra.mxu1 %v1658_v61  ;;  %814 = vmatpush.bf16.msra.mxu0 %v1658_v61 }
  0x48   :  { %1720 = vmatpush.bf16.msra.mxu2 %v1658_v61  ;;  %1721 = vmatpush.bf16.msra.mxu3 %v1658_v61  ;;  %v284_v61 = vadd.f32 %v216_v59, %v215_v52  ;;  %v1670_v59 = vld [vmem:[#allocation5 + $0x60] sm:$0xff] }
  0x4a   :  { %285 = vadd.xlane.f32.xlu2 %v284_v61 }
  0x4b   :  { %881 = vmatpush.bf16.msrb.mxu1 %v1673_v12 }
  0x4f   :  { %882 = vmatpush.bf16.msrb.mxu1 %v1672_v18 }
  0x53   :  { %883 = vmatpush.bf16.msrb.mxu1 %v1671_v40 }
  0x57   :  { %884 = vmatpush.bf16.msrb.mxu1 %v1670_v59 }
  0x91   :  { %v265_v0 = vpop.xlane.xlu1 %264  ;;  %v259_v1 = vpop.xlane.xlu0 %258 }
  0x92   :  { %v2241_v2 = vmax.f32 %v265_v0, 1e-24  ;;  %v2243_v7 = vmax.f32 %v259_v1, 1e-24 }
  0x94   :  { %1734 = vrsqrt.f32 %v2241_v2  ;;  %v271_v17 = vpop.xlane.xlu2 %270  ;;  %vm443_vm1 = vweird.f32 %v2241_v2  ;;  %vm423_vm2 = vweird.f32 %v2243_v7 }
  0x95   :  { %1736 = vrsqrt.f32 %v2243_v7  ;;  %v2251_v24 = vmax.f32 %v271_v17, 1e-24 }
  0x97   :  { %1738 = vrsqrt.f32 %v2251_v24  ;;  %vm463_vm13 = vweird.f32 %v2251_v24 }
  0x99   :  { %v268_v27 = vpop.xlane.xlu1 %267  ;;  %v262_v30 = vpop.xlane.xlu0 %261 }
  0x9a   :  { %v2258_v41 = vpop.eup %1734  ;;  %v2260_v42 = vmax.f32 %v268_v27, 1e-24  ;;  %v2262_v43 = vmax.f32 %v262_v30, 1e-24 }
  0x9b   :  { %v1737_v46 = vpop.eup %1736  ;;  %v438_v50 = vmul.f32 %v2258_v41, %v2241_v2  ;;  %vm444_vm5 = vweird.f32 %v2258_v41 }
  0x9c   :  { %v418_v47 = vmul.f32 %v1737_v46, %v2243_v7  ;;  %1740 = vrsqrt.f32 %v2260_v42  ;;  %v274_v51 = vpop.xlane.xlu2 %273  ;;  %vm424_vm0 = vweird.f32 %v1737_v46  ;;  %vm433_vm6 = vweird.f32 %v2262_v43  ;;  %vm2334_vm10 = vmor %vm443_vm1, %vm444_vm5 }
  0x9d   :  { %1742 = vrsqrt.f32 %v2262_v43  ;;  %v2275_v55 = vpop.eup %1738  ;;  %v439_v0 = vmul.f32 %v2258_v41, %v438_v50  ;;  %v2282_v12 = vmax.f32 %v274_v51, 1e-24  ;;  %vm425_vm3 = vmor %vm423_vm2, %vm424_vm0  ;;  %vm453_vm7 = vweird.f32 %v2260_v42 }
  0x9e   :  { %v419_v56 = vmul.f32 %v1737_v46, %v418_v47  ;;  %v458_v1 = vmul.f32 %v2275_v55, %v2251_v24  ;;  %vm464_vm14 = vweird.f32 %v2275_v55 }
  0x9f   :  { %v440_v50 = vmul.f32 0.5, %v439_v0  ;;  %1744 = vrsqrt.f32 %v2282_v12  ;;  %v122_v0 = vld [vmem:[#allocation2 + $0x98] sm:$0xff]  ;;  %vm473_vm15 = vweird.f32 %v2282_v12 }
  0xa0   :  { %v420_v60 = vmul.f32 0.5, %v419_v56  ;;  %v459_v52 = vmul.f32 %v2275_v55, %v458_v1 }
  0xa1   :  { %v277_v13 = vpop.xlane.xlu0 %276  ;;  %v280_v17 = vpop.xlane.xlu1 %279  ;;  %v441_v1 = vsub.f32 1.5, %v440_v50 }
  0xa2   :  { %v2284_v18 = vpop.eup %1740  ;;  %v2286_v25 = vmax.f32 %v277_v13, 1e-24  ;;  %v421_v27 = vsub.f32 1.5, %v420_v60  ;;  %v2290_v31 = vmax.f32 %v280_v17, 1e-24 }
  0xa3   :  { %v1743_v26 = vpop.eup %1742  ;;  %v448_v30 = vmul.f32 %v2284_v18, %v2260_v42  ;;  %vm454_vm8 = vweird.f32 %v2284_v18 }
  0xa4   :  { %v428_v47 = vmul.f32 %v1743_v26, %v2262_v43  ;;  %v235_v56 = vpop.xlane.xlu2 %234  ;;  %1746 = vrsqrt.f32 %v2286_v25  ;;  %v422_v17 = vmul.f32 %v1737_v46, %v421_v27  ;;  %vm434_vm4 = vweird.f32 %v1743_v26  ;;  %vm2362_vm12 = vmor %vm453_vm7, %vm454_vm8 }
  0xa5   :  { %v449_v51 = vmul.f32 %v2284_v18, %v448_v30  ;;  %v2297_v60 = vmax.f32 %v235_v56, 1e-24  ;;  %1748 = vrsqrt.f32 %v2290_v31  ;;  %v2303_v30 = vmul.f32 0.5, %v459_v52  ;;  %vm435_vm9 = vmor %vm433_vm6, %vm434_vm4 }
  0xa6   :  { %v429_v61 = vmul.f32 %v1743_v26, %v428_v47  ;;  %v2313_v7 = vsel %vm425_vm3, %v1737_v46, %v422_v17  ;;  %v442_v43 = vmul.f32 %v2258_v41, %v441_v1  ;;  %vm483_vm1 = vweird.f32 %v2286_v25 }
  0xa7   :  { %v450_v13 = vmul.f32 0.5, %v449_v51  ;;  %1750 = vrsqrt.f32 %v2297_v60  ;;  %v2307_v51 = vunpack.c.l.bf16 %v122_v0  ;;  %vm343_vm11 = vweird.f32 %v2297_v60 }
  0xa8   :  { %v430_v45 = vmul.f32 0.5, %v429_v61  ;;  %v2309_v61 = vpop.eup %1744  ;;  %vm493_vm3 = vweird.f32 %v2290_v31 }
  0xa9   :  { %v238_v40 = vpop.xlane.xlu0 %237  ;;  %v241_v47 = vpop.xlane.xlu1 %240  ;;  %2951 = vst [vmem:[#allocation25_spill] sm:$0xff] %v2307_v51  ;;  %v451_v50 = vsub.f32 1.5, %v450_v13  ;;  %v219_v1 = vmul.f32 %v2307_v51, %v2307_v51  ;;  %vm474_vm6 = vweird.f32 %v2309_v61 }
  0xaa   :  { %v431_v56 = vsub.f32 1.5, %v430_v45  ;;  %v2305_v27 = vmax.f32 %v238_v40, 1e-24  ;;  %v2315_v52 = vpop.eup %1746  ;;  %v2318_v45 = vunpack.c.h.bf16 %v122_v0  ;;  %v2320_v40 = vmax.f32 %v241_v47, 1e-24 }
  0xab   :  { %v2322_v23 = vpop.eup %1748  ;;  %v468_v0 = vmul.f32 %v2309_v61, %v2282_v12  ;;  %v478_v44 = vmul.f32 %v2315_v52, %v2286_v25  ;;  %vm484_vm7 = vweird.f32 %v2315_v52 }
  0xac   :  { %v432_v59 = vmul.f32 %v1743_v26, %v431_v56  ;;  %1752 = vrsqrt.f32 %v2305_v27  ;;  %2952 = vst [vmem:[#allocation26_spill] sm:$0xff] %v2318_v45  ;;  %v613_v56 = vmul.f32 %v2313_v7, %v2117_v5  ;;  %v244_v5 = vpop.xlane.xlu2 %243  ;;  %v488_v39 = vmul.f32 %v2322_v23, %v2290_v31 }
  0xad   :  { %v2328_v46 = vpop.eup %1750  ;;  %1754 = vrsqrt.f32 %v2320_v40  ;;  %v469_v16 = vmul.f32 %v2309_v61, %v468_v0  ;;  %v2386_v13 = vmax.f32 %v244_v5, 1e-24  ;;  %v1668_v5 = vld [vmem:[#allocation5 + $0x50] sm:$0xff]  ;;  %vm353_vm2 = vweird.f32 %v2305_v27 }
  0xae   :  { %v2341_v47 = vsel %vm435_vm9, %v1743_v26, %v432_v59  ;;  %v338_v17 = vmul.f32 %v2328_v46, %v2297_v60  ;;  %v452_v26 = vmul.f32 %v2284_v18, %v451_v50  ;;  %v220_v59 = vmul.f32 %v2318_v45, %v2318_v45 }
  0xaf   :  { %v615_v2 = vmul.f32 %v2341_v47, %v2125_v10  ;;  %v2372_v45 = vsel %vm2334_vm10, %v2258_v41, %v442_v43  ;;  %vm344_vm0 = vweird.f32 %v2328_v46  ;;  %1756 = vrsqrt.f32 %v2386_v13 }
  0xb0   :  { %v339_v50 = vmul.f32 %v2328_v46, %v338_v17  ;;  %v290_v42 = vadd.f32 %v220_v59, %v219_v1  ;;  %v479_v17 = vmul.f32 %v2315_v52, %v478_v44  ;;  %v2393_v14 = vsel %vm2362_vm12, %v2284_v18, %v452_v26  ;;  %vm2414_vm5 = vmor %vm343_vm11, %vm344_vm0 }
  0xb1   :  { %v657_v51 = vpack.c.bf16 %v615_v2, %v613_v56  ;;  %v1669_v56 = vld [vmem:[#allocation5 + $0x58] sm:$0xff]  ;;  %v250_v0 = vpop.xlane.xlu1 %249  ;;  %v217_v44 = vmul.f32 %v2377_v22, %v2377_v22  ;;  %v489_v1 = vmul.f32 %v2322_v23, %v488_v39  ;;  %v470_v26 = vmul.f32 0.5, %v469_v16  ;;  %vm2460_vm11 = vmor %vm463_vm13, %vm464_vm14 }
  0xb2   :  { %v2374_v37 = vpop.eup %1752  ;;  %v340_v43 = vmul.f32 0.5, %v339_v50  ;;  %291 = vadd.xlane.f32.xlu1 %v290_v42  ;;  %885 = vmatpush.bf16.msrb.mxu1 %v1669_v56  ;;  %v2406_v50 = vmax.f32 %v250_v0, 1e-24  ;;  %v247_v42 = vpop.xlane.xlu0 %246  ;;  %vm494_vm9 = vweird.f32 %v2322_v23  ;;  %vm363_vm10 = vweird.f32 %v2320_v40  ;;  %vm2473_vm0 = vmor %vm473_vm15, %vm474_vm6 }
  0xb3   :  { %835 = vmatmul.bf16.vlgmr.msra.gmra.mxu1 %v657_v51  ;;  %v348_v41 = vmul.f32 %v2374_v37, %v2305_v27  ;;  %v218_v51 = vmul.f32 %v2379_v63, %v2379_v63  ;;  %v2403_v18 = vpop.eup %1754  ;;  %v480_v63 = vmul.f32 0.5, %v479_v17  ;;  %vm354_vm4 = vweird.f32 %v2374_v37  ;;  %vm2492_vm13 = vmor %vm483_vm1, %vm484_vm7 }
  0xb4   :  { %v341_v59 = vsub.f32 1.5, %v340_v43  ;;  %v358_v16 = vmul.f32 %v2403_v18, %v2320_v40  ;;  %v617_v17 = vmul.f32 %v2372_v45, %v2113_v3  ;;  %v619_v43 = vmul.f32 %v2393_v14, %v2121_v8  ;;  %vm355_vm8 = vmor %vm353_vm2, %vm354_vm4 }
  0xb5   :  { %v349_v2 = vmul.f32 %v2374_v37, %v348_v41  ;;  %v287_v10 = vadd.f32 %v218_v51, %v217_v44  ;;  %v490_v0 = vmul.f32 0.5, %v489_v1  ;;  %v2427_v51 = vmax.f32 %v247_v42, 1e-24  ;;  %v2440_v8 = vpop.eup %1756  ;;  %vm2517_vm1 = vmor %vm493_vm3, %vm494_vm9 }
  0xb6   :  { %v342_v56 = vmul.f32 %v2328_v46, %v341_v59  ;;  %v359_v44 = vmul.f32 %v2403_v18, %v358_v16  ;;  %886 = vmatpush.bf16.msrb.mxu1 %v1668_v5  ;;  %1758 = vrsqrt.f32 %v2406_v50  ;;  %v481_v1 = vsub.f32 1.5, %v480_v63 }
  0xb7   :  { %v350_v39 = vmul.f32 0.5, %v349_v2  ;;  %288 = vadd.xlane.f32.xlu0 %v287_v10  ;;  %v471_v2 = vsub.f32 1.5, %v470_v26  ;;  %v659_v26 = vpack.c.bf16 %v619_v43, %v617_v17  ;;  %v368_v27 = vmul.f32 %v2440_v8, %v2386_v13 }
  0xb8   :  { %v2437_v3 = vsel %vm2414_vm5, %v2328_v46, %v342_v56  ;;  %v360_v59 = vmul.f32 0.5, %v359_v44  ;;  %1760 = vrsqrt.f32 %v2427_v51  ;;  %v491_v46 = vsub.f32 1.5, %v490_v0  ;;  %v123_v44 = vld [vmem:[#allocation2 + $0xa0] sm:$0xff] }
  0xb9   :  { %v351_v60 = vsub.f32 1.5, %v350_v39  ;;  %v597_v10 = vmul.f32 %v2437_v3, %v2177_v48  ;;  %v2960_v42 = vsub.f32 1.5, %v2303_v30  ;;  %vm364_vm12 = vweird.f32 %v2403_v18 }
  0xba   :  { %v369_v48 = vmul.f32 %v2440_v8, %v368_v27  ;;  %v472_v16 = vmul.f32 %v2309_v61, %v471_v2  ;;  %v361_v24 = vsub.f32 1.5, %v360_v59  ;;  %v482_v17 = vmul.f32 %v2315_v52, %v481_v1  ;;  %vm2531_vm2 = vmor %vm363_vm10, %vm364_vm12 }
  0xbb   :  { %v352_v5 = vmul.f32 %v2374_v37, %v351_v60  ;;  %v462_v63 = vmul.f32 %v2275_v55, %v2960_v42  ;;  %v2480_v43 = vmul.f32 %v2313_v7, %v2119_v6  ;;  %v2484_v56 = vmul.f32 %v2341_v47, %v2127_v11  ;;  %v256_v42 = vpop.xlane.xlu0 %255 }
  0xbc   :  { %v370_v0 = vmul.f32 0.5, %v369_v48  ;;  %v2498_v6 = vmul.f32 %v2372_v45, %v2115_v4  ;;  %v2502_v11 = vmul.f32 %v2393_v14, %v2123_v9  ;;  %vm373_vm14 = vweird.f32 %v2386_v13  ;;  %v124_v14 = vld [vmem:[#allocation2 + $0xa8] sm:$0xff]  ;;  %v1666_v13 = vld [vmem:[#allocation5 + $0x40] sm:$0xff]  ;;  %v253_v48 = vpop.xlane.xlu2 %252 }
  0xbd   :  { %v2454_v39 = vsel %vm355_vm8, %v2374_v37, %v352_v5  ;;  %vm374_vm15 = vweird.f32 %v2440_v8  ;;  %v466_v25 = vsel %vm2460_vm11, %v2275_v55, %v462_v63  ;;  %v658_v7 = vpack.c.bf16 %v2484_v56, %v2480_v43  ;;  %v1667_v5 = vld [vmem:[#allocation5 + $0x48] sm:$0xff] }
  0xbe   :  { %v599_v30 = vmul.f32 %v2454_v39, %v2181_v53  ;;  %v2486_v53 = vpop.eup %1758  ;;  %v371_v9 = vsub.f32 1.5, %v370_v0  ;;  %v476_v45 = vsel %vm2473_vm0, %v2309_v61, %v472_v16  ;;  %v492_v55 = vmul.f32 %v2322_v23, %v491_v46  ;;  %vm2550_vm3 = vmor %vm373_vm14, %vm374_vm15  ;;  %887 = vmatpush.bf16.msrb.mxu1 %v1667_v5 }
  0xbf   :  { %v2511_v47 = vpop.eup %1760  ;;  %v660_v2 = vpack.c.bf16 %v2502_v11, %v2498_v6  ;;  %v388_v61 = vmul.f32 %v2486_v53, %v2406_v50  ;;  %v2542_v59 = vsel %vm2492_vm13, %v2315_v52, %v482_v17  ;;  %v2554_v27 = vunpack.c.h.bf16 %v124_v14 }
  0xc0   :  { %v649_v60 = vpack.c.bf16 %v599_v30, %v597_v10  ;;  %v378_v1 = vmul.f32 %v2511_v47, %v2427_v51  ;;  %v2556_v10 = vunpack.c.l.bf16 %v123_v44  ;;  %v2558_v46 = vunpack.c.h.bf16 %v123_v44 }
  0xc1   :  { %v362_v52 = vmul.f32 %v2403_v18, %v361_v24  ;;  %v372_v41 = vmul.f32 %v2440_v8, %v371_v9  ;;  %v2565_v16 = vmul.f32 %v466_v25, %v2139_v21  ;;  %v2568_v30 = vmul.f32 %v476_v45, %v2155_v29 }
  0xc2   :  { %815 = vmatmul.bf16.vlgmr.msra.gmra.mxu0 %v649_v60  ;;  %v2573_v37 = vsel %vm2517_vm1, %v2322_v23, %v492_v55  ;;  %v224_v24 = vmul.f32 %v2554_v27, %v2554_v27  ;;  %v221_v17 = vmul.f32 %v2556_v10, %v2556_v10  ;;  %v222_v12 = vmul.f32 %v2558_v46, %v2558_v46 }
  0xc3   :  { %840 = vmatmul.bf16.gmra.mxu1 %v659_v26  ;;  %v2544_v26 = vunpack.c.l.bf16 %v124_v14  ;;  %v389_v21 = vmul.f32 %v2486_v53, %v388_v61  ;;  %v2585_v29 = vsel %vm2531_vm2, %v2403_v18, %v362_v52  ;;  %v2590_v23 = vsel %vm2550_vm3, %v2440_v8, %v372_v41 }
  0xc4   :  { %v2592_v0 = vmax.f32 %v256_v42, 1e-24  ;;  %v379_v60 = vmul.f32 %v2511_v47, %v378_v1  ;;  %v293_v9 = vadd.f32 %v222_v12, %v221_v17  ;;  %v2595_v55 = vmax.f32 %v253_v48, 1e-24  ;;  %888 = vmatpush.bf16.msrb.mxu1 %v1666_v13 }
  0xc5   :  { %v223_v63 = vmul.f32 %v2544_v26, %v2544_v26  ;;  %v662_v14 = vpack.c.bf16 %v2568_v30, %v2565_v16  ;;  %v601_v18 = vmul.f32 %v2585_v29, %v2189_v57  ;;  %v603_v8 = vmul.f32 %v2590_v23, %v2197_v62 }
  0xc6   :  { %294 = vadd.xlane.f32.xlu2 %v293_v9  ;;  %1762 = vrsqrt.f32 %v2592_v0  ;;  %v2606_v44 = vmul.f32 %v2542_v59, %v2159_v34  ;;  %v2611_v31 = vmul.f32 %v2573_v37, %v2163_v36  ;;  %v390_v61 = vmul.f32 0.5, %v389_v21 }
  0xc7   :  { %v296_v4 = vadd.f32 %v224_v24, %v223_v63  ;;  %1764 = vrsqrt.f32 %v2595_v55  ;;  %v380_v1 = vmul.f32 0.5, %v379_v60  ;;  %v621_v5 = vmul.f32 %v466_v25, %v2137_v20  ;;  %v125_v20 = vld [vmem:[#allocation2 + $0xb0] sm:$0xff] }
  0xc8   :  { %v623_v57 = vmul.f32 %v476_v45, %v2153_v28  ;;  %v664_v62 = vpack.c.bf16 %v2611_v31, %v2606_v44  ;;  %v651_v40 = vpack.c.bf16 %v603_v8, %v601_v18  ;;  %v391_v34 = vsub.f32 1.5, %v390_v61  ;;  %v126_v28 = vld [vmem:[#allocation2 + $0xb8] sm:$0xff] }
  0xc9   :  { %297 = vadd.xlane.f32.xlu0 %v296_v4  ;;  %vm393_vm4 = vweird.f32 %v2406_v50  ;;  %vm394_vm5 = vweird.f32 %v2486_v53  ;;  %v381_v42 = vsub.f32 1.5, %v380_v1  ;;  %vm383_vm6 = vweird.f32 %v2427_v51 }
  0xca   :  { %v661_v63 = vpack.c.bf16 %v623_v57, %v621_v5  ;;  %vm384_vm7 = vweird.f32 %v2511_v47  ;;  %vm2625_vm8 = vmor %vm393_vm4, %vm394_vm5  ;;  %v2631_v45 = vunpack.c.l.bf16 %v125_v20  ;;  %v2633_v41 = vunpack.c.h.bf16 %v125_v20 }
  0xcb   :  { %v2635_v13 = vunpack.c.l.bf16 %v126_v28  ;;  %vm385_vm9 = vmor %vm383_vm6, %vm384_vm7  ;;  %v2639_v48 = vunpack.c.h.bf16 %v126_v28  ;;  %v382_v24 = vmul.f32 %v2511_v47, %v381_v42  ;;  %v392_v17 = vmul.f32 %v2486_v53, %v391_v34 }
  0xcc   :  { %v2617_v52 = vpop.eup %1762  ;;  %v225_v12 = vmul.f32 %v2631_v45, %v2631_v45  ;;  %v226_v21 = vmul.f32 %v2633_v41, %v2633_v41  ;;  %vm413_vm10 = vweird.f32 %v2592_v0  ;;  %vm403_vm12 = vweird.f32 %v2595_v55 }
  0xcd   :  { %v2621_v36 = vpop.eup %1764  ;;  %v408_v50 = vmul.f32 %v2617_v52, %v2592_v0  ;;  %v227_v60 = vmul.f32 %v2635_v13, %v2635_v13  ;;  %v228_v4 = vmul.f32 %v2639_v48, %v2639_v48  ;;  %v386_v18 = vsel %vm385_vm9, %v2511_v47, %v382_v24 }
  0xce   :  { %v398_v51 = vmul.f32 %v2621_v36, %v2595_v55  ;;  %v299_v9 = vadd.f32 %v226_v21, %v225_v12  ;;  %v396_v8 = vsel %vm2625_vm8, %v2486_v53, %v392_v17  ;;  %v605_v57 = vmul.f32 %v386_v18, %v2213_v19  ;;  %v127_v19 = vld [vmem:[#allocation2 + $0xc0] sm:$0xff] }
  0xcf   :  { %v409_v61 = vmul.f32 %v2617_v52, %v408_v50  ;;  %v302_v5 = vadd.f32 %v228_v4, %v227_v60  ;;  %v625_v47 = vmul.f32 %v2542_v59, %v2157_v33  ;;  %vm414_vm11 = vweird.f32 %v2617_v52 }
  0xd0   :  { %v399_v1 = vmul.f32 %v2621_v36, %v398_v51  ;;  %300 = vadd.xlane.f32.xlu1 %v299_v9  ;;  %vm404_vm0 = vweird.f32 %v2621_v36  ;;  %vm415_vm13 = vmor %vm413_vm10, %vm414_vm11  ;;  %v2671_v59 = vunpack.c.l.bf16 %v127_v19 }
  0xd1   :  { %303 = vadd.xlane.f32.xlu2 %v302_v5  ;;  %v410_v34 = vmul.f32 0.5, %v409_v61  ;;  %vm405_vm14 = vmor %vm403_vm12, %vm404_vm0  ;;  %v600_v5 = vmul.f32 %v2454_v39, %v2183_v54  ;;  %v286_v39 = vpop.xlane.xlu2 %285 }
  0xd2   :  { %820 = vmatmul.bf16.gmra.mxu0 %v651_v40  ;;  %v607_v40 = vmul.f32 %v396_v8, %v2209_v15  ;;  %v400_v42 = vmul.f32 0.5, %v399_v1  ;;  %v128_v15 = vld [vmem:[#allocation2 + $0xc8] sm:$0xff]  ;;  %v229_v24 = vmul.f32 %v2671_v59, %v2671_v59  ;;  %v598_v1 = vmul.f32 %v2437_v3, %v2179_v49  ;;  %v283_v3 = vpop.xlane.xlu1 %282 }
  0xd3   :  { %845 = vmatmul.bf16.gmra.mxu1 %v661_v63  ;;  %v627_v63 = vmul.f32 %v2573_v37, %v2161_v35  ;;  %v411_v20 = vsub.f32 1.5, %v410_v34  ;;  %v2667_v33 = vunpack.c.l.bf16 %v128_v15  ;;  %v2669_v35 = vunpack.c.h.bf16 %v128_v15 }
  0xd4   :  { %v653_v53 = vpack.c.bf16 %v607_v40, %v605_v57  ;;  %v401_v28 = vsub.f32 1.5, %v400_v42  ;;  %v2673_v37 = vunpack.c.h.bf16 %v127_v19  ;;  %v650_v40 = vpack.c.bf16 %v600_v5, %v598_v1  ;;  %v2980_v5 = vld [vmem:[#allocation21_spill] sm:$0xff] }
  0xd5   :  { %v663_v25 = vpack.c.bf16 %v627_v63, %v625_v47  ;;  %v412_v55 = vmul.f32 %v2617_v52, %v411_v20  ;;  %v231_v50 = vmul.f32 %v2667_v33, %v2667_v33  ;;  %v232_v51 = vmul.f32 %v2669_v35, %v2669_v35  ;;  %v2977_v47 = vld [vmem:[#allocation17_spill] sm:$0xff] }
  0xd6   :  { %v402_v0 = vmul.f32 %v2621_v36, %v401_v28  ;;  %v230_v17 = vmul.f32 %v2673_v37, %v2673_v37  ;;  %v608_v63 = vmul.f32 %v396_v8, %v2977_v47  ;;  %v327_v54 = vmax.f32 %v283_v3, 1e-24  ;;  %v2978_v28 = vld [vmem:[#allocation19_spill] sm:$0xff] }
  0xd7   :  { %v308_v12 = vadd.f32 %v232_v51, %v231_v50  ;;  %v416_v4 = vsel %vm415_vm13, %v2617_v52, %v412_v55  ;;  %v2975_v52 = vld [vmem:[#allocation16_spill] sm:$0xff] }
  0xd8   :  { %v305_v21 = vadd.f32 %v230_v17, %v229_v24  ;;  %v406_v60 = vsel %vm405_vm14, %v2621_v36, %v402_v0  ;;  %v611_v61 = vmul.f32 %v416_v4, %v2229_v38  ;;  %v602_v36 = vmul.f32 %v2585_v29, %v2191_v58  ;;  %v2979_v29 = vld [vmem:[#allocation20_spill] sm:$0xff] }
  0xd9   :  { %309 = vadd.xlane.f32.xlu1 %v308_v12  ;;  %v609_v9 = vmul.f32 %v406_v60, %v2225_v32  ;;  %v604_v34 = vmul.f32 %v2590_v23, %v2975_v52  ;;  %v2976_v32 = vld [vmem:[#allocation18_spill] sm:$0xff]  ;;  %1766 = vrsqrt.f32 %v327_v54  ;;  %v610_v58 = vmul.f32 %v406_v60, %v2978_v28 }
  0xda   :  { %306 = vadd.xlane.f32.xlu0 %v305_v21  ;;  %v606_v38 = vmul.f32 %v386_v18, %v2976_v32  ;;  %vm503_vm15 = vweird.f32 %v327_v54 }
  0xdb   :  { %v655_v57 = vpack.c.bf16 %v611_v61, %v609_v9  ;;  %v652_v42 = vpack.c.bf16 %v604_v34, %v602_v36 }
  0xdc   :  { %v654_v49 = vpack.c.bf16 %v608_v63, %v606_v38 }
  0xdf   :  { %v1767_v20 = vpop.eup %1766 }
  0xe0   :  { %v498_v23 = vmul.f32 %v1767_v20, %v327_v54  ;;  %vm504_vm1 = vweird.f32 %v1767_v20 }
  0xe1   :  { %vm505_vm4 = vmor %vm503_vm15, %vm504_vm1 }
  0xe2   :  { %825 = vmatmul.bf16.gmra.mxu0 %v653_v53  ;;  %v328_v53 = vmax.f32 %v286_v39, 1e-24  ;;  %v499_v19 = vmul.f32 %v1767_v20, %v498_v23 }
  0xe3   :  { %850 = vmatmul.bf16.gmra.mxu1 %v663_v25  ;;  %v612_v25 = vmul.f32 %v416_v4, %v2979_v29 }
  0xe4   :  { %1768 = vrsqrt.f32 %v328_v53  ;;  %v500_v55 = vmul.f32 0.5, %v499_v19  ;;  %vm513_vm2 = vweird.f32 %v328_v53 }
  0xe5   :  { %v656_v18 = vpack.c.bf16 %v612_v25, %v610_v58 }
  0xe6   :  { %v501_v51 = vsub.f32 1.5, %v500_v55 }
  0xe8   :  { %v502_v21 = vmul.f32 %v1767_v20, %v501_v51 }
  0xea   :  { %v1769_v15 = vpop.eup %1768  ;;  %v506_v9 = vsel %vm505_vm4, %v1767_v20, %v502_v21 }
  0xeb   :  { %v508_v0 = vmul.f32 %v1769_v15, %v328_v53  ;;  %vm514_vm3 = vweird.f32 %v1769_v15 }
  0xec   :  { %vm515_vm5 = vmor %vm513_vm2, %vm514_vm3 }
  0xed   :  { %v509_v8 = vmul.f32 %v1769_v15, %v508_v0 }
  0xef   :  { %v510_v50 = vmul.f32 0.5, %v509_v8  ;;  %v1681_v8 = vld [vmem:[#allocation7 + $0x38] sm:$0xff] }
  0xf0   :  { %1062 = vmatpush.bf16.msrb.mxu2 %v1681_v8 }
  0xf1   :  { %v511_v24 = vsub.f32 1.5, %v510_v50 }
  0xf2   :  { %830 = vmatmul.bf16.gmra.mxu0 %v655_v57  ;;  %v629_v57 = vmul.f32 %v506_v9, %v2980_v5  ;;  %v1680_v5 = vld [vmem:[#allocation7 + $0x30] sm:$0xff] }
  0xf3   :  { %889 = vmatmul.bf16.vlgmr.msrb.gmra.mxu1 %v650_v40  ;;  %v512_v60 = vmul.f32 %v1769_v15, %v511_v24  ;;  %v2981_v40 = vld [vmem:[#allocation23_spill] sm:$0xff]  ;;  %v2983_v24 = vld [vmem:[#allocation22_spill] sm:$0xff] }
  0xf4   :  { %1063 = vmatpush.bf16.msrb.mxu2 %v1680_v5 }
  0xf5   :  { %v516_v61 = vsel %vm515_vm5, %v1769_v15, %v512_v60  ;;  %v2982_v15 = vld [vmem:[#allocation25_spill] sm:$0xff] }
  0xf6   :  { %v631_v36 = vmul.f32 %v516_v61, %v2981_v40 }
  0xf8   :  { %v665_v52 = vpack.c.bf16 %v631_v36, %v629_v57 }
  0xfa   :  { %855 = vmatmul.bf16.vlgmr.msra.gmra.mxu2 %v665_v52 }
 0x103   :  { %894 = vmatmul.bf16.gmra.mxu1 %v652_v42 }
 0x113   :  { %899 = vmatmul.bf16.gmra.mxu1 %v654_v49 }
 0x123   :  { %904 = vmatmul.bf16.gmra.mxu1 %v656_v18 }
 0x125   :  { %v292_v17 = vpop.xlane.xlu1 %291 }
 0x126   :  { %v330_v12 = vmax.f32 %v292_v17, 1e-24  ;;  %v2724_v17 = vmul.f32 %v506_v9, %v2983_v24 }
 0x128   :  { %1770 = vrsqrt.f32 %v330_v12  ;;  %vm533_vm6 = vweird.f32 %v330_v12 }
 0x12a   :  { %v289_v4 = vpop.xlane.xlu0 %288 }
 0x12b   :  { %v329_v1 = vmax.f32 %v289_v4, 1e-24 }
 0x12d   :  { %1772 = vrsqrt.f32 %v329_v1  ;;  %vm523_vm9 = vweird.f32 %v329_v1 }
 0x12e   :  { %v1771_v34 = vpop.eup %1770 }
 0x12f   :  { %v528_v32 = vmul.f32 %v1771_v34, %v330_v12  ;;  %vm534_vm7 = vweird.f32 %v1771_v34  ;;  %v2984_v12 = vld [vmem:[#allocation24_spill] sm:$0xff] }
 0x130   :  { %v2703_v42 = vpop.f32.mrf.mxu1  ;;  %vm535_vm8 = vmor %vm533_vm6, %vm534_vm7  ;;  %v2727_v21 = vmul.f32 %v516_v61, %v2984_v12 }
 0x131   :  { %v529_v38 = vmul.f32 %v1771_v34, %v528_v32 }
 0x132   :  { %v666_v57 = vpack.c.bf16 %v2727_v21, %v2724_v17 }
 0x133   :  { %909 = vmatmul.bf16.gmra.mxu1 %v658_v7  ;;  %v1773_v47 = vpop.eup %1772  ;;  %v530_v63 = vmul.f32 0.5, %v529_v38 }
 0x134   :  { %v518_v49 = vmul.f32 %v1773_v47, %v329_v1  ;;  %vm524_vm10 = vweird.f32 %v1773_v47 }
 0x135   :  { %v531_v3 = vsub.f32 1.5, %v530_v63  ;;  %vm525_vm11 = vmor %vm523_vm9, %vm524_vm10 }
 0x136   :  { %v519_v54 = vmul.f32 %v1773_v47, %v518_v49 }
 0x137   :  { %v532_v20 = vmul.f32 %v1771_v34, %v531_v3 }
 0x138   :  { %v2708_v39 = vpop.f32.mrf.mxu1  ;;  %v520_v53 = vmul.f32 0.5, %v519_v54 }
 0x139   :  { %v2710_v58 = vsel %vm535_vm8, %v1771_v34, %v532_v20  ;;  %v295_v56 = vpop.xlane.xlu2 %294  ;;  %v1677_v20 = vld [vmem:[#allocation7 + $0x18] sm:$0xff] }
 0x13a   :  { %v521_v28 = vsub.f32 1.5, %v520_v53  ;;  %v331_v25 = vmax.f32 %v295_v56, 1e-24  ;;  %v635_v19 = vmul.f32 %v2710_v58, %v2982_v15 }
 0x13c   :  { %v298_v43 = vpop.xlane.xlu0 %297  ;;  %v522_v7 = vmul.f32 %v1773_v47, %v521_v28  ;;  %vm543_vm13 = vweird.f32 %v331_v25 }
 0x13d   :  { %v332_v29 = vmax.f32 %v298_v43, 1e-24 }
 0x13e   :  { %v2712_v23 = vsel %vm525_vm11, %v1773_v47, %v522_v7  ;;  %v1678_v47 = vld [vmem:[#allocation7 + $0x20] sm:$0xff] }
 0x13f   :  { %1774 = vrsqrt.f32 %v332_v29  ;;  %v633_v18 = vmul.f32 %v2712_v23, %v2377_v22  ;;  %vm553_vm12 = vweird.f32 %v332_v29  ;;  %v816_v24 = vpop.f32.mrf.mxu0 }
 0x140   :  { %v2716_v0 = vpop.f32.mrf.mxu1  ;;  %1776 = vrsqrt.f32 %v331_v25 }
 0x141   :  { %v667_v55 = vpack.c.bf16 %v635_v19, %v633_v18  ;;  %v1676_v18 = vld [vmem:[#allocation7 + $0x10] sm:$0xff] }
 0x143   :  { %914 = vmatmul.bf16.gmra.mxu1 %v660_v2  ;;  %860 = vmatmul.bf16.gmra.mxu2 %v667_v55  ;;  %v1679_v2 = vld [vmem:[#allocation7 + $0x28] sm:$0xff]  ;;  %v301_v36 = vpop.xlane.xlu1 %300 }
 0x144   :  { %v333_v9 = vmax.f32 %v301_v36, 1e-24  ;;  %v304_v52 = vpop.xlane.xlu2 %303  ;;  %1064 = vmatpush.bf16.msrb.mxu2 %v1679_v2 }
 0x145   :  { %v1775_v50 = vpop.eup %1774  ;;  %v334_v61 = vmax.f32 %v304_v52, 1e-24 }
 0x146   :  { %v1777_v51 = vpop.eup %1776  ;;  %v548_v60 = vmul.f32 %v1775_v50, %v332_v29  ;;  %vm554_vm0 = vweird.f32 %v1775_v50  ;;  %1778 = vrsqrt.f32 %v333_v9  ;;  %vm563_vm2 = vweird.f32 %v333_v9 }
 0x147   :  { %v538_v22 = vmul.f32 %v1777_v51, %v331_v25  ;;  %vm544_vm14 = vweird.f32 %v1777_v51  ;;  %1780 = vrsqrt.f32 %v334_v61  ;;  %vm555_vm15 = vmor %vm553_vm12, %vm554_vm0  ;;  %vm573_vm4 = vweird.f32 %v334_v61  ;;  %v818_v44 = vpop.f32.mrf.mxu0 }
 0x148   :  { %v2729_v4 = vpop.f32.mrf.mxu1  ;;  %v549_v1 = vmul.f32 %v1775_v50, %v548_v60  ;;  %vm545_vm1 = vmor %vm543_vm13, %vm544_vm14  ;;  %1065 = vmatpush.bf16.msrb.mxu2 %v1678_v47 }
 0x149   :  { %v539_v6 = vmul.f32 %v1777_v51, %v538_v22  ;;  %v1674_v22 = vld [vmem:[#allocation7] sm:$0xff] }
 0x14a   :  { %v550_v11 = vmul.f32 0.5, %v549_v1 }
 0x14b   :  { %v540_v40 = vmul.f32 0.5, %v539_v6 }
 0x14c   :  { %v551_v34 = vsub.f32 1.5, %v550_v11  ;;  %v1779_v3 = vpop.eup %1778  ;;  %1066 = vmatpush.bf16.msrb.mxu2 %v1677_v20  ;;  %v310_v55 = vpop.xlane.xlu1 %309 }
 0x14d   :  { %v541_v32 = vsub.f32 1.5, %v540_v40  ;;  %v1781_v28 = vpop.eup %1780  ;;  %v558_v43 = vmul.f32 %v1779_v3, %v333_v9  ;;  %v307_v8 = vpop.xlane.xlu0 %306  ;;  %vm564_vm3 = vweird.f32 %v1779_v3 }
 0x14e   :  { %v552_v49 = vmul.f32 %v1775_v50, %v551_v34  ;;  %v568_v7 = vmul.f32 %v1781_v28, %v334_v61  ;;  %vm574_vm5 = vweird.f32 %v1781_v28  ;;  %vm565_vm6 = vmor %vm563_vm2, %vm564_vm3 }
 0x14f   :  { %v542_v63 = vmul.f32 %v1777_v51, %v541_v32  ;;  %vm575_vm7 = vmor %vm573_vm4, %vm574_vm5  ;;  %v821_v20 = vpop.f32.mrf.mxu0 }
 0x150   :  { %v2733_v38 = vpop.f32.mrf.mxu1  ;;  %v2740_v53 = vsel %vm555_vm15, %v1775_v50, %v552_v49  ;;  %v569_v29 = vmul.f32 %v1781_v28, %v568_v7  ;;  %1067 = vmatpush.bf16.msrb.mxu2 %v1676_v18  ;;  %v336_v50 = vmax.f32 %v310_v55, 1e-24  ;;  %v2985_v18 = vld [vmem:[#allocation27_spill] sm:$0xff] }
 0x151   :  { %v2738_v54 = vsel %vm545_vm1, %v1777_v51, %v542_v63  ;;  %v639_v16 = vmul.f32 %v2740_v53, %v2544_v26  ;;  %v335_v51 = vmax.f32 %v307_v8, 1e-24  ;;  %v634_v55 = vmul.f32 %v2712_v23, %v2985_v18  ;;  %v2986_v8 = vld [vmem:[#allocation26_spill] sm:$0xff] }
 0x152   :  { %v637_v56 = vmul.f32 %v2738_v54, %v2556_v10  ;;  %v570_v19 = vmul.f32 0.5, %v569_v29  ;;  %v1675_v10 = vld [vmem:[#allocation7 + $0x8] sm:$0xff]  ;;  %1782 = vrsqrt.f32 %v336_v50  ;;  %vm593_vm8 = vweird.f32 %v336_v50 }
 0x153   :  { %919 = vmatmul.bf16.gmra.mxu1 %v662_v14  ;;  %v559_v14 = vmul.f32 %v1779_v3, %v558_v43  ;;  %1784 = vrsqrt.f32 %v335_v51  ;;  %vm583_vm10 = vweird.f32 %v335_v51  ;;  %v640_v23 = vmul.f32 %v2740_v53, %v2554_v27 }
 0x154   :  { %v669_v25 = vpack.c.bf16 %v639_v16, %v637_v56  ;;  %v571_v12 = vsub.f32 1.5, %v570_v19  ;;  %1068 = vmatpush.bf16.msrb.mxu2 %v1675_v10 }
 0x155   :  { %v560_v15 = vmul.f32 0.5, %v559_v14 }
 0x156   :  { %865 = vmatmul.bf16.vlgmr.msra.gmra.mxu3 %v669_v25  ;;  %v572_v5 = vmul.f32 %v1781_v28, %v571_v12 }
 0x157   :  { %v561_v26 = vsub.f32 1.5, %v560_v15 }
 0x158   :  { %v2746_v30 = vpop.f32.mrf.mxu1  ;;  %v1783_v6 = vpop.eup %1782  ;;  %1069 = vmatpush.bf16.msrb.mxu2 %v1674_v22  ;;  %v2755_v2 = vsel %vm575_vm7, %v1781_v28, %v572_v5 }
 0x159   :  { %v562_v1 = vmul.f32 %v1779_v3, %v561_v26  ;;  %v1785_v40 = vpop.eup %1784  ;;  %v588_v36 = vmul.f32 %v1783_v6, %v336_v50  ;;  %v643_v61 = vmul.f32 %v2755_v2, %v2635_v13  ;;  %vm594_vm9 = vweird.f32 %v1783_v6  ;;  %v2766_v13 = vld [vmem:[%s2924_s2] ss:$0 sm:$0xff] }
 0x15a   :  { %v578_v52 = vmul.f32 %v1785_v40, %v335_v51  ;;  %vm584_vm11 = vweird.f32 %v1785_v40  ;;  %vm595_vm12 = vmor %vm593_vm8, %vm594_vm9  ;;  %v817_v56 = vadd.f32 %v2766_v13, %v816_v24  ;;  %v819_v15 = vadd.f32 %v2766_v13, %v818_v44 }
 0x15b   :  { %v2753_v11 = vsel %vm565_vm6, %v1779_v3, %v562_v1  ;;  %vm585_vm0 = vmor %vm583_vm10, %vm584_vm11  ;;  %v636_v50 = vmul.f32 %v2710_v58, %v2986_v8  ;;  %v822_v26 = vadd.f32 %v2766_v13, %v821_v20  ;;  %v638_v58 = vmul.f32 %v2738_v54, %v2558_v46 }
 0x15c   :  { %v641_v9 = vmul.f32 %v2753_v11, %v2631_v45  ;;  %v579_v34 = vmul.f32 %v1785_v40, %v578_v52  ;;  %v642_v27 = vmul.f32 %v2753_v11, %v2633_v41  ;;  %v644_v46 = vmul.f32 %v2755_v2, %v2639_v48 }
 0x15d   :  { %v668_v24 = vpack.c.bf16 %v636_v50, %v634_v55  ;;  %v839_v18 = vadd.f32 %v2766_v13, %v2708_v39  ;;  %v1696_v50 = vld [vmem:[#allocation10 + $0x74] sm:$0xf]  ;;  %v844_v39 = vadd.f32 %v2766_v13, %v2729_v4  ;;  %v847_v4 = vadd.f32 %v2766_v13, %v2733_v38  ;;  %v1630_v38 = vld [vmem:[#allocation10 + $0x48] sm:$0xf0] }
 0x15e   :  { %v671_v32 = vpack.c.bf16 %v643_v61, %v641_v9  ;;  %v580_v63 = vmul.f32 0.5, %v579_v34  ;;  %v670_v61 = vpack.c.bf16 %v640_v23, %v638_v58 }
 0x160   :  { %v2748_v60 = vpop.f32.mrf.mxu1  ;;  %v581_v3 = vsub.f32 1.5, %v580_v63 }
 0x162   :  { %v582_v28 = vmul.f32 %v1785_v40, %v581_v3 }
 0x163   :  { %924 = vmatmul.bf16.gmra.mxu1 %v664_v62  ;;  %v589_v62 = vmul.f32 %v1783_v6, %v588_v36 }
 0x164   :  { %v2772_v7 = vsel %vm585_vm0, %v1785_v40, %v582_v28 }
 0x165   :  { %v590_v47 = vmul.f32 0.5, %v589_v62  ;;  %v645_v29 = vmul.f32 %v2772_v7, %v2671_v59  ;;  %v646_v41 = vmul.f32 %v2772_v7, %v2673_v37 }
 0x166   :  { %870 = vmatmul.bf16.gmra.mxu3 %v671_v32 }
 0x167   :  { %v591_v49 = vsub.f32 1.5, %v590_v47 }
 0x168   :  { %v2761_v31 = vpop.f32.mrf.mxu1 }
 0x169   :  { %v592_v43 = vmul.f32 %v1783_v6, %v591_v49 }
 0x16b   :  { %v2774_v16 = vsel %vm595_vm12, %v1783_v6, %v592_v43 }
 0x16c   :  { %v647_v25 = vmul.f32 %v2774_v16, %v2667_v33  ;;  %v648_v48 = vmul.f32 %v2774_v16, %v2669_v35 }
 0x16e   :  { %v673_v17 = vpack.c.bf16 %v647_v25, %v645_v29 }
 0x170   :  { %v890_v45 = vpop.f32.mrf.mxu1 }
 0x171   :  { %v891_v14 = vadd.f32 %v890_v45, %v817_v56  ;;  %v672_v45 = vpack.c.bf16 %v644_v46, %v642_v27 }
 0x173   :  { %929 = vmatmul.bf16.gmra.mxu1 %v666_v57  ;;  %1786 = vtanh.f32 %v891_v14  ;;  %v823_v57 = vpop.f32.mrf.mxu0 }
 0x174   :  { %v824_v1 = vadd.f32 %v2766_v13, %v823_v57 }
 0x176   :  { %875 = vmatmul.bf16.gmra.mxu3 %v673_v17 }
 0x178   :  { %v892_v19 = vpop.f32.mrf.mxu1 }
 0x179   :  { %v893_v21 = vadd.f32 %v892_v19, %v819_v15  ;;  %v1787_v51 = vpop.eup %1786  ;;  %v674_v19 = vpack.c.bf16 %v648_v48, %v646_v41  ;;  %v1620_v41 = vld [vmem:[#allocation10 + $0x30] sm:$0xf]  ;;  %v852_v48 = vadd.f32 %v2766_v13, %v2748_v60  ;;  %v1614_v60 = vld [vmem:[#allocation10 + $0x28] sm:$0xf0] }
 0x17b   :  { %1788 = vtanh.f32 %v893_v21  ;;  %v826_v12 = vpop.f32.mrf.mxu0  ;;  %v837_v21 = vadd.f32 %v2766_v13, %v2703_v42 }
 0x17c   :  { %v827_v62 = vadd.f32 %v2766_v13, %v826_v12  ;;  %v1646_v12 = vld [vmem:[#allocation10 + $0x68] sm:$0xf0] }
 0x180   :  { %v895_v59 = vpop.f32.mrf.mxu1 }
 0x181   :  { %v1789_v10 = vpop.eup %1788  ;;  %v896_v22 = vadd.f32 %v895_v59, %v822_v26  ;;  %v842_v59 = vadd.f32 %v2766_v13, %v2716_v0  ;;  %v1694_v26 = vld [vmem:[#allocation10 + $0x64] sm:$0xf] }
 0x182   :  { %v981_v33 = vpack.c.bf16 %v1789_v10, %v1787_v51  ;;  %v1654_v51 = vld [vmem:[#allocation10 + $0x78] sm:$0xf0] }
 0x183   :  { %934 = vmatmul.bf16.gmra.mxu1 %v668_v24  ;;  %1790 = vtanh.f32 %v896_v22  ;;  %v828_v36 = vpop.f32.mrf.mxu0  ;;  %v1657_v42 = vor.u32 %v1696_v50, %v1654_v51  ;;  %v1652_v22 = vld [vmem:[#allocation10 + $0x70] sm:$0xf] }
 0x184   :  { %1070 = vmatmul.bf16.vlgmr.msrb.gmra.mxu2 %v981_v33  ;;  %v829_v32 = vadd.f32 %v2766_v13, %v828_v36  ;;  %v1644_v36 = vld [vmem:[#allocation10 + $0x60] sm:$0xf] }
 0x185   :  { %1351 = vmatpush.bf16.msrb.mxu0 %v1657_v42  ;;  %v1604_v42 = vld [vmem:[#allocation10 + $0x10] sm:$0xf] }
 0x188   :  { %v897_v5 = vpop.f32.mrf.mxu1 }
 0x189   :  { %v898_v6 = vadd.f32 %v897_v5, %v824_v1  ;;  %v1791_v40 = vpop.eup %1790  ;;  %v1649_v1 = vor.u32 %v1694_v26, %v1646_v12  ;;  %v1697_v5 = vld [vmem:[#allocation10 + $0x74] sm:$0xf0]  ;;  %v1596_v12 = vld [vmem:[#allocation10] sm:$0xf] }
 0x18b   :  { %1792 = vtanh.f32 %v898_v6  ;;  %v831_v49 = vpop.f32.mrf.mxu0  ;;  %v1653_v6 = vor.u32 %v1697_v5, %v1652_v22  ;;  %1352 = vmatpush.bf16.msrb.mxu0 %v1649_v1  ;;  %v1683_v22 = vld [vmem:[#allocation10 + $0x4] sm:$0xf0] }
 0x18c   :  { %v832_v28 = vadd.f32 %v2766_v13, %v831_v49  ;;  %v849_v49 = vadd.f32 %v2766_v13, %v2746_v30  ;;  %v1688_v30 = vld [vmem:[#allocation10 + $0x34] sm:$0xf]  ;;  %v1597_v5 = vor.u32 %v1683_v22, %v1596_v12 }
 0x18d   :  { %1277 = vmatpush.bf16.msrb.mxu3 %v1653_v6 }
 0x190   :  { %v900_v9 = vpop.f32.mrf.mxu1 }
 0x191   :  { %v1793_v52 = vpop.eup %1792  ;;  %v901_v34 = vadd.f32 %v900_v9, %v827_v62  ;;  %v1695_v9 = vld [vmem:[#allocation10 + $0x64] sm:$0xf0]  ;;  %v1636_v62 = vld [vmem:[#allocation10 + $0x50] sm:$0xf] }
 0x192   :  { %v982_v44 = vpack.c.bf16 %v1793_v52, %v1791_v40  ;;  %v1692_v52 = vld [vmem:[#allocation10 + $0x54] sm:$0xf] }
 0x193   :  { %939 = vmatmul.bf16.gmra.mxu1 %v670_v61  ;;  %1794 = vtanh.f32 %v901_v34  ;;  %v833_v43 = vpop.f32.mrf.mxu0  ;;  %v1645_v61 = vor.u32 %v1695_v9, %v1644_v36  ;;  %v1693_v34 = vld [vmem:[#allocation10 + $0x54] sm:$0xf0]  ;;  %v1598_v36 = vld [vmem:[#allocation10 + $0x8] sm:$0xf0] }
 0x194   :  { %1075 = vmatmul.bf16.gmra.mxu2 %v982_v44  ;;  %v834_v14 = vadd.f32 %v2766_v13, %v833_v43  ;;  %v1638_v44 = vld [vmem:[#allocation10 + $0x58] sm:$0xf0] }
 0x195   :  { %1278 = vmatpush.bf16.msrb.mxu3 %v1645_v61 }
 0x198   :  { %v902_v47 = vpop.f32.mrf.mxu1 }
 0x199   :  { %v903_v63 = vadd.f32 %v902_v47, %v829_v32  ;;  %v1795_v54 = vpop.eup %1794  ;;  %v1641_v32 = vor.u32 %v1692_v52, %v1638_v44 }
 0x19b   :  { %1796 = vtanh.f32 %v903_v63  ;;  %v1637_v63 = vor.u32 %v1693_v34, %v1636_v62  ;;  %1353 = vmatpush.bf16.msrb.mxu0 %v1641_v32 }
 0x19d   :  { %1279 = vmatpush.bf16.msrb.mxu3 %v1637_v63 }
 0x1a0   :  { %v905_v53 = vpop.f32.mrf.mxu1 }
 0x1a1   :  { %v1797_v3 = vpop.eup %1796  ;;  %v906_v56 = vadd.f32 %v905_v53, %v832_v28  ;;  %v1628_v53 = vld [vmem:[#allocation10 + $0x40] sm:$0xf] }
 0x1a2   :  { %v983_v20 = vpack.c.bf16 %v1797_v3, %v1795_v54  ;;  %v1690_v54 = vld [vmem:[#allocation10 + $0x44] sm:$0xf] }
 0x1a3   :  { %944 = vmatmul.bf16.gmra.mxu1 %v672_v45  ;;  %1798 = vtanh.f32 %v906_v56  ;;  %v1633_v3 = vor.u32 %v1690_v54, %v1630_v38  ;;  %v1691_v45 = vld [vmem:[#allocation10 + $0x44] sm:$0xf0] }
 0x1a4   :  { %1080 = vmatmul.bf16.gmra.mxu2 %v983_v20  ;;  %v1629_v20 = vor.u32 %v1691_v45, %v1628_v53 }
 0x1a5   :  { %1354 = vmatpush.bf16.msrb.mxu0 %v1633_v3 }
 0x1a6   :  { %1280 = vmatpush.bf16.msrb.mxu3 %v1629_v20 }
 0x1a8   :  { %v907_v29 = vpop.f32.mrf.mxu1 }
 0x1a9   :  { %v908_v25 = vadd.f32 %v907_v29, %v834_v14  ;;  %v1799_v11 = vpop.eup %1798  ;;  %v856_v14 = vpop.f32.mrf.mxu2 }
 0x1ab   :  { %1800 = vtanh.f32 %v908_v25  ;;  %v1622_v25 = vld [vmem:[#allocation10 + $0x38] sm:$0xf0] }
 0x1b0   :  { %v910_v2 = vpop.f32.mrf.mxu1 }
 0x1b1   :  { %v1801_v15 = vpop.eup %1800  ;;  %v911_v57 = vadd.f32 %v910_v2, %v837_v21  ;;  %v1689_v2 = vld [vmem:[#allocation10 + $0x34] sm:$0xf0] }
 0x1b2   :  { %v984_v17 = vpack.c.bf16 %v1801_v15, %v1799_v11  ;;  %v1625_v11 = vor.u32 %v1688_v30, %v1622_v25  ;;  %v1621_v15 = vor.u32 %v1689_v2, %v1620_v41 }
 0x1b3   :  { %949 = vmatmul.bf16.gmra.mxu1 %v674_v19  ;;  %1802 = vtanh.f32 %v911_v57 }
 0x1b4   :  { %1085 = vmatmul.bf16.gmra.mxu2 %v984_v17  ;;  %1355 = vmatpush.bf16.msrb.mxu0 %v1625_v11  ;;  %v854_v17 = vadd.f32 %v2766_v13, %v2761_v31  ;;  %v1685_v31 = vld [vmem:[#allocation10 + $0x14] sm:$0xf0] }
 0x1b5   :  { %1281 = vmatpush.bf16.msrb.mxu3 %v1621_v15 }
 0x1b8   :  { %v912_v55 = vpop.f32.mrf.mxu1 }
 0x1b9   :  { %v913_v8 = vadd.f32 %v912_v55, %v839_v18  ;;  %v1803_v37 = vpop.eup %1802  ;;  %v858_v18 = vpop.f32.mrf.mxu2  ;;  %v1612_v55 = vld [vmem:[#allocation10 + $0x20] sm:$0xf] }
 0x1bb   :  { %1804 = vtanh.f32 %v913_v8  ;;  %v1687_v8 = vld [vmem:[#allocation10 + $0x24] sm:$0xf0] }
 0x1c0   :  { %v915_v35 = vpop.f32.mrf.mxu1 }
 0x1c1   :  { %v1805_v7 = vpop.eup %1804  ;;  %v916_v10 = vadd.f32 %v915_v35, %v842_v59  ;;  %v1613_v35 = vor.u32 %v1687_v8, %v1612_v55 }
 0x1c2   :  { %v985_v16 = vpack.c.bf16 %v1805_v7, %v1803_v37  ;;  %v1686_v37 = vld [vmem:[#allocation10 + $0x24] sm:$0xf] }
 0x1c3   :  { %1806 = vtanh.f32 %v916_v10  ;;  %v1617_v7 = vor.u32 %v1686_v37, %v1614_v60  ;;  %1282 = vmatpush.bf16.msrb.mxu3 %v1613_v35  ;;  %v1605_v10 = vor.u32 %v1685_v31, %v1604_v42 }
 0x1c4   :  { %1090 = vmatmul.bf16.gmra.mxu2 %v985_v16 }
 0x1c5   :  { %1356 = vmatpush.bf16.msrb.mxu0 %v1617_v7 }
 0x1c6   :  { %v861_v1 = vpop.f32.mrf.mxu2 }
 0x1c7   :  { %1283 = vmatpush.bf16.msrb.mxu3 %v1605_v10  ;;  %v862_v32 = vadd.f32 %v2766_v13, %v861_v1 }
 0x1c8   :  { %v917_v24 = vpop.f32.mrf.mxu1 }
 0x1c9   :  { %v918_v33 = vadd.f32 %v917_v24, %v844_v39  ;;  %v1807_v0 = vpop.eup %1806  ;;  %v1684_v39 = vld [vmem:[#allocation10 + $0x14] sm:$0xf]  ;;  %v1606_v24 = vld [vmem:[#allocation10 + $0x18] sm:$0xf0] }
 0x1ca   :  { %v1609_v26 = vor.u32 %v1684_v39, %v1606_v24 }
 0x1cb   :  { %1808 = vtanh.f32 %v918_v33  ;;  %v857_v33 = vadd.f32 %v2766_v13, %v856_v14  ;;  %1284 = vmatpush.bf16.msrb.mxu3 %v1597_v5 }
 0x1cc   :  { %1357 = vmatpush.bf16.msrb.mxu0 %v1609_v26 }
 0x1ce   :  { %v863_v52 = vpop.f32.mrf.mxu2 }
 0x1cf   :  { %v864_v63 = vadd.f32 %v2766_v13, %v863_v52 }
 0x1d0   :  { %v920_v58 = vpop.f32.mrf.mxu1 }
 0x1d1   :  { %v1809_v23 = vpop.eup %1808  ;;  %v921_v47 = vadd.f32 %v920_v58, %v847_v4 }
 0x1d2   :  { %v986_v40 = vpack.c.bf16 %v1809_v23, %v1807_v0  ;;  %v859_v0 = vadd.f32 %v2766_v13, %v858_v18 }
 0x1d3   :  { %1810 = vtanh.f32 %v921_v47 }
 0x1d4   :  { %1095 = vmatmul.bf16.gmra.mxu2 %v986_v40  ;;  %v1682_v40 = vld [vmem:[#allocation10 + $0x4] sm:$0xf] }
 0x1d5   :  { %v1601_v9 = vor.u32 %v1682_v40, %v1598_v36 }
 0x1d7   :  { %1358 = vmatpush.bf16.msrb.mxu0 %v1601_v9 }
 0x1d8   :  { %v922_v27 = vpop.f32.mrf.mxu1 }
 0x1d9   :  { %v923_v46 = vadd.f32 %v922_v27, %v849_v49  ;;  %v1811_v28 = vpop.eup %1810  ;;  %v866_v62 = vpop.f32.mrf.mxu3 }
 0x1da   :  { %v867_v14 = vadd.f32 %v2766_v13, %v866_v62 }
 0x1db   :  { %1812 = vtanh.f32 %v923_v46  ;;  %v2823_v46 = vld [vmem:[#allocation8] ss:$0 sm:$0xff] }
 0x1e0   :  { %v925_v43 = vpop.f32.mrf.mxu1 }
 0x1e1   :  { %v1813_v56 = vpop.eup %1812  ;;  %v926_v19 = vadd.f32 %v925_v43, %v852_v48  ;;  %v868_v38 = vpop.f32.mrf.mxu3 }
 0x1e2   :  { %v987_v29 = vpack.c.bf16 %v1813_v56, %v1811_v28  ;;  %v869_v41 = vadd.f32 %v2766_v13, %v868_v38 }
 0x1e3   :  { %1814 = vtanh.f32 %v926_v19 }
 0x1e4   :  { %1100 = vmatmul.bf16.gmra.mxu2 %v987_v29 }
 0x1e8   :  { %v927_v21 = vpop.f32.mrf.mxu1 }
 0x1e9   :  { %v928_v57 = vadd.f32 %v927_v21, %v854_v17  ;;  %v1815_v16 = vpop.eup %1814  ;;  %v871_v29 = vpop.f32.mrf.mxu3 }
 0x1ea   :  { %v872_v60 = vadd.f32 %v2766_v13, %v871_v29 }
 0x1eb   :  { %1816 = vtanh.f32 %v928_v57 }
 0x1f0   :  { %v930_v50 = vpop.f32.mrf.mxu1 }
 0x1f1   :  { %v1817_v51 = vpop.eup %1816  ;;  %v931_v6 = vadd.f32 %v930_v50, %v857_v33  ;;  %v873_v18 = vpop.f32.mrf.mxu3 }
 0x1f2   :  { %v988_v59 = vpack.c.bf16 %v1817_v51, %v1815_v16  ;;  %v874_v50 = vadd.f32 %v2766_v13, %v873_v18 }
 0x1f3   :  { %1818 = vtanh.f32 %v931_v6 }
 0x1f4   :  { %1105 = vmatmul.bf16.gmra.mxu2 %v988_v59 }
 0x1f8   :  { %v932_v58 = vpop.f32.mrf.mxu1 }
 0x1f9   :  { %v933_v23 = vadd.f32 %v932_v58, %v859_v0  ;;  %v1819_v4 = vpop.eup %1818  ;;  %v876_v39 = vpop.f32.mrf.mxu3 }
 0x1fa   :  { %v877_v6 = vadd.f32 %v2766_v13, %v876_v39 }
 0x1fb   :  { %1820 = vtanh.f32 %v933_v23 }
 0x200   :  { %v935_v61 = vpop.f32.mrf.mxu1 }
 0x201   :  { %v1821_v44 = vpop.eup %1820  ;;  %v936_v47 = vadd.f32 %v935_v61, %v862_v32  ;;  %v878_v0 = vpop.f32.mrf.mxu3 }
 0x202   :  { %v989_v34 = vpack.c.bf16 %v1821_v44, %v1819_v4  ;;  %v879_v40 = vadd.f32 %v2766_v13, %v878_v0 }
 0x203   :  { %1822 = vtanh.f32 %v936_v47 }
 0x204   :  { %1110 = vmatmul.bf16.gmra.mxu2 %v989_v34 }
 0x207   :  { %v1071_v49 = vpop.f32.mrf.mxu2 }
 0x208   :  { %v937_v27 = vpop.f32.mrf.mxu1  ;;  %v1072_v53 = vadd.f32 %v2823_v46, %v1071_v49 }
 0x209   :  { %v938_v54 = vadd.f32 %v937_v27, %v864_v63  ;;  %v1823_v45 = vpop.eup %1822 }
 0x20b   :  { %1824 = vtanh.f32 %v938_v54 }
 0x20c   :  { %1826 = vtanh.f32 %v1072_v53 }
 0x20f   :  { %v1073_v3 = vpop.f32.mrf.mxu2 }
 0x210   :  { %v1074_v20 = vadd.f32 %v2823_v46, %v1073_v3  ;;  %v940_v28 = vpop.f32.mrf.mxu1 }
 0x211   :  { %v1825_v43 = vpop.eup %1824  ;;  %v941_v30 = vadd.f32 %v940_v28, %v867_v14 }
 0x212   :  { %1828 = vtanh.f32 %v1074_v20  ;;  %v990_v56 = vpack.c.bf16 %v1825_v43, %v1823_v45  ;;  %v1827_v25 = vpop.eup %1826 }
 0x213   :  { %1830 = vtanh.f32 %v941_v30 }
 0x214   :  { %1115 = vmatmul.bf16.gmra.mxu2 %v990_v56 }
 0x217   :  { %v1076_v48 = vpop.f32.mrf.mxu2 }
 0x218   :  { %v1829_v11 = vpop.eup %1828  ;;  %v942_v2 = vpop.f32.mrf.mxu1  ;;  %v1077_v17 = vadd.f32 %v2823_v46, %v1076_v48 }
 0x219   :  { %v943_v15 = vadd.f32 %v942_v2, %v869_v41  ;;  %v1162_v19 = vpack.c.bf16 %v1829_v11, %v1827_v25  ;;  %v1831_v57 = vpop.eup %1830 }
 0x21b   :  { %1832 = vtanh.f32 %v943_v15  ;;  %1285 = vmatmul.bf16.vlgmr.msrb.gmra.mxu3 %v1162_v19  ;;  %1359 = vmatmul.bf16.vlgmr.msrb.gmra.mxu0 %v1162_v19 }
 0x21c   :  { %1834 = vtanh.f32 %v1077_v17 }
 0x21f   :  { %v1078_v21 = vpop.f32.mrf.mxu2 }
 0x220   :  { %v1079_v55 = vadd.f32 %v2823_v46, %v1078_v21  ;;  %v945_v8 = vpop.f32.mrf.mxu1 }
 0x221   :  { %v1833_v37 = vpop.eup %1832  ;;  %v946_v7 = vadd.f32 %v945_v8, %v872_v60 }
 0x222   :  { %1836 = vtanh.f32 %v1079_v55  ;;  %v991_v35 = vpack.c.bf16 %v1833_v37, %v1831_v57  ;;  %v1835_v16 = vpop.eup %1834 }
 0x223   :  { %1838 = vtanh.f32 %v946_v7 }
 0x224   :  { %1120 = vmatmul.bf16.gmra.mxu2 %v991_v35 }
 0x227   :  { %v1081_v51 = vpop.f32.mrf.mxu2 }
 0x228   :  { %v1837_v59 = vpop.eup %1836  ;;  %v947_v42 = vpop.f32.mrf.mxu1  ;;  %v1082_v24 = vadd.f32 %v2823_v46, %v1081_v51 }
 0x229   :  { %v948_v31 = vadd.f32 %v947_v42, %v874_v50  ;;  %v1163_v10 = vpack.c.bf16 %v1837_v59, %v1835_v16  ;;  %v1839_v26 = vpop.eup %1838 }
 0x22b   :  { %1840 = vtanh.f32 %v948_v31  ;;  %1290 = vmatmul.bf16.gmra.mxu3 %v1163_v10  ;;  %1364 = vmatmul.bf16.gmra.mxu0 %v1163_v10  ;;  %v1191_v10 = vld [vmem:[%s2928_s6] sm:$0x3]  ;;  %s2051_s6 = smov [#allocation11]  }
 0x22c   :  { %1842 = vtanh.f32 %v1082_v24  ;;  %s1481_s28 = sshll.u32 %s2051_s6, 4  ;;  %s1482_s28 = int_to_ptr.vmem [resolvable:$true] %s1481_s28 }
 0x22f   :  { %v1083_v33 = vpop.f32.mrf.mxu2 }
 0x230   :  { %v1084_v12 = vadd.f32 %v2823_v46, %v1083_v33  ;;  %v950_v22 = vpop.f32.mrf.mxu1  ;;  %v2852_v33 = vperm.slane %v1191_v10, 1 }
 0x231   :  { %v1841_v1 = vpop.eup %1840  ;;  %v951_v58 = vadd.f32 %v950_v22, %v877_v6 }
 0x232   :  { %1844 = vtanh.f32 %v1084_v12  ;;  %v992_v5 = vpack.c.bf16 %v1841_v1, %v1839_v26  ;;  %v1843_v23 = vpop.eup %1842  ;;  %v2854_v26 = vperm.slane %v1191_v10, 0 }
 0x233   :  { %1846 = vtanh.f32 %v951_v58 }
 0x234   :  { %1125 = vmatmul.bf16.gmra.mxu2 %v992_v5 }
 0x237   :  { %v1086_v36 = vpop.f32.mrf.mxu2 }
 0x238   :  { %v1845_v9 = vpop.eup %1844  ;;  %v952_v52 = vpop.f32.mrf.mxu1  ;;  %v1087_v44 = vadd.f32 %v2823_v46, %v1086_v36 }
 0x239   :  { %v953_v4 = vadd.f32 %v952_v52, %v879_v40  ;;  %v1164_v61 = vpack.c.bf16 %v1845_v9, %v1843_v23  ;;  %v1847_v34 = vpop.eup %1846 }
 0x23b   :  { %1848 = vtanh.f32 %v953_v4  ;;  %1295 = vmatmul.bf16.gmra.mxu3 %v1164_v61  ;;  %1369 = vmatmul.bf16.gmra.mxu0 %v1164_v61 }
 0x23c   :  { %1850 = vtanh.f32 %v1087_v44 }
 0x23f   :  { %v1088_v62 = vpop.f32.mrf.mxu2 }
 0x240   :  { %v1089_v32 = vadd.f32 %v2823_v46, %v1088_v62 }
 0x241   :  { %v1849_v47 = vpop.eup %1848 }
 0x242   :  { %1852 = vtanh.f32 %v1089_v32  ;;  %v993_v63 = vpack.c.bf16 %v1849_v47, %v1847_v34  ;;  %v1851_v13 = vpop.eup %1850 }
 0x244   :  { %1130 = vmatmul.bf16.gmra.mxu2 %v993_v63 }
 0x247   :  { %v1091_v49 = vpop.f32.mrf.mxu2 }
 0x248   :  { %v1853_v27 = vpop.eup %1852  ;;  %v1092_v38 = vadd.f32 %v2823_v46, %v1091_v49 }
 0x249   :  { %v1165_v54 = vpack.c.bf16 %v1853_v27, %v1851_v13 }
 0x24a   :  { %1854 = vtanh.f32 %v1092_v38 }
 0x24b   :  { %1300 = vmatmul.bf16.gmra.mxu3 %v1165_v54  ;;  %1374 = vmatmul.bf16.gmra.mxu0 %v1165_v54 }
 0x24f   :  { %v1093_v53 = vpop.f32.mrf.mxu2 }
 0x250   :  { %v1094_v3 = vadd.f32 %v2823_v46, %v1093_v53  ;;  %v1855_v45 = vpop.eup %1854 }
 0x252   :  { %1856 = vtanh.f32 %v1094_v3 }
 0x257   :  { %v1096_v20 = vpop.f32.mrf.mxu2 }
 0x258   :  { %v1857_v28 = vpop.eup %1856  ;;  %v1097_v56 = vadd.f32 %v2823_v46, %v1096_v20 }
 0x259   :  { %v1166_v43 = vpack.c.bf16 %v1857_v28, %v1855_v45 }
 0x25a   :  { %1858 = vtanh.f32 %v1097_v56 }
 0x25b   :  { %1305 = vmatmul.bf16.gmra.mxu3 %v1166_v43  ;;  %1379 = vmatmul.bf16.gmra.mxu0 %v1166_v43 }
 0x25f   :  { %v1098_v14 = vpop.f32.mrf.mxu2 }
 0x260   :  { %v1099_v29 = vadd.f32 %v2823_v46, %v1098_v14  ;;  %v1859_v30 = vpop.eup %1858 }
 0x262   :  { %1860 = vtanh.f32 %v1099_v29 }
 0x267   :  { %v1101_v25 = vpop.f32.mrf.mxu2 }
 0x268   :  { %v1861_v41 = vpop.eup %1860  ;;  %v1102_v11 = vadd.f32 %v2823_v46, %v1101_v25 }
 0x269   :  { %v1167_v48 = vpack.c.bf16 %v1861_v41, %v1859_v30 }
 0x26a   :  { %1862 = vtanh.f32 %v1102_v11 }
 0x26b   :  { %1310 = vmatmul.bf16.gmra.mxu3 %v1167_v48  ;;  %1384 = vmatmul.bf16.gmra.mxu0 %v1167_v48 }
 0x26f   :  { %v1103_v2 = vpop.f32.mrf.mxu2 }
 0x270   :  { %v1104_v15 = vadd.f32 %v2823_v46, %v1103_v2  ;;  %v1863_v19 = vpop.eup %1862 }
 0x272   :  { %1864 = vtanh.f32 %v1104_v15 }
 0x277   :  { %v1106_v17 = vpop.f32.mrf.mxu2 }
 0x278   :  { %v1865_v21 = vpop.eup %1864  ;;  %v1107_v18 = vadd.f32 %v2823_v46, %v1106_v17 }
 0x279   :  { %v1168_v57 = vpack.c.bf16 %v1865_v21, %v1863_v19 }
 0x27a   :  { %1866 = vtanh.f32 %v1107_v18 }
 0x27b   :  { %1315 = vmatmul.bf16.gmra.mxu3 %v1168_v57  ;;  %1389 = vmatmul.bf16.gmra.mxu0 %v1168_v57 }
 0x27f   :  { %v1108_v55 = vpop.f32.mrf.mxu2 }
 0x280   :  { %v1109_v8 = vadd.f32 %v2823_v46, %v1108_v55  ;;  %v1867_v37 = vpop.eup %1866 }
 0x282   :  { %1868 = vtanh.f32 %v1109_v8 }
 0x287   :  { %v1111_v35 = vpop.f32.mrf.mxu2 }
 0x288   :  { %v1869_v60 = vpop.eup %1868  ;;  %v1112_v16 = vadd.f32 %v2823_v46, %v1111_v35 }
 0x289   :  { %v1169_v7 = vpack.c.bf16 %v1869_v60, %v1867_v37 }
 0x28a   :  { %1870 = vtanh.f32 %v1112_v16 }
 0x28b   :  { %1320 = vmatmul.bf16.gmra.mxu3 %v1169_v7  ;;  %1394 = vmatmul.bf16.gmra.mxu0 %v1169_v7 }
 0x28f   :  { %v1113_v50 = vpop.f32.mrf.mxu2 }
 0x290   :  { %v1114_v51 = vadd.f32 %v2823_v46, %v1113_v50  ;;  %v1871_v59 = vpop.eup %1870 }
 0x292   :  { %1872 = vtanh.f32 %v1114_v51 }
 0x297   :  { %v1116_v42 = vpop.f32.mrf.mxu2 }
 0x298   :  { %v1873_v31 = vpop.eup %1872  ;;  %v1360_v39 = vpop.f32.mrf.mxu0  ;;  %v1117_v12 = vadd.f32 %v2823_v46, %v1116_v42 }
 0x299   :  { %v1170_v24 = vpack.c.bf16 %v1873_v31, %v1871_v59  ;;  %v1361_v1 = vadd.f32 %v1360_v39, %v2852_v33 }
 0x29a   :  { %1874 = vtanh.f32 %v1117_v12 }
 0x29b   :  { %1325 = vmatmul.bf16.gmra.mxu3 %v1170_v24  ;;  %1399 = vmatmul.bf16.gmra.mxu0 %v1170_v24 }
 0x29e   :  { %v1286_v22 = vpop.f32.mrf.mxu3 }
 0x29f   :  { %v1287_v5 = vadd.f32 %v1286_v22, %v2854_v26  ;;  %v1118_v6 = vpop.f32.mrf.mxu2 }
 0x2a0   :  { %v1119_v0 = vadd.f32 %v2823_v46, %v1118_v6  ;;  %v1362_v58 = vpop.f32.mrf.mxu0  ;;  %v1875_v36 = vpop.eup %1874 }
 0x2a1   :  { %v1425_v23 = vpack.c.bf16 %v1361_v1, %v1287_v5  ;;  %v1363_v9 = vadd.f32 %v1362_v58, %v2852_v33 }
 0x2a2   :  { %1876 = vtanh.f32 %v1119_v0 }
 0x2a3   :  { %1451 = vst [vmem:[#allocation11] sm:$0xff] %v1425_v23 }
 0x2a6   :  { %v1288_v40 = vpop.f32.mrf.mxu3 }
 0x2a7   :  { %v1289_v52 = vadd.f32 %v1288_v40, %v2854_v26  ;;  %v1121_v4 = vpop.f32.mrf.mxu2 }
 0x2a8   :  { %v1877_v61 = vpop.eup %1876  ;;  %v1365_v44 = vpop.f32.mrf.mxu0  ;;  %v1122_v32 = vadd.f32 %v2823_v46, %v1121_v4 }
 0x2a9   :  { %v1426_v62 = vpack.c.bf16 %v1363_v9, %v1289_v52  ;;  %v1171_v34 = vpack.c.bf16 %v1877_v61, %v1875_v36  ;;  %v1366_v63 = vadd.f32 %v1365_v44, %v2852_v33 }
 0x2aa   :  { %1878 = vtanh.f32 %v1122_v32 }
 0x2ab   :  { %1452 = vst [vmem:[#allocation11 + $0x8] sm:$0xff] %v1426_v62  ;;  %1330 = vmatmul.bf16.gmra.mxu3 %v1171_v34  ;;  %1404 = vmatmul.bf16.gmra.mxu0 %v1171_v34 }
 0x2ae   :  { %v1291_v47 = vpop.f32.mrf.mxu3 }
 0x2af   :  { %v1292_v13 = vadd.f32 %v1291_v47, %v2854_v26  ;;  %v1123_v49 = vpop.f32.mrf.mxu2 }
 0x2b0   :  { %v1124_v27 = vadd.f32 %v2823_v46, %v1123_v49  ;;  %v1367_v54 = vpop.f32.mrf.mxu0  ;;  %v1879_v3 = vpop.eup %1878 }
 0x2b1   :  { %v1427_v38 = vpack.c.bf16 %v1366_v63, %v1292_v13  ;;  %v1368_v45 = vadd.f32 %v1367_v54, %v2852_v33 }
 0x2b2   :  { %1880 = vtanh.f32 %v1124_v27 }
 0x2b3   :  { %1453 = vst [vmem:[#allocation11 + $0x10] sm:$0xff] %v1427_v38 }
 0x2b6   :  { %v1293_v53 = vpop.f32.mrf.mxu3 }
 0x2b7   :  { %v1294_v20 = vadd.f32 %v1293_v53, %v2854_v26  ;;  %v1126_v28 = vpop.f32.mrf.mxu2 }
 0x2b8   :  { %v1881_v43 = vpop.eup %1880  ;;  %v1370_v56 = vpop.f32.mrf.mxu0  ;;  %v1127_v30 = vadd.f32 %v2823_v46, %v1126_v28 }
 0x2b9   :  { %v1428_v14 = vpack.c.bf16 %v1368_v45, %v1294_v20  ;;  %v1172_v29 = vpack.c.bf16 %v1881_v43, %v1879_v3  ;;  %v1371_v41 = vadd.f32 %v1370_v56, %v2852_v33 }
 0x2ba   :  { %1882 = vtanh.f32 %v1127_v30 }
 0x2bb   :  { %1454 = vst [vmem:[#allocation11 + $0x18] sm:$0xff] %v1428_v14  ;;  %1335 = vmatmul.bf16.gmra.mxu3 %v1172_v29  ;;  %1409 = vmatmul.bf16.gmra.mxu0 %v1172_v29 }
 0x2be   :  { %v1296_v25 = vpop.f32.mrf.mxu3 }
 0x2bf   :  { %v1297_v48 = vadd.f32 %v1296_v25, %v2854_v26  ;;  %v1128_v11 = vpop.f32.mrf.mxu2 }
 0x2c0   :  { %v1129_v2 = vadd.f32 %v2823_v46, %v1128_v11  ;;  %v1372_v15 = vpop.f32.mrf.mxu0  ;;  %v1883_v21 = vpop.eup %1882 }
 0x2c1   :  { %v1429_v19 = vpack.c.bf16 %v1371_v41, %v1297_v48  ;;  %v1373_v57 = vadd.f32 %v1372_v15, %v2852_v33 }
 0x2c2   :  { %1884 = vtanh.f32 %v1129_v2 }
 0x2c3   :  { %1455 = vst [vmem:[#allocation11 + $0x20] sm:$0xff] %v1429_v19 }
 0x2c6   :  { %v1298_v17 = vpop.f32.mrf.mxu3 }
 0x2c7   :  { %v1299_v18 = vadd.f32 %v1298_v17, %v2854_v26  ;;  %v1131_v55 = vpop.f32.mrf.mxu2 }
 0x2c8   :  { %v1885_v8 = vpop.eup %1884  ;;  %v1375_v37 = vpop.f32.mrf.mxu0  ;;  %v1132_v7 = vadd.f32 %v2823_v46, %v1131_v55 }
 0x2c9   :  { %v1430_v35 = vpack.c.bf16 %v1373_v57, %v1299_v18  ;;  %v1173_v60 = vpack.c.bf16 %v1885_v8, %v1883_v21  ;;  %v1376_v50 = vadd.f32 %v1375_v37, %v2852_v33 }
 0x2ca   :  { %1886 = vtanh.f32 %v1132_v7 }
 0x2cb   :  { %1456 = vst [vmem:[#allocation11 + $0x28] sm:$0xff] %v1430_v35  ;;  %1340 = vmatmul.bf16.gmra.mxu3 %v1173_v60  ;;  %1414 = vmatmul.bf16.gmra.mxu0 %v1173_v60 }
 0x2ce   :  { %v1301_v16 = vpop.f32.mrf.mxu3 }
 0x2cf   :  { %v1302_v51 = vadd.f32 %v1301_v16, %v2854_v26  ;;  %v1133_v59 = vpop.f32.mrf.mxu2 }
 0x2d0   :  { %v1134_v42 = vadd.f32 %v2823_v46, %v1133_v59  ;;  %v1377_v31 = vpop.f32.mrf.mxu0  ;;  %v1887_v24 = vpop.eup %1886 }
 0x2d1   :  { %v1431_v10 = vpack.c.bf16 %v1376_v50, %v1302_v51  ;;  %v1378_v12 = vadd.f32 %v1377_v31, %v2852_v33 }
 0x2d2   :  { %1888 = vtanh.f32 %v1134_v42 }
 0x2d3   :  { %1457 = vst [vmem:[#allocation11 + $0x30] sm:$0xff] %v1431_v10 }
 0x2d6   :  { %v1303_v39 = vpop.f32.mrf.mxu3 }
 0x2d7   :  { %v1304_v22 = vadd.f32 %v1303_v39, %v2854_v26 }
 0x2d8   :  { %v1889_v1 = vpop.eup %1888  ;;  %v1380_v5 = vpop.f32.mrf.mxu0 }
 0x2d9   :  { %v1432_v6 = vpack.c.bf16 %v1378_v12, %v1304_v22  ;;  %v1174_v0 = vpack.c.bf16 %v1889_v1, %v1887_v24  ;;  %v1381_v46 = vadd.f32 %v1380_v5, %v2852_v33 }
 0x2db   :  { %1458 = vst [vmem:[#allocation11 + $0x38] sm:$0xff] %v1432_v6  ;;  %1345 = vmatmul.bf16.gmra.mxu3 %v1174_v0  ;;  %1419 = vmatmul.bf16.gmra.mxu0 %v1174_v0 }
 0x2de   :  { %v1306_v58 = vpop.f32.mrf.mxu3 }
 0x2df   :  { %v1307_v23 = vadd.f32 %v1306_v58, %v2854_v26 }
 0x2e0   :  { %v1382_v40 = vpop.f32.mrf.mxu0 }
 0x2e1   :  { %v1433_v36 = vpack.c.bf16 %v1381_v46, %v1307_v23  ;;  %v1383_v52 = vadd.f32 %v1382_v40, %v2852_v33 }
 0x2e3   :  { %1459 = vst [vmem:[#allocation11 + $0x40] sm:$0xff] %v1433_v36 }
 0x2e6   :  { %v1308_v9 = vpop.f32.mrf.mxu3 }
 0x2e7   :  { %v1309_v4 = vadd.f32 %v1308_v9, %v2854_v26 }
 0x2e8   :  { %v1385_v61 = vpop.f32.mrf.mxu0 }
 0x2e9   :  { %v1434_v44 = vpack.c.bf16 %v1383_v52, %v1309_v4  ;;  %v1386_v34 = vadd.f32 %v1385_v61, %v2852_v33 }
 0x2eb   :  { %1460 = vst [vmem:[#allocation11 + $0x48] sm:$0xff] %v1434_v44 }
 0x2ee   :  { %v1311_v62 = vpop.f32.mrf.mxu3 }
 0x2ef   :  { %v1312_v32 = vadd.f32 %v1311_v62, %v2854_v26 }
 0x2f0   :  { %v1387_v47 = vpop.f32.mrf.mxu0 }
 0x2f1   :  { %v1435_v63 = vpack.c.bf16 %v1386_v34, %v1312_v32  ;;  %v1388_v49 = vadd.f32 %v1387_v47, %v2852_v33 }
 0x2f3   :  { %1461 = vst [vmem:[#allocation11 + $0x50] sm:$0xff] %v1435_v63 }
 0x2f6   :  { %v1313_v13 = vpop.f32.mrf.mxu3 }
 0x2f7   :  { %v1314_v27 = vadd.f32 %v1313_v13, %v2854_v26 }
 0x2f8   :  { %v1390_v54 = vpop.f32.mrf.mxu0 }
 0x2f9   :  { %v1436_v38 = vpack.c.bf16 %v1388_v49, %v1314_v27  ;;  %v1391_v3 = vadd.f32 %v1390_v54, %v2852_v33 }
 0x2fb   :  { %1462 = vst [vmem:[#allocation11 + $0x58] sm:$0xff] %v1436_v38 }
 0x2fe   :  { %v1316_v53 = vpop.f32.mrf.mxu3 }
 0x2ff   :  { %v1317_v45 = vadd.f32 %v1316_v53, %v2854_v26 }
 0x300   :  { %v1392_v20 = vpop.f32.mrf.mxu0 }
 0x301   :  { %v1437_v28 = vpack.c.bf16 %v1391_v3, %v1317_v45  ;;  %v1393_v56 = vadd.f32 %v1392_v20, %v2852_v33 }
 0x303   :  { %1463 = vst [vmem:[#allocation11 + $0x60] sm:$0xff] %v1437_v28 }
 0x306   :  { %v1318_v43 = vpop.f32.mrf.mxu3 }
 0x307   :  { %v1319_v14 = vadd.f32 %v1318_v43, %v2854_v26 }
 0x308   :  { %v1395_v29 = vpop.f32.mrf.mxu0 }
 0x309   :  { %v1438_v30 = vpack.c.bf16 %v1393_v56, %v1319_v14  ;;  %v1396_v41 = vadd.f32 %v1395_v29, %v2852_v33 }
 0x30b   :  { %1464 = vst [vmem:[#allocation11 + $0x68] sm:$0xff] %v1438_v30 }
 0x30e   :  { %v1321_v25 = vpop.f32.mrf.mxu3 }
 0x30f   :  { %v1322_v48 = vadd.f32 %v1321_v25, %v2854_v26 }
 0x310   :  { %v1397_v11 = vpop.f32.mrf.mxu0 }
 0x311   :  { %v1439_v2 = vpack.c.bf16 %v1396_v41, %v1322_v48  ;;  %v1398_v19 = vadd.f32 %v1397_v11, %v2852_v33 }
 0x313   :  { %1465 = vst [vmem:[#allocation11 + $0x70] sm:$0xff] %v1439_v2 }
 0x316   :  { %v1323_v15 = vpop.f32.mrf.mxu3 }
 0x317   :  { %v1324_v17 = vadd.f32 %v1323_v15, %v2854_v26 }
 0x318   :  { %v1400_v21 = vpop.f32.mrf.mxu0 }
 0x319   :  { %v1440_v57 = vpack.c.bf16 %v1398_v19, %v1324_v17  ;;  %v1401_v55 = vadd.f32 %v1400_v21, %v2852_v33 }
 0x31b   :  { %1466 = vst [vmem:[#allocation11 + $0x78] sm:$0xff] %v1440_v57 }
 0x31e   :  { %v1326_v18 = vpop.f32.mrf.mxu3 }
 0x31f   :  { %v1327_v8 = vadd.f32 %v1326_v18, %v2854_v26 }
 0x320   :  { %v1402_v37 = vpop.f32.mrf.mxu0 }
 0x321   :  { %v1441_v35 = vpack.c.bf16 %v1401_v55, %v1327_v8  ;;  %v1403_v7 = vadd.f32 %v1402_v37, %v2852_v33 }
 0x323   :  { %1467 = vst [vmem:[#allocation11 + $0x80] sm:$0xff] %v1441_v35 }
 0x326   :  { %v1328_v60 = vpop.f32.mrf.mxu3 }
 0x327   :  { %v1329_v16 = vadd.f32 %v1328_v60, %v2854_v26 }
 0x328   :  { %v1405_v50 = vpop.f32.mrf.mxu0 }
 0x329   :  { %v1442_v51 = vpack.c.bf16 %v1403_v7, %v1329_v16  ;;  %v1406_v42 = vadd.f32 %v1405_v50, %v2852_v33 }
 0x32b   :  { %1468 = vst [vmem:[#allocation11 + $0x88] sm:$0xff] %v1442_v51 }
 0x32e   :  { %v1331_v59 = vpop.f32.mrf.mxu3 }
 0x32f   :  { %v1332_v31 = vadd.f32 %v1331_v59, %v2854_v26 }
 0x330   :  { %v1407_v10 = vpop.f32.mrf.mxu0 }
 0x331   :  { %v1443_v39 = vpack.c.bf16 %v1406_v42, %v1332_v31  ;;  %v1408_v12 = vadd.f32 %v1407_v10, %v2852_v33 }
 0x333   :  { %1469 = vst [vmem:[#allocation11 + $0x90] sm:$0xff] %v1443_v39 }
 0x336   :  { %v1333_v24 = vpop.f32.mrf.mxu3 }
 0x337   :  { %v1334_v22 = vadd.f32 %v1333_v24, %v2854_v26 }
 0x338   :  { %v1410_v1 = vpop.f32.mrf.mxu0 }
 0x339   :  { %v1444_v5 = vpack.c.bf16 %v1408_v12, %v1334_v22  ;;  %v1411_v0 = vadd.f32 %v1410_v1, %v2852_v33 }
 0x33b   :  { %1470 = vst [vmem:[#allocation11 + $0x98] sm:$0xff] %v1444_v5 }
 0x33e   :  { %v1336_v6 = vpop.f32.mrf.mxu3 }
 0x33f   :  { %v1337_v58 = vadd.f32 %v1336_v6, %v2854_v26 }
 0x340   :  { %v1412_v46 = vpop.f32.mrf.mxu0 }
 0x341   :  { %v1445_v23 = vpack.c.bf16 %v1411_v0, %v1337_v58  ;;  %v1413_v36 = vadd.f32 %v1412_v46, %v2852_v33 }
 0x343   :  { %1471 = vst [vmem:[#allocation11 + $0xa0] sm:$0xff] %v1445_v23 }
 0x346   :  { %v1338_v40 = vpop.f32.mrf.mxu3 }
 0x347   :  { %v1339_v9 = vadd.f32 %v1338_v40, %v2854_v26 }
 0x348   :  { %v1415_v52 = vpop.f32.mrf.mxu0 }
 0x349   :  { %v1446_v4 = vpack.c.bf16 %v1413_v36, %v1339_v9  ;;  %v1416_v44 = vadd.f32 %v1415_v52, %v2852_v33 }
 0x34b   :  { %1472 = vst [vmem:[#allocation11 + $0xa8] sm:$0xff] %v1446_v4 }
 0x34e   :  { %v1341_v61 = vpop.f32.mrf.mxu3 }
 0x34f   :  { %v1342_v62 = vadd.f32 %v1341_v61, %v2854_v26 }
 0x350   :  { %v1417_v34 = vpop.f32.mrf.mxu0 }
 0x351   :  { %v1447_v32 = vpack.c.bf16 %v1416_v44, %v1342_v62  ;;  %v1418_v63 = vadd.f32 %v1417_v34, %v2852_v33 }
 0x353   :  { %1473 = vst [vmem:[#allocation11 + $0xb0] sm:$0xff] %v1447_v32 }
 0x356   :  { %v1343_v47 = vpop.f32.mrf.mxu3 }
 0x357   :  { %v1344_v13 = vadd.f32 %v1343_v47, %v2854_v26 }
 0x358   :  { %v1420_v27 = vpop.f32.mrf.mxu0 }
 0x359   :  { %v1448_v49 = vpack.c.bf16 %v1418_v63, %v1344_v13  ;;  %v1421_v38 = vadd.f32 %v1420_v27, %v2852_v33 }
 0x35b   :  { %1474 = vst [vmem:[#allocation11 + $0xb8] sm:$0xff] %v1448_v49 }
 0x35e   :  { %v1346_v54 = vpop.f32.mrf.mxu3 }
 0x35f   :  { %v1347_v53 = vadd.f32 %v1346_v54, %v2854_v26 }
 0x360   :  { %v1422_v45 = vpop.f32.mrf.mxu0 }
 0x361   :  { %v1449_v3 = vpack.c.bf16 %v1421_v38, %v1347_v53  ;;  %v1423_v28 = vadd.f32 %v1422_v45, %v2852_v33 }
 0x363   :  { %1475 = vst [vmem:[#allocation11 + $0xc0] sm:$0xff] %v1449_v3 }
 0x366   :  { %v1348_v20 = vpop.f32.mrf.mxu3 }
 0x367   :  { %v1349_v43 = vadd.f32 %v1348_v20, %v2854_v26 }
 0x369   :  { %v1450_v56 = vpack.c.bf16 %v1423_v28, %v1349_v43 }
 0x36b   :  { %1476 = vst [vmem:[#allocation11 + $0xc8] sm:$0xff] %v1450_v56 }
 0x36c   :  { %1489 = dma.vmem_to_hbm [thread:$0]  %s1482_s28, 3328, %s1484_s8, [#allocation4], %s2047_s19, %s2047_s19, %s2048_s20  }
 0x36d   :  { %2040 = dma.done.wait [#allocation4], 3328  }
 0x36e   :  { %2041 = vsyncadd [#allocation4], 4294963968 }
 0x36f   :  { %1494 = vsyncpa [#allocation3], 1 }
 0x370   :  { %1495 = vsyncpa [#allocation6], 1 }
 0x371   :  { %1496 = vsyncpa [#allocation9], 1 }
 0x372   :  { %1497 = vsyncpa [#allocation4], 1 }

// kernel: tpu_custom_call.1
= control target key start
LH: loop header
LB: loop body
LE: loop exit
PB: predicated region body
PF: predicated region fallthrough
CT: control target
= control target key end

     0   :  { %12 = vsyncpa [#allocation3], 0  ;;  %s2922_s0 = inlined_call_operand.hbm [shape: bf16[208,256], index: 0, kind: input, shape index: {}]   ;;  %s2923_s1 = inlined_call_operand.hbm [shape: bf16[256,128], index: 1, kind: input, shape index: {}]   ;;  %s2924_s2 = inlined_call_operand.vmem [shape: f32[1,128], index: 2, kind: input, shape index: {}]   ;;  %s2925_s3 = inlined_call_operand.hbm [shape: bf16[128,128], index: 3, kind: input, shape index: {}]   ;;  %s2926_s4 = inlined_call_operand.hbm [shape: f32[1,128], index: 4, kind: input, shape index: {}]   ;;  %s2927_s5 = inlined_call_operand.hbm [shape: bf16[128,256], index: 5, kind: input, shape index: {}]   ;;  %s2928_s6 = inlined_call_operand.vmem [shape: f32[1,256], index: 6, kind: input, shape index: {}]   ;;  %s2929_s7 = inlined_call_operand.hbm [shape: bf16[208,256], index: 7, kind: output, shape index: {}]  }
   0x1   :  { %13 = vsyncpa [#allocation6], 0 }
   0x2   :  { %14 = vsyncpa [#allocation9], 0  ;;  %s33_s26 = sshll.u32 %s2923_s1, 4  ;;  %s34_s26 = int_to_ptr.hbm [resolvable:$true] %s33_s26 }
   0x3   :  { %15 = vsyncpa [#allocation4], 0  ;;  %s2042_s27 = smov [#allocation5]   ;;  %s62_s8 = sshll.u32 %s2926_s4, 4  ;;  %s63_s8 = int_to_ptr.hbm [resolvable:$true] %s62_s8 }
   0x4   :  { %s35_s28 = sshll.u32 %s2042_s27, 4  ;;  %s2043_s9 = smov 64   ;;  %s36_s28 = int_to_ptr.vmem [resolvable:$true] %s35_s28 }
   0x5   :  { %s2044_s10 = smov 4   ;;  %s2045_s11 = smov [#allocation8]  }
   0x6   :  { %41 = dma.hbm_to_vmem [thread:$0]  %s34_s26, 2048, %s36_s28, [#allocation6], %s2043_s9, %s2043_s9, %s2044_s10  }
   0x7   :  { %s64_s12 = sshll.u32 %s2045_s11, 4  ;;  %s20_s15 = sshll.u32 %s2922_s0, 4  ;;  %s65_s12 = int_to_ptr.vmem [resolvable:$true] %s64_s12  ;;  %s21_s15 = int_to_ptr.hbm [resolvable:$true] %s20_s15 }
   0x8   :  { %67 = dma.hbm_to_vmem [thread:$0]  %s63_s8, 16, %s65_s12, [#allocation9]  }
   0x9   :  { %s2046_s1 = smov [#allocation2]   ;;  %s48_s4 = sshll.u32 %s2925_s3, 4  ;;  %s49_s4 = int_to_ptr.hbm [resolvable:$true] %s48_s4 }
   0xa   :  { %s22_s16 = sshll.u32 %s2046_s1, 4  ;;  %s2047_s19 = smov 128   ;;  %s23_s16 = int_to_ptr.vmem [resolvable:$true] %s22_s16 }
   0xb   :  { %s2048_s20 = smov 8   ;;  %s2049_s21 = smov [#allocation7]  }
   0xc   :  { %28 = dma.hbm_to_vmem [thread:$0]  %s21_s15, 3328, %s23_s16, [#allocation3], %s2047_s19, %s2047_s19, %s2048_s20  }
   0xd   :  { %s50_s22 = sshll.u32 %s2049_s21, 4  ;;  %s72_s24 = sshll.u32 %s2927_s5, 4  ;;  %s51_s22 = int_to_ptr.vmem [resolvable:$true] %s50_s22  ;;  %s73_s24 = int_to_ptr.hbm [resolvable:$true] %s72_s24 }
   0xe   :  { %56 = dma.hbm_to_vmem [thread:$0]  %s49_s4, 1024, %s51_s22, [#allocation6], %s2043_s9, %s2043_s9, %s2044_s10  }
   0xf   :  { %s2050_s25 = smov [#allocation10]  }
  0x10   :  { %s74_s26 = sshll.u32 %s2050_s25, 4  ;;  %s75_s26 = int_to_ptr.vmem [resolvable:$true] %s74_s26 }
  0x11   :  { %80 = dma.hbm_to_vmem [thread:$0]  %s73_s24, 2048, %s75_s26, [#allocation9], %s2047_s19, %s2047_s19, %s2048_s20  }
  0x12   :  { %2034 = dma.done.wait [#allocation3], 3328  }
  0x13   :  { %2035 = vsyncadd [#allocation3], 4294963968 }
  0x14   :  { %2036 = dma.done.wait [#allocation6], 3072  }
  0x15   :  { %2037 = vsyncadd [#allocation6], 4294964224 }
  0x16   :  { %2038 = dma.done.wait [#allocation9], 2064  }
  0x17   :  { %2039 = vsyncadd [#allocation9], 4294965232  ;;  %v113_v0 = vld [vmem:[#allocation2 + $0x50] sm:$0xff]  ;;  %v111_v1 = vld [vmem:[#allocation2 + $0x40] sm:$0xff]  ;;  %s1483_s8 = sshll.u32 %s2929_s7, 4  ;;  %s1484_s8 = int_to_ptr.hbm [resolvable:$true] %s1483_s8 }
  0x18   :  { %v114_v2 = vld [vmem:[#allocation2 + $0x58] sm:$0xff]  ;;  %v2113_v3 = vunpack.c.l.bf16 %v113_v0  ;;  %v2115_v4 = vunpack.c.h.bf16 %v113_v0  ;;  %v2117_v5 = vunpack.c.l.bf16 %v111_v1  ;;  %v2119_v6 = vunpack.c.h.bf16 %v111_v1  ;;  %v112_v7 = vld [vmem:[#allocation2 + $0x48] sm:$0xff]  ;;  %v115_v12 = vld [vmem:[#allocation2 + $0x60] sm:$0xff] }
  0x19   :  { %v2121_v8 = vunpack.c.l.bf16 %v114_v2  ;;  %v2123_v9 = vunpack.c.h.bf16 %v114_v2  ;;  %v2125_v10 = vunpack.c.l.bf16 %v112_v7  ;;  %v2127_v11 = vunpack.c.h.bf16 %v112_v7  ;;  %v116_v17 = vld [vmem:[#allocation2 + $0x68] sm:$0xff]  ;;  %v117_v30 = vld [vmem:[#allocation2 + $0x70] sm:$0xff]  ;;  %v118_v31 = vld [vmem:[#allocation2 + $0x78] sm:$0xff] }
  0x1a   :  { %v201_v13 = vmul.f32 %v2113_v3, %v2113_v3  ;;  %v202_v14 = vmul.f32 %v2115_v4, %v2115_v4  ;;  %v197_v15 = vmul.f32 %v2117_v5, %v2117_v5  ;;  %v198_v16 = vmul.f32 %v2119_v6, %v2119_v6  ;;  %v103_v41 = vld [vmem:[#allocation2] sm:$0xff]  ;;  %v104_v47 = vld [vmem:[#allocation2 + $0x8] sm:$0xff]  ;;  %v105_v50 = vld [vmem:[#allocation2 + $0x10] sm:$0xff] }
  0x1b   :  { %v2137_v20 = vunpack.c.l.bf16 %v115_v12  ;;  %v2139_v21 = vunpack.c.h.bf16 %v115_v12  ;;  %v203_v22 = vmul.f32 %v2121_v8, %v2121_v8  ;;  %v204_v23 = vmul.f32 %v2123_v9, %v2123_v9  ;;  %v106_v59 = vld [vmem:[#allocation2 + $0x18] sm:$0xff]  ;;  %v108_v7 = vld [vmem:[#allocation2 + $0x28] sm:$0xff]  ;;  %v107_v12 = vld [vmem:[#allocation2 + $0x20] sm:$0xff] }
  0x1c   :  { %v263_v18 = vadd.f32 %v202_v14, %v201_v13  ;;  %v257_v19 = vadd.f32 %v198_v16, %v197_v15  ;;  %v199_v24 = vmul.f32 %v2125_v10, %v2125_v10  ;;  %v200_v25 = vmul.f32 %v2127_v11, %v2127_v11 }
  0x1d   :  { %v205_v26 = vmul.f32 %v2137_v20, %v2137_v20  ;;  %v206_v27 = vmul.f32 %v2139_v21, %v2139_v21  ;;  %v2153_v28 = vunpack.c.l.bf16 %v116_v17  ;;  %v2155_v29 = vunpack.c.h.bf16 %v116_v17 }
  0x1e   :  { %264 = vadd.xlane.f32.xlu1 %v263_v18  ;;  %258 = vadd.xlane.f32.xlu0 %v257_v19  ;;  %v2157_v33 = vunpack.c.l.bf16 %v117_v30  ;;  %v2159_v34 = vunpack.c.h.bf16 %v117_v30  ;;  %v2161_v35 = vunpack.c.l.bf16 %v118_v31  ;;  %v2163_v36 = vunpack.c.h.bf16 %v118_v31  ;;  %v110_v31 = vld [vmem:[#allocation2 + $0x38] sm:$0xff] }
  0x1f   :  { %v269_v32 = vadd.f32 %v206_v27, %v205_v26  ;;  %v266_v37 = vadd.f32 %v204_v23, %v203_v22  ;;  %v260_v38 = vadd.f32 %v200_v25, %v199_v24  ;;  %v207_v39 = vmul.f32 %v2153_v28, %v2153_v28  ;;  %v109_v23 = vld [vmem:[#allocation2 + $0x30] sm:$0xff] }
  0x20   :  { %v208_v40 = vmul.f32 %v2155_v29, %v2155_v29  ;;  %v209_v42 = vmul.f32 %v2157_v33, %v2157_v33  ;;  %v210_v43 = vmul.f32 %v2159_v34, %v2159_v34  ;;  %v211_v44 = vmul.f32 %v2161_v35, %v2161_v35 }
  0x21   :  { %270 = vadd.xlane.f32.xlu2 %v269_v32  ;;  %v212_v45 = vmul.f32 %v2163_v36, %v2163_v36  ;;  %v2177_v48 = vunpack.c.l.bf16 %v103_v41  ;;  %v2179_v49 = vunpack.c.h.bf16 %v103_v41  ;;  %v2181_v53 = vunpack.c.l.bf16 %v104_v47 }
  0x22   :  { %v272_v46 = vadd.f32 %v208_v40, %v207_v39  ;;  %v275_v51 = vadd.f32 %v210_v43, %v209_v42  ;;  %v2183_v54 = vunpack.c.h.bf16 %v104_v47  ;;  %v2189_v57 = vunpack.c.l.bf16 %v105_v50 }
  0x23   :  { %v278_v52 = vadd.f32 %v212_v45, %v211_v44  ;;  %v181_v55 = vmul.f32 %v2177_v48, %v2177_v48  ;;  %v182_v56 = vmul.f32 %v2179_v49, %v2179_v49  ;;  %v2191_v58 = vunpack.c.h.bf16 %v105_v50  ;;  %v1665_v50 = vld [vmem:[#allocation5 + $0x38] sm:$0xff] }
  0x24   :  { %v183_v60 = vmul.f32 %v2181_v53, %v2181_v53  ;;  %v184_v61 = vmul.f32 %v2183_v54, %v2183_v54  ;;  %v2197_v62 = vunpack.c.l.bf16 %v106_v59  ;;  %v2199_v63 = vunpack.c.h.bf16 %v106_v59  ;;  %1698 = vmatpush.bf16.msra.mxu1 %v1665_v50  ;;  %807 = vmatpush.bf16.msra.mxu0 %v1665_v50  ;;  %v1660_v59 = vld [vmem:[#allocation5 + $0x10] sm:$0xff] }
  0x25   :  { %v233_v0 = vadd.f32 %v182_v56, %v181_v55  ;;  %v185_v1 = vmul.f32 %v2189_v57, %v2189_v57  ;;  %v186_v2 = vmul.f32 %v2191_v58, %v2191_v58  ;;  %v2209_v15 = vunpack.c.l.bf16 %v108_v7  ;;  %1699 = vmatpush.bf16.msra.mxu2 %v1665_v50  ;;  %1700 = vmatpush.bf16.msra.mxu3 %v1665_v50  ;;  %v1662_v55 = vld [vmem:[#allocation5 + $0x20] sm:$0xff]  ;;  %v1661_v56 = vld [vmem:[#allocation5 + $0x18] sm:$0xff] }
  0x26   :  { %267 = vadd.xlane.f32.xlu1 %v266_v37  ;;  %261 = vadd.xlane.f32.xlu0 %v260_v38  ;;  %2942 = vst [vmem:[#allocation16_spill] sm:$0xff] %v2199_v63  ;;  %v187_v13 = vmul.f32 %v2197_v62, %v2197_v62  ;;  %v188_v14 = vmul.f32 %v2199_v63, %v2199_v63  ;;  %v2211_v16 = vunpack.c.h.bf16 %v108_v7  ;;  %v2213_v19 = vunpack.c.l.bf16 %v107_v12 }
  0x27   :  { %v236_v17 = vadd.f32 %v184_v61, %v183_v60  ;;  %v239_v18 = vadd.f32 %v186_v2, %v185_v1  ;;  %v2215_v22 = vunpack.c.h.bf16 %v107_v12  ;;  %v191_v25 = vmul.f32 %v2209_v15, %v2209_v15  ;;  %v1659_v60 = vld [vmem:[#allocation5 + $0x8] sm:$0xff]  ;;  %v1658_v61 = vld [vmem:[#allocation5] sm:$0xff]  ;;  %v1673_v12 = vld [vmem:[#allocation5 + $0x78] sm:$0xff] }
  0x28   :  { %2943 = vst [vmem:[#allocation17_spill] sm:$0xff] %v2211_v16  ;;  %v242_v24 = vadd.f32 %v188_v14, %v187_v13  ;;  %v192_v26 = vmul.f32 %v2211_v16, %v2211_v16  ;;  %v189_v27 = vmul.f32 %v2213_v19, %v2213_v19  ;;  %v2225_v32 = vunpack.c.l.bf16 %v109_v23  ;;  %v119_v13 = vld [vmem:[#allocation2 + $0x80] sm:$0xff] }
  0x29   :  { %273 = vadd.xlane.f32.xlu2 %v272_v46  ;;  %2944 = vst [vmem:[#allocation18_spill] sm:$0xff] %v2215_v22  ;;  %v190_v30 = vmul.f32 %v2215_v22, %v2215_v22  ;;  %v2227_v37 = vunpack.c.h.bf16 %v109_v23  ;;  %v2229_v38 = vunpack.c.l.bf16 %v110_v31  ;;  %v2231_v39 = vunpack.c.h.bf16 %v110_v31 }
  0x2a   :  { %v248_v40 = vadd.f32 %v192_v26, %v191_v25  ;;  %v193_v42 = vmul.f32 %v2225_v32, %v2225_v32  ;;  %v2246_v14 = vunpack.c.l.bf16 %v119_v13  ;;  %v2249_v23 = vunpack.c.h.bf16 %v119_v13 }
  0x2b   :  { %2945 = vst [vmem:[#allocation19_spill] sm:$0xff] %v2227_v37  ;;  %v245_v41 = vadd.f32 %v190_v30, %v189_v27  ;;  %v194_v43 = vmul.f32 %v2227_v37, %v2227_v37  ;;  %v195_v44 = vmul.f32 %v2229_v38, %v2229_v38  ;;  %v196_v45 = vmul.f32 %v2231_v39, %v2231_v39 }
  0x2c   :  { %2946 = vst [vmem:[#allocation20_spill] sm:$0xff] %v2231_v39  ;;  %v213_v25 = vmul.f32 %v2246_v14, %v2246_v14  ;;  %v214_v26 = vmul.f32 %v2249_v23, %v2249_v23 }
  0x2d   :  { %v251_v46 = vadd.f32 %v194_v43, %v193_v42  ;;  %v254_v47 = vadd.f32 %v196_v45, %v195_v44  ;;  %2947 = vst [vmem:[#allocation21_spill] sm:$0xff] %v2246_v14  ;;  %v121_v14 = vld [vmem:[#allocation2 + $0x90] sm:$0xff] }
  0x2e   :  { %276 = vadd.xlane.f32.xlu0 %v275_v51  ;;  %279 = vadd.xlane.f32.xlu1 %v278_v52  ;;  %v1664_v51 = vld [vmem:[#allocation5 + $0x30] sm:$0xff]  ;;  %v1663_v52 = vld [vmem:[#allocation5 + $0x28] sm:$0xff]  ;;  %2948 = vst [vmem:[#allocation22_spill] sm:$0xff] %v2249_v23  ;;  %v281_v31 = vadd.f32 %v214_v26, %v213_v25  ;;  %v2377_v22 = vunpack.c.l.bf16 %v121_v14  ;;  %v2379_v63 = vunpack.c.h.bf16 %v121_v14 }
  0x2f   :  { %1701 = vmatpush.bf16.msra.mxu1 %v1664_v51  ;;  %808 = vmatpush.bf16.msra.mxu0 %v1664_v51 }
  0x30   :  { %1702 = vmatpush.bf16.msra.mxu2 %v1664_v51  ;;  %1703 = vmatpush.bf16.msra.mxu3 %v1664_v51  ;;  %2957 = vst [vmem:[#allocation27_spill] sm:$0xff] %v2379_v63 }
  0x31   :  { %234 = vadd.xlane.f32.xlu2 %v233_v0 }
  0x33   :  { %1704 = vmatpush.bf16.msra.mxu1 %v1663_v52  ;;  %809 = vmatpush.bf16.msra.mxu0 %v1663_v52 }
  0x34   :  { %1705 = vmatpush.bf16.msra.mxu2 %v1663_v52  ;;  %1706 = vmatpush.bf16.msra.mxu3 %v1663_v52 }
  0x36   :  { %237 = vadd.xlane.f32.xlu0 %v236_v17  ;;  %240 = vadd.xlane.f32.xlu1 %v239_v18  ;;  %v1672_v18 = vld [vmem:[#allocation5 + $0x70] sm:$0xff] }
  0x37   :  { %1707 = vmatpush.bf16.msra.mxu1 %v1662_v55  ;;  %810 = vmatpush.bf16.msra.mxu0 %v1662_v55 }
  0x38   :  { %1708 = vmatpush.bf16.msra.mxu2 %v1662_v55  ;;  %1709 = vmatpush.bf16.msra.mxu3 %v1662_v55 }
  0x39   :  { %243 = vadd.xlane.f32.xlu2 %v242_v24 }
  0x3b   :  { %1710 = vmatpush.bf16.msra.mxu1 %v1661_v56  ;;  %811 = vmatpush.bf16.msra.mxu0 %v1661_v56 }
  0x3c   :  { %1711 = vmatpush.bf16.msra.mxu2 %v1661_v56  ;;  %1712 = vmatpush.bf16.msra.mxu3 %v1661_v56 }
  0x3e   :  { %249 = vadd.xlane.f32.xlu1 %v248_v40  ;;  %246 = vadd.xlane.f32.xlu0 %v245_v41  ;;  %v120_v40 = vld [vmem:[#allocation2 + $0x88] sm:$0xff] }
  0x3f   :  { %1713 = vmatpush.bf16.msra.mxu1 %v1660_v59  ;;  %812 = vmatpush.bf16.msra.mxu0 %v1660_v59  ;;  %v2264_v44 = vunpack.c.l.bf16 %v120_v40  ;;  %v2266_v45 = vunpack.c.h.bf16 %v120_v40  ;;  %v1671_v40 = vld [vmem:[#allocation5 + $0x68] sm:$0xff] }
  0x40   :  { %1714 = vmatpush.bf16.msra.mxu2 %v1660_v59  ;;  %1715 = vmatpush.bf16.msra.mxu3 %v1660_v59 }
  0x41   :  { %252 = vadd.xlane.f32.xlu2 %v251_v46  ;;  %2949 = vst [vmem:[#allocation23_spill] sm:$0xff] %v2264_v44  ;;  %v215_v52 = vmul.f32 %v2264_v44, %v2264_v44  ;;  %v216_v59 = vmul.f32 %v2266_v45, %v2266_v45 }
  0x42   :  { %2950 = vst [vmem:[#allocation24_spill] sm:$0xff] %v2266_v45 }
  0x43   :  { %1716 = vmatpush.bf16.msra.mxu1 %v1659_v60  ;;  %813 = vmatpush.bf16.msra.mxu0 %v1659_v60 }
  0x44   :  { %1717 = vmatpush.bf16.msra.mxu2 %v1659_v60  ;;  %1718 = vmatpush.bf16.msra.mxu3 %v1659_v60 }
  0x46   :  { %255 = vadd.xlane.f32.xlu0 %v254_v47  ;;  %282 = vadd.xlane.f32.xlu1 %v281_v31 }
  0x47   :  { %1719 = vmatpush.bf16.msra.mxu1 %v1658_v61  ;;  %814 = vmatpush.bf16.msra.mxu0 %v1658_v61 }
  0x48   :  { %1720 = vmatpush.bf16.msra.mxu2 %v1658_v61  ;;  %1721 = vmatpush.bf16.msra.mxu3 %v1658_v61  ;;  %v284_v61 = vadd.f32 %v216_v59, %v215_v52  ;;  %v1670_v59 = vld [vmem:[#allocation5 + $0x60] sm:$0xff] }
  0x4a   :  { %285 = vadd.xlane.f32.xlu2 %v284_v61 }
  0x4b   :  { %881 = vmatpush.bf16.msrb.mxu1 %v1673_v12 }
  0x4f   :  { %882 = vmatpush.bf16.msrb.mxu1 %v1672_v18 }
  0x53   :  { %883 = vmatpush.bf16.msrb.mxu1 %v1671_v40 }
  0x57   :  { %884 = vmatpush.bf16.msrb.mxu1 %v1670_v59 }
  0x91   :  { %v265_v0 = vpop.xlane.xlu1 %264  ;;  %v259_v1 = vpop.xlane.xlu0 %258 }
  0x92   :  { %v2241_v2 = vmax.f32 %v265_v0, 1e-24  ;;  %v2243_v7 = vmax.f32 %v259_v1, 1e-24 }
  0x94   :  { %1734 = vrsqrt.f32 %v2241_v2  ;;  %v271_v17 = vpop.xlane.xlu2 %270  ;;  %vm443_vm1 = vweird.f32 %v2241_v2  ;;  %vm423_vm2 = vweird.f32 %v2243_v7 }
  0x95   :  { %1736 = vrsqrt.f32 %v2243_v7  ;;  %v2251_v24 = vmax.f32 %v271_v17, 1e-24 }
  0x97   :  { %1738 = vrsqrt.f32 %v2251_v24  ;;  %vm463_vm13 = vweird.f32 %v2251_v24 }
  0x99   :  { %v268_v27 = vpop.xlane.xlu1 %267  ;;  %v262_v30 = vpop.xlane.xlu0 %261 }
  0x9a   :  { %v2258_v41 = vpop.eup %1734  ;;  %v2260_v42 = vmax.f32 %v268_v27, 1e-24  ;;  %v2262_v43 = vmax.f32 %v262_v30, 1e-24 }
  0x9b   :  { %v1737_v46 = vpop.eup %1736  ;;  %v438_v50 = vmul.f32 %v2258_v41, %v2241_v2  ;;  %vm444_vm5 = vweird.f32 %v2258_v41 }
  0x9c   :  { %v418_v47 = vmul.f32 %v1737_v46, %v2243_v7  ;;  %1740 = vrsqrt.f32 %v2260_v42  ;;  %v274_v51 = vpop.xlane.xlu2 %273  ;;  %vm424_vm0 = vweird.f32 %v1737_v46  ;;  %vm433_vm6 = vweird.f32 %v2262_v43  ;;  %vm2334_vm10 = vmor %vm443_vm1, %vm444_vm5 }
  0x9d   :  { %1742 = vrsqrt.f32 %v2262_v43  ;;  %v2275_v55 = vpop.eup %1738  ;;  %v439_v0 = vmul.f32 %v2258_v41, %v438_v50  ;;  %v2282_v12 = vmax.f32 %v274_v51, 1e-24  ;;  %vm425_vm3 = vmor %vm423_vm2, %vm424_vm0  ;;  %vm453_vm7 = vweird.f32 %v2260_v42 }
  0x9e   :  { %v419_v56 = vmul.f32 %v1737_v46, %v418_v47  ;;  %v458_v1 = vmul.f32 %v2275_v55, %v2251_v24  ;;  %vm464_vm14 = vweird.f32 %v2275_v55 }
  0x9f   :  { %v440_v50 = vmul.f32 0.5, %v439_v0  ;;  %1744 = vrsqrt.f32 %v2282_v12  ;;  %v122_v0 = vld [vmem:[#allocation2 + $0x98] sm:$0xff]  ;;  %vm473_vm15 = vweird.f32 %v2282_v12 }
  0xa0   :  { %v420_v60 = vmul.f32 0.5, %v419_v56  ;;  %v459_v52 = vmul.f32 %v2275_v55, %v458_v1 }
  0xa1   :  { %v277_v13 = vpop.xlane.xlu0 %276  ;;  %v280_v17 = vpop.xlane.xlu1 %279  ;;  %v441_v1 = vsub.f32 1.5, %v440_v50 }
  0xa2   :  { %v2284_v18 = vpop.eup %1740  ;;  %v2286_v25 = vmax.f32 %v277_v13, 1e-24  ;;  %v421_v27 = vsub.f32 1.5, %v420_v60  ;;  %v2290_v31 = vmax.f32 %v280_v17, 1e-24 }
  0xa3   :  { %v1743_v26 = vpop.eup %1742  ;;  %v448_v30 = vmul.f32 %v2284_v18, %v2260_v42  ;;  %vm454_vm8 = vweird.f32 %v2284_v18 }
  0xa4   :  { %v428_v47 = vmul.f32 %v1743_v26, %v2262_v43  ;;  %v235_v56 = vpop.xlane.xlu2 %234  ;;  %1746 = vrsqrt.f32 %v2286_v25  ;;  %v422_v17 = vmul.f32 %v1737_v46, %v421_v27  ;;  %vm434_vm4 = vweird.f32 %v1743_v26  ;;  %vm2362_vm12 = vmor %vm453_vm7, %vm454_vm8 }
  0xa5   :  { %v449_v51 = vmul.f32 %v2284_v18, %v448_v30  ;;  %v2297_v60 = vmax.f32 %v235_v56, 1e-24  ;;  %1748 = vrsqrt.f32 %v2290_v31  ;;  %v2303_v30 = vmul.f32 0.5, %v459_v52  ;;  %vm435_vm9 = vmor %vm433_vm6, %vm434_vm4 }
  0xa6   :  { %v429_v61 = vmul.f32 %v1743_v26, %v428_v47  ;;  %v2313_v7 = vsel %vm425_vm3, %v1737_v46, %v422_v17  ;;  %v442_v43 = vmul.f32 %v2258_v41, %v441_v1  ;;  %vm483_vm1 = vweird.f32 %v2286_v25 }
  0xa7   :  { %v450_v13 = vmul.f32 0.5, %v449_v51  ;;  %1750 = vrsqrt.f32 %v2297_v60  ;;  %v2307_v51 = vunpack.c.l.bf16 %v122_v0  ;;  %vm343_vm11 = vweird.f32 %v2297_v60 }
  0xa8   :  { %v430_v45 = vmul.f32 0.5, %v429_v61  ;;  %v2309_v61 = vpop.eup %1744  ;;  %vm493_vm3 = vweird.f32 %v2290_v31 }
  0xa9   :  { %v238_v40 = vpop.xlane.xlu0 %237  ;;  %v241_v47 = vpop.xlane.xlu1 %240  ;;  %2951 = vst [vmem:[#allocation25_spill] sm:$0xff] %v2307_v51  ;;  %v451_v50 = vsub.f32 1.5, %v450_v13  ;;  %v219_v1 = vmul.f32 %v2307_v51, %v2307_v51  ;;  %vm474_vm6 = vweird.f32 %v2309_v61 }
  0xaa   :  { %v431_v56 = vsub.f32 1.5, %v430_v45  ;;  %v2305_v27 = vmax.f32 %v238_v40, 1e-24  ;;  %v2315_v52 = vpop.eup %1746  ;;  %v2318_v45 = vunpack.c.h.bf16 %v122_v0  ;;  %v2320_v40 = vmax.f32 %v241_v47, 1e-24 }
  0xab   :  { %v2322_v23 = vpop.eup %1748  ;;  %v468_v0 = vmul.f32 %v2309_v61, %v2282_v12  ;;  %v478_v44 = vmul.f32 %v2315_v52, %v2286_v25  ;;  %vm484_vm7 = vweird.f32 %v2315_v52 }
  0xac   :  { %v432_v59 = vmul.f32 %v1743_v26, %v431_v56  ;;  %1752 = vrsqrt.f32 %v2305_v27  ;;  %2952 = vst [vmem:[#allocation26_spill] sm:$0xff] %v2318_v45  ;;  %v613_v56 = vmul.f32 %v2313_v7, %v2117_v5  ;;  %v244_v5 = vpop.xlane.xlu2 %243  ;;  %v488_v39 = vmul.f32 %v2322_v23, %v2290_v31 }
  0xad   :  { %v2328_v46 = vpop.eup %1750  ;;  %1754 = vrsqrt.f32 %v2320_v40  ;;  %v469_v16 = vmul.f32 %v2309_v61, %v468_v0  ;;  %v2386_v13 = vmax.f32 %v244_v5, 1e-24  ;;  %v1668_v5 = vld [vmem:[#allocation5 + $0x50] sm:$0xff]  ;;  %vm353_vm2 = vweird.f32 %v2305_v27 }
  0xae   :  { %v2341_v47 = vsel %vm435_vm9, %v1743_v26, %v432_v59  ;;  %v338_v17 = vmul.f32 %v2328_v46, %v2297_v60  ;;  %v452_v26 = vmul.f32 %v2284_v18, %v451_v50  ;;  %v220_v59 = vmul.f32 %v2318_v45, %v2318_v45 }
  0xaf   :  { %v615_v2 = vmul.f32 %v2341_v47, %v2125_v10  ;;  %v2372_v45 = vsel %vm2334_vm10, %v2258_v41, %v442_v43  ;;  %vm344_vm0 = vweird.f32 %v2328_v46  ;;  %1756 = vrsqrt.f32 %v2386_v13 }
  0xb0   :  { %v339_v50 = vmul.f32 %v2328_v46, %v338_v17  ;;  %v290_v42 = vadd.f32 %v220_v59, %v219_v1  ;;  %v479_v17 = vmul.f32 %v2315_v52, %v478_v44  ;;  %v2393_v14 = vsel %vm2362_vm12, %v2284_v18, %v452_v26  ;;  %vm2414_vm5 = vmor %vm343_vm11, %vm344_vm0 }
  0xb1   :  { %v657_v51 = vpack.c.bf16 %v615_v2, %v613_v56  ;;  %v1669_v56 = vld [vmem:[#allocation5 + $0x58] sm:$0xff]  ;;  %v250_v0 = vpop.xlane.xlu1 %249  ;;  %v217_v44 = vmul.f32 %v2377_v22, %v2377_v22  ;;  %v489_v1 = vmul.f32 %v2322_v23, %v488_v39  ;;  %v470_v26 = vmul.f32 0.5, %v469_v16  ;;  %vm2460_vm11 = vmor %vm463_vm13, %vm464_vm14 }
  0xb2   :  { %v2374_v37 = vpop.eup %1752  ;;  %v340_v43 = vmul.f32 0.5, %v339_v50  ;;  %291 = vadd.xlane.f32.xlu1 %v290_v42  ;;  %885 = vmatpush.bf16.msrb.mxu1 %v1669_v56  ;;  %v2406_v50 = vmax.f32 %v250_v0, 1e-24  ;;  %v247_v42 = vpop.xlane.xlu0 %246  ;;  %vm494_vm9 = vweird.f32 %v2322_v23  ;;  %vm363_vm10 = vweird.f32 %v2320_v40  ;;  %vm2473_vm0 = vmor %vm473_vm15, %vm474_vm6 }
  0xb3   :  { %835 = vmatmul.bf16.vlgmr.msra.gmra.mxu1 %v657_v51  ;;  %v348_v41 = vmul.f32 %v2374_v37, %v2305_v27  ;;  %v218_v51 = vmul.f32 %v2379_v63, %v2379_v63  ;;  %v2403_v18 = vpop.eup %1754  ;;  %v480_v63 = vmul.f32 0.5, %v479_v17  ;;  %vm354_vm4 = vweird.f32 %v2374_v37  ;;  %vm2492_vm13 = vmor %vm483_vm1, %vm484_vm7 }
  0xb4   :  { %v341_v59 = vsub.f32 1.5, %v340_v43  ;;  %v358_v16 = vmul.f32 %v2403_v18, %v2320_v40  ;;  %v617_v17 = vmul.f32 %v2372_v45, %v2113_v3  ;;  %v619_v43 = vmul.f32 %v2393_v14, %v2121_v8  ;;  %vm355_vm8 = vmor %vm353_vm2, %vm354_vm4 }
  0xb5   :  { %v349_v2 = vmul.f32 %v2374_v37, %v348_v41  ;;  %v287_v10 = vadd.f32 %v218_v51, %v217_v44  ;;  %v490_v0 = vmul.f32 0.5, %v489_v1  ;;  %v2427_v51 = vmax.f32 %v247_v42, 1e-24  ;;  %v2440_v8 = vpop.eup %1756  ;;  %vm2517_vm1 = vmor %vm493_vm3, %vm494_vm9 }
  0xb6   :  { %v342_v56 = vmul.f32 %v2328_v46, %v341_v59  ;;  %v359_v44 = vmul.f32 %v2403_v18, %v358_v16  ;;  %886 = vmatpush.bf16.msrb.mxu1 %v1668_v5  ;;  %1758 = vrsqrt.f32 %v2406_v50  ;;  %v481_v1 = vsub.f32 1.5, %v480_v63 }
  0xb7   :  { %v350_v39 = vmul.f32 0.5, %v349_v2  ;;  %288 = vadd.xlane.f32.xlu0 %v287_v10  ;;  %v471_v2 = vsub.f32 1.5, %v470_v26  ;;  %v659_v26 = vpack.c.bf16 %v619_v43, %v617_v17  ;;  %v368_v27 = vmul.f32 %v2440_v8, %v2386_v13 }
  0xb8   :  { %v2437_v3 = vsel %vm2414_vm5, %v2328_v46, %v342_v56  ;;  %v360_v59 = vmul.f32 0.5, %v359_v44  ;;  %1760 = vrsqrt.f32 %v2427_v51  ;;  %v491_v46 = vsub.f32 1.5, %v490_v0  ;;  %v123_v44 = vld [vmem:[#allocation2 + $0xa0] sm:$0xff] }
  0xb9   :  { %v351_v60 = vsub.f32 1.5, %v350_v39  ;;  %v597_v10 = vmul.f32 %v2437_v3, %v2177_v48  ;;  %v2960_v42 = vsub.f32 1.5, %v2303_v30  ;;  %vm364_vm12 = vweird.f32 %v2403_v18 }
  0xba   :  { %v369_v48 = vmul.f32 %v2440_v8, %v368_v27  ;;  %v472_v16 = vmul.f32 %v2309_v61, %v471_v2  ;;  %v361_v24 = vsub.f32 1.5, %v360_v59  ;;  %v482_v17 = vmul.f32 %v2315_v52, %v481_v1  ;;  %vm2531_vm2 = vmor %vm363_vm10, %vm364_vm12 }
  0xbb   :  { %v352_v5 = vmul.f32 %v2374_v37, %v351_v60  ;;  %v462_v63 = vmul.f32 %v2275_v55, %v2960_v42  ;;  %v2480_v43 = vmul.f32 %v2313_v7, %v2119_v6  ;;  %v2484_v56 = vmul.f32 %v2341_v47, %v2127_v11  ;;  %v256_v42 = vpop.xlane.xlu0 %255 }
  0xbc   :  { %v370_v0 = vmul.f32 0.5, %v369_v48  ;;  %v2498_v6 = vmul.f32 %v2372_v45, %v2115_v4  ;;  %v2502_v11 = vmul.f32 %v2393_v14, %v2123_v9  ;;  %vm373_vm14 = vweird.f32 %v2386_v13  ;;  %v124_v14 = vld [vmem:[#allocation2 + $0xa8] sm:$0xff]  ;;  %v1666_v13 = vld [vmem:[#allocation5 + $0x40] sm:$0xff]  ;;  %v253_v48 = vpop.xlane.xlu2 %252 }
  0xbd   :  { %v2454_v39 = vsel %vm355_vm8, %v2374_v37, %v352_v5  ;;  %vm374_vm15 = vweird.f32 %v2440_v8  ;;  %v466_v25 = vsel %vm2460_vm11, %v2275_v55, %v462_v63  ;;  %v658_v7 = vpack.c.bf16 %v2484_v56, %v2480_v43  ;;  %v1667_v5 = vld [vmem:[#allocation5 + $0x48] sm:$0xff] }
  0xbe   :  { %v599_v30 = vmul.f32 %v2454_v39, %v2181_v53  ;;  %v2486_v53 = vpop.eup %1758  ;;  %v371_v9 = vsub.f32 1.5, %v370_v0  ;;  %v476_v45 = vsel %vm2473_vm0, %v2309_v61, %v472_v16  ;;  %v492_v55 = vmul.f32 %v2322_v23, %v491_v46  ;;  %vm2550_vm3 = vmor %vm373_vm14, %vm374_vm15  ;;  %887 = vmatpush.bf16.msrb.mxu1 %v1667_v5 }
  0xbf   :  { %v2511_v47 = vpop.eup %1760  ;;  %v660_v2 = vpack.c.bf16 %v2502_v11, %v2498_v6  ;;  %v388_v61 = vmul.f32 %v2486_v53, %v2406_v50  ;;  %v2542_v59 = vsel %vm2492_vm13, %v2315_v52, %v482_v17  ;;  %v2554_v27 = vunpack.c.h.bf16 %v124_v14 }
  0xc0   :  { %v649_v60 = vpack.c.bf16 %v599_v30, %v597_v10  ;;  %v378_v1 = vmul.f32 %v2511_v47, %v2427_v51  ;;  %v2556_v10 = vunpack.c.l.bf16 %v123_v44  ;;  %v2558_v46 = vunpack.c.h.bf16 %v123_v44 }
  0xc1   :  { %v362_v52 = vmul.f32 %v2403_v18, %v361_v24  ;;  %v372_v41 = vmul.f32 %v2440_v8, %v371_v9  ;;  %v2565_v16 = vmul.f32 %v466_v25, %v2139_v21  ;;  %v2568_v30 = vmul.f32 %v476_v45, %v2155_v29 }
  0xc2   :  { %815 = vmatmul.bf16.vlgmr.msra.gmra.mxu0 %v649_v60  ;;  %v2573_v37 = vsel %vm2517_vm1, %v2322_v23, %v492_v55  ;;  %v224_v24 = vmul.f32 %v2554_v27, %v2554_v27  ;;  %v221_v17 = vmul.f32 %v2556_v10, %v2556_v10  ;;  %v222_v12 = vmul.f32 %v2558_v46, %v2558_v46 }
  0xc3   :  { %840 = vmatmul.bf16.gmra.mxu1 %v659_v26  ;;  %v2544_v26 = vunpack.c.l.bf16 %v124_v14  ;;  %v389_v21 = vmul.f32 %v2486_v53, %v388_v61  ;;  %v2585_v29 = vsel %vm2531_vm2, %v2403_v18, %v362_v52  ;;  %v2590_v23 = vsel %vm2550_vm3, %v2440_v8, %v372_v41 }
  0xc4   :  { %v2592_v0 = vmax.f32 %v256_v42, 1e-24  ;;  %v379_v60 = vmul.f32 %v2511_v47, %v378_v1  ;;  %v293_v9 = vadd.f32 %v222_v12, %v221_v17  ;;  %v2595_v55 = vmax.f32 %v253_v48, 1e-24  ;;  %888 = vmatpush.bf16.msrb.mxu1 %v1666_v13 }
  0xc5   :  { %v223_v63 = vmul.f32 %v2544_v26, %v2544_v26  ;;  %v662_v14 = vpack.c.bf16 %v2568_v30, %v2565_v16  ;;  %v601_v18 = vmul.f32 %v2585_v29, %v2189_v57  ;;  %v603_v8 = vmul.f32 %v2590_v23, %v2197_v62 }
  0xc6   :  { %294 = vadd.xlane.f32.xlu2 %v293_v9  ;;  %1762 = vrsqrt.f32 %v2592_v0  ;;  %v2606_v44 = vmul.f32 %v2542_v59, %v2159_v34  ;;  %v2611_v31 = vmul.f32 %v2573_v37, %v2163_v36  ;;  %v390_v61 = vmul.f32 0.5, %v389_v21 }
  0xc7   :  { %v296_v4 = vadd.f32 %v224_v24, %v223_v63  ;;  %1764 = vrsqrt.f32 %v2595_v55  ;;  %v380_v1 = vmul.f32 0.5, %v379_v60  ;;  %v621_v5 = vmul.f32 %v466_v25, %v2137_v20  ;;  %v125_v20 = vld [vmem:[#allocation2 + $0xb0] sm:$0xff] }
  0xc8   :  { %v623_v57 = vmul.f32 %v476_v45, %v2153_v28  ;;  %v664_v62 = vpack.c.bf16 %v2611_v31, %v2606_v44  ;;  %v651_v40 = vpack.c.bf16 %v603_v8, %v601_v18  ;;  %v391_v34 = vsub.f32 1.5, %v390_v61  ;;  %v126_v28 = vld [vmem:[#allocation2 + $0xb8] sm:$0xff] }
  0xc9   :  { %297 = vadd.xlane.f32.xlu0 %v296_v4  ;;  %vm393_vm4 = vweird.f32 %v2406_v50  ;;  %vm394_vm5 = vweird.f32 %v2486_v53  ;;  %v381_v42 = vsub.f32 1.5, %v380_v1  ;;  %vm383_vm6 = vweird.f32 %v2427_v51 }
  0xca   :  { %v661_v63 = vpack.c.bf16 %v623_v57, %v621_v5  ;;  %vm384_vm7 = vweird.f32 %v2511_v47  ;;  %vm2625_vm8 = vmor %vm393_vm4, %vm394_vm5  ;;  %v2631_v45 = vunpack.c.l.bf16 %v125_v20  ;;  %v2633_v41 = vunpack.c.h.bf16 %v125_v20 }
  0xcb   :  { %v2635_v13 = vunpack.c.l.bf16 %v126_v28  ;;  %vm385_vm9 = vmor %vm383_vm6, %vm384_vm7  ;;  %v2639_v48 = vunpack.c.h.bf16 %v126_v28  ;;  %v382_v24 = vmul.f32 %v2511_v47, %v381_v42  ;;  %v392_v17 = vmul.f32 %v2486_v53, %v391_v34 }
  0xcc   :  { %v2617_v52 = vpop.eup %1762  ;;  %v225_v12 = vmul.f32 %v2631_v45, %v2631_v45  ;;  %v226_v21 = vmul.f32 %v2633_v41, %v2633_v41  ;;  %vm413_vm10 = vweird.f32 %v2592_v0  ;;  %vm403_vm12 = vweird.f32 %v2595_v55 }
  0xcd   :  { %v2621_v36 = vpop.eup %1764  ;;  %v408_v50 = vmul.f32 %v2617_v52, %v2592_v0  ;;  %v227_v60 = vmul.f32 %v2635_v13, %v2635_v13  ;;  %v228_v4 = vmul.f32 %v2639_v48, %v2639_v48  ;;  %v386_v18 = vsel %vm385_vm9, %v2511_v47, %v382_v24 }
  0xce   :  { %v398_v51 = vmul.f32 %v2621_v36, %v2595_v55  ;;  %v299_v9 = vadd.f32 %v226_v21, %v225_v12  ;;  %v396_v8 = vsel %vm2625_vm8, %v2486_v53, %v392_v17  ;;  %v605_v57 = vmul.f32 %v386_v18, %v2213_v19  ;;  %v127_v19 = vld [vmem:[#allocation2 + $0xc0] sm:$0xff] }
  0xcf   :  { %v409_v61 = vmul.f32 %v2617_v52, %v408_v50  ;;  %v302_v5 = vadd.f32 %v228_v4, %v227_v60  ;;  %v625_v47 = vmul.f32 %v2542_v59, %v2157_v33  ;;  %vm414_vm11 = vweird.f32 %v2617_v52 }
  0xd0   :  { %v399_v1 = vmul.f32 %v2621_v36, %v398_v51  ;;  %300 = vadd.xlane.f32.xlu1 %v299_v9  ;;  %vm404_vm0 = vweird.f32 %v2621_v36  ;;  %vm415_vm13 = vmor %vm413_vm10, %vm414_vm11  ;;  %v2671_v59 = vunpack.c.l.bf16 %v127_v19 }
  0xd1   :  { %303 = vadd.xlane.f32.xlu2 %v302_v5  ;;  %v410_v34 = vmul.f32 0.5, %v409_v61  ;;  %vm405_vm14 = vmor %vm403_vm12, %vm404_vm0  ;;  %v600_v5 = vmul.f32 %v2454_v39, %v2183_v54  ;;  %v286_v39 = vpop.xlane.xlu2 %285 }
  0xd2   :  { %820 = vmatmul.bf16.gmra.mxu0 %v651_v40  ;;  %v607_v40 = vmul.f32 %v396_v8, %v2209_v15  ;;  %v400_v42 = vmul.f32 0.5, %v399_v1  ;;  %v128_v15 = vld [vmem:[#allocation2 + $0xc8] sm:$0xff]  ;;  %v229_v24 = vmul.f32 %v2671_v59, %v2671_v59  ;;  %v598_v1 = vmul.f32 %v2437_v3, %v2179_v49  ;;  %v283_v3 = vpop.xlane.xlu1 %282 }
  0xd3   :  { %845 = vmatmul.bf16.gmra.mxu1 %v661_v63  ;;  %v627_v63 = vmul.f32 %v2573_v37, %v2161_v35  ;;  %v411_v20 = vsub.f32 1.5, %v410_v34  ;;  %v2667_v33 = vunpack.c.l.bf16 %v128_v15  ;;  %v2669_v35 = vunpack.c.h.bf16 %v128_v15 }
  0xd4   :  { %v653_v53 = vpack.c.bf16 %v607_v40, %v605_v57  ;;  %v401_v28 = vsub.f32 1.5, %v400_v42  ;;  %v2673_v37 = vunpack.c.h.bf16 %v127_v19  ;;  %v650_v40 = vpack.c.bf16 %v600_v5, %v598_v1  ;;  %v2980_v5 = vld [vmem:[#allocation21_spill] sm:$0xff] }
  0xd5   :  { %v663_v25 = vpack.c.bf16 %v627_v63, %v625_v47  ;;  %v412_v55 = vmul.f32 %v2617_v52, %v411_v20  ;;  %v231_v50 = vmul.f32 %v2667_v33, %v2667_v33  ;;  %v232_v51 = vmul.f32 %v2669_v35, %v2669_v35  ;;  %v2977_v47 = vld [vmem:[#allocation17_spill] sm:$0xff] }
  0xd6   :  { %v402_v0 = vmul.f32 %v2621_v36, %v401_v28  ;;  %v230_v17 = vmul.f32 %v2673_v37, %v2673_v37  ;;  %v608_v63 = vmul.f32 %v396_v8, %v2977_v47  ;;  %v327_v54 = vmax.f32 %v283_v3, 1e-24  ;;  %v2978_v28 = vld [vmem:[#allocation19_spill] sm:$0xff] }
  0xd7   :  { %v308_v12 = vadd.f32 %v232_v51, %v231_v50  ;;  %v416_v4 = vsel %vm415_vm13, %v2617_v52, %v412_v55  ;;  %v2975_v52 = vld [vmem:[#allocation16_spill] sm:$0xff] }
  0xd8   :  { %v305_v21 = vadd.f32 %v230_v17, %v229_v24  ;;  %v406_v60 = vsel %vm405_vm14, %v2621_v36, %v402_v0  ;;  %v611_v61 = vmul.f32 %v416_v4, %v2229_v38  ;;  %v602_v36 = vmul.f32 %v2585_v29, %v2191_v58  ;;  %v2979_v29 = vld [vmem:[#allocation20_spill] sm:$0xff] }
  0xd9   :  { %309 = vadd.xlane.f32.xlu1 %v308_v12  ;;  %v609_v9 = vmul.f32 %v406_v60, %v2225_v32  ;;  %v604_v34 = vmul.f32 %v2590_v23, %v2975_v52  ;;  %v2976_v32 = vld [vmem:[#allocation18_spill] sm:$0xff]  ;;  %1766 = vrsqrt.f32 %v327_v54  ;;  %v610_v58 = vmul.f32 %v406_v60, %v2978_v28 }
  0xda   :  { %306 = vadd.xlane.f32.xlu0 %v305_v21  ;;  %v606_v38 = vmul.f32 %v386_v18, %v2976_v32  ;;  %vm503_vm15 = vweird.f32 %v327_v54 }
  0xdb   :  { %v655_v57 = vpack.c.bf16 %v611_v61, %v609_v9  ;;  %v652_v42 = vpack.c.bf16 %v604_v34, %v602_v36 }
  0xdc   :  { %v654_v49 = vpack.c.bf16 %v608_v63, %v606_v38 }
  0xdf   :  { %v1767_v20 = vpop.eup %1766 }
  0xe0   :  { %v498_v23 = vmul.f32 %v1767_v20, %v327_v54  ;;  %vm504_vm1 = vweird.f32 %v1767_v20 }
  0xe1   :  { %vm505_vm4 = vmor %vm503_vm15, %vm504_vm1 }
  0xe2   :  { %825 = vmatmul.bf16.gmra.mxu0 %v653_v53  ;;  %v328_v53 = vmax.f32 %v286_v39, 1e-24  ;;  %v499_v19 = vmul.f32 %v1767_v20, %v498_v23 }
  0xe3   :  { %850 = vmatmul.bf16.gmra.mxu1 %v663_v25  ;;  %v612_v25 = vmul.f32 %v416_v4, %v2979_v29 }
  0xe4   :  { %1768 = vrsqrt.f32 %v328_v53  ;;  %v500_v55 = vmul.f32 0.5, %v499_v19  ;;  %vm513_vm2 = vweird.f32 %v328_v53 }
  0xe5   :  { %v656_v18 = vpack.c.bf16 %v612_v25, %v610_v58 }
  0xe6   :  { %v501_v51 = vsub.f32 1.5, %v500_v55 }
  0xe8   :  { %v502_v21 = vmul.f32 %v1767_v20, %v501_v51 }
  0xea   :  { %v1769_v15 = vpop.eup %1768  ;;  %v506_v9 = vsel %vm505_vm4, %v1767_v20, %v502_v21 }
  0xeb   :  { %v508_v0 = vmul.f32 %v1769_v15, %v328_v53  ;;  %vm514_vm3 = vweird.f32 %v1769_v15 }
  0xec   :  { %vm515_vm5 = vmor %vm513_vm2, %vm514_vm3 }
  0xed   :  { %v509_v8 = vmul.f32 %v1769_v15, %v508_v0 }
  0xef   :  { %v510_v50 = vmul.f32 0.5, %v509_v8  ;;  %v1681_v8 = vld [vmem:[#allocation7 + $0x38] sm:$0xff] }
  0xf0   :  { %1062 = vmatpush.bf16.msrb.mxu2 %v1681_v8 }
  0xf1   :  { %v511_v24 = vsub.f32 1.5, %v510_v50 }
  0xf2   :  { %830 = vmatmul.bf16.gmra.mxu0 %v655_v57  ;;  %v629_v57 = vmul.f32 %v506_v9, %v2980_v5  ;;  %v1680_v5 = vld [vmem:[#allocation7 + $0x30] sm:$0xff] }
  0xf3   :  { %889 = vmatmul.bf16.vlgmr.msrb.gmra.mxu1 %v650_v40  ;;  %v512_v60 = vmul.f32 %v1769_v15, %v511_v24  ;;  %v2981_v40 = vld [vmem:[#allocation23_spill] sm:$0xff]  ;;  %v2983_v24 = vld [vmem:[#allocation22_spill] sm:$0xff] }
  0xf4   :  { %1063 = vmatpush.bf16.msrb.mxu2 %v1680_v5 }
  0xf5   :  { %v516_v61 = vsel %vm515_vm5, %v1769_v15, %v512_v60  ;;  %v2982_v15 = vld [vmem:[#allocation25_spill] sm:$0xff] }
  0xf6   :  { %v631_v36 = vmul.f32 %v516_v61, %v2981_v40 }
  0xf8   :  { %v665_v52 = vpack.c.bf16 %v631_v36, %v629_v57 }
  0xfa   :  { %855 = vmatmul.bf16.vlgmr.msra.gmra.mxu2 %v665_v52 }
 0x103   :  { %894 = vmatmul.bf16.gmra.mxu1 %v652_v42 }
 0x113   :  { %899 = vmatmul.bf16.gmra.mxu1 %v654_v49 }
 0x123   :  { %904 = vmatmul.bf16.gmra.mxu1 %v656_v18 }
 0x125   :  { %v292_v17 = vpop.xlane.xlu1 %291 }
 0x126   :  { %v330_v12 = vmax.f32 %v292_v17, 1e-24  ;;  %v2724_v17 = vmul.f32 %v506_v9, %v2983_v24 }
 0x128   :  { %1770 = vrsqrt.f32 %v330_v12  ;;  %vm533_vm6 = vweird.f32 %v330_v12 }
 0x12a   :  { %v289_v4 = vpop.xlane.xlu0 %288 }
 0x12b   :  { %v329_v1 = vmax.f32 %v289_v4, 1e-24 }
 0x12d   :  { %1772 = vrsqrt.f32 %v329_v1  ;;  %vm523_vm9 = vweird.f32 %v329_v1 }
 0x12e   :  { %v1771_v34 = vpop.eup %1770 }
 0x12f   :  { %v528_v32 = vmul.f32 %v1771_v34, %v330_v12  ;;  %vm534_vm7 = vweird.f32 %v1771_v34  ;;  %v2984_v12 = vld [vmem:[#allocation24_spill] sm:$0xff] }
 0x130   :  { %v2703_v42 = vpop.f32.mrf.mxu1  ;;  %vm535_vm8 = vmor %vm533_vm6, %vm534_vm7  ;;  %v2727_v21 = vmul.f32 %v516_v61, %v2984_v12 }
 0x131   :  { %v529_v38 = vmul.f32 %v1771_v34, %v528_v32 }
 0x132   :  { %v666_v57 = vpack.c.bf16 %v2727_v21, %v2724_v17 }
 0x133   :  { %909 = vmatmul.bf16.gmra.mxu1 %v658_v7  ;;  %v1773_v47 = vpop.eup %1772  ;;  %v530_v63 = vmul.f32 0.5, %v529_v38 }
 0x134   :  { %v518_v49 = vmul.f32 %v1773_v47, %v329_v1  ;;  %vm524_vm10 = vweird.f32 %v1773_v47 }
 0x135   :  { %v531_v3 = vsub.f32 1.5, %v530_v63  ;;  %vm525_vm11 = vmor %vm523_vm9, %vm524_vm10 }
 0x136   :  { %v519_v54 = vmul.f32 %v1773_v47, %v518_v49 }
 0x137   :  { %v532_v20 = vmul.f32 %v1771_v34, %v531_v3 }
 0x138   :  { %v2708_v39 = vpop.f32.mrf.mxu1  ;;  %v520_v53 = vmul.f32 0.5, %v519_v54 }
 0x139   :  { %v2710_v58 = vsel %vm535_vm8, %v1771_v34, %v532_v20  ;;  %v295_v56 = vpop.xlane.xlu2 %294  ;;  %v1677_v20 = vld [vmem:[#allocation7 + $0x18] sm:$0xff] }
 0x13a   :  { %v521_v28 = vsub.f32 1.5, %v520_v53  ;;  %v331_v25 = vmax.f32 %v295_v56, 1e-24  ;;  %v635_v19 = vmul.f32 %v2710_v58, %v2982_v15 }
 0x13c   :  { %v298_v43 = vpop.xlane.xlu0 %297  ;;  %v522_v7 = vmul.f32 %v1773_v47, %v521_v28  ;;  %vm543_vm13 = vweird.f32 %v331_v25 }
 0x13d   :  { %v332_v29 = vmax.f32 %v298_v43, 1e-24 }
 0x13e   :  { %v2712_v23 = vsel %vm525_vm11, %v1773_v47, %v522_v7  ;;  %v1678_v47 = vld [vmem:[#allocation7 + $0x20] sm:$0xff] }
 0x13f   :  { %1774 = vrsqrt.f32 %v332_v29  ;;  %v633_v18 = vmul.f32 %v2712_v23, %v2377_v22  ;;  %vm553_vm12 = vweird.f32 %v332_v29  ;;  %v816_v24 = vpop.f32.mrf.mxu0 }
 0x140   :  { %v2716_v0 = vpop.f32.mrf.mxu1  ;;  %1776 = vrsqrt.f32 %v331_v25 }
 0x141   :  { %v667_v55 = vpack.c.bf16 %v635_v19, %v633_v18  ;;  %v1676_v18 = vld [vmem:[#allocation7 + $0x10] sm:$0xff] }
 0x143   :  { %914 = vmatmul.bf16.gmra.mxu1 %v660_v2  ;;  %860 = vmatmul.bf16.gmra.mxu2 %v667_v55  ;;  %v1679_v2 = vld [vmem:[#allocation7 + $0x28] sm:$0xff]  ;;  %v301_v36 = vpop.xlane.xlu1 %300 }
 0x144   :  { %v333_v9 = vmax.f32 %v301_v36, 1e-24  ;;  %v304_v52 = vpop.xlane.xlu2 %303  ;;  %1064 = vmatpush.bf16.msrb.mxu2 %v1679_v2 }
 0x145   :  { %v1775_v50 = vpop.eup %1774  ;;  %v334_v61 = vmax.f32 %v304_v52, 1e-24 }
 0x146   :  { %v1777_v51 = vpop.eup %1776  ;;  %v548_v60 = vmul.f32 %v1775_v50, %v332_v29  ;;  %vm554_vm0 = vweird.f32 %v1775_v50  ;;  %1778 = vrsqrt.f32 %v333_v9  ;;  %vm563_vm2 = vweird.f32 %v333_v9 }
 0x147   :  { %v538_v22 = vmul.f32 %v1777_v51, %v331_v25  ;;  %vm544_vm14 = vweird.f32 %v1777_v51  ;;  %1780 = vrsqrt.f32 %v334_v61  ;;  %vm555_vm15 = vmor %vm553_vm12, %vm554_vm0  ;;  %vm573_vm4 = vweird.f32 %v334_v61  ;;  %v818_v44 = vpop.f32.mrf.mxu0 }
 0x148   :  { %v2729_v4 = vpop.f32.mrf.mxu1  ;;  %v549_v1 = vmul.f32 %v1775_v50, %v548_v60  ;;  %vm545_vm1 = vmor %vm543_vm13, %vm544_vm14  ;;  %1065 = vmatpush.bf16.msrb.mxu2 %v1678_v47 }
 0x149   :  { %v539_v6 = vmul.f32 %v1777_v51, %v538_v22  ;;  %v1674_v22 = vld [vmem:[#allocation7] sm:$0xff] }
 0x14a   :  { %v550_v11 = vmul.f32 0.5, %v549_v1 }
 0x14b   :  { %v540_v40 = vmul.f32 0.5, %v539_v6 }
 0x14c   :  { %v551_v34 = vsub.f32 1.5, %v550_v11  ;;  %v1779_v3 = vpop.eup %1778  ;;  %1066 = vmatpush.bf16.msrb.mxu2 %v1677_v20  ;;  %v310_v55 = vpop.xlane.xlu1 %309 }
 0x14d   :  { %v541_v32 = vsub.f32 1.5, %v540_v40  ;;  %v1781_v28 = vpop.eup %1780  ;;  %v558_v43 = vmul.f32 %v1779_v3, %v333_v9  ;;  %v307_v8 = vpop.xlane.xlu0 %306  ;;  %vm564_vm3 = vweird.f32 %v1779_v3 }
 0x14e   :  { %v552_v49 = vmul.f32 %v1775_v50, %v551_v34  ;;  %v568_v7 = vmul.f32 %v1781_v28, %v334_v61  ;;  %vm574_vm5 = vweird.f32 %v1781_v28  ;;  %vm565_vm6 = vmor %vm563_vm2, %vm564_vm3 }
 0x14f   :  { %v542_v63 = vmul.f32 %v1777_v51, %v541_v32  ;;  %vm575_vm7 = vmor %vm573_vm4, %vm574_vm5  ;;  %v821_v20 = vpop.f32.mrf.mxu0 }
 0x150   :  { %v2733_v38 = vpop.f32.mrf.mxu1  ;;  %v2740_v53 = vsel %vm555_vm15, %v1775_v50, %v552_v49  ;;  %v569_v29 = vmul.f32 %v1781_v28, %v568_v7  ;;  %1067 = vmatpush.bf16.msrb.mxu2 %v1676_v18  ;;  %v336_v50 = vmax.f32 %v310_v55, 1e-24  ;;  %v2985_v18 = vld [vmem:[#allocation27_spill] sm:$0xff] }
 0x151   :  { %v2738_v54 = vsel %vm545_vm1, %v1777_v51, %v542_v63  ;;  %v639_v16 = vmul.f32 %v2740_v53, %v2544_v26  ;;  %v335_v51 = vmax.f32 %v307_v8, 1e-24  ;;  %v634_v55 = vmul.f32 %v2712_v23, %v2985_v18  ;;  %v2986_v8 = vld [vmem:[#allocation26_spill] sm:$0xff] }
 0x152   :  { %v637_v56 = vmul.f32 %v2738_v54, %v2556_v10  ;;  %v570_v19 = vmul.f32 0.5, %v569_v29  ;;  %v1675_v10 = vld [vmem:[#allocation7 + $0x8] sm:$0xff]  ;;  %1782 = vrsqrt.f32 %v336_v50  ;;  %vm593_vm8 = vweird.f32 %v336_v50 }
 0x153   :  { %919 = vmatmul.bf16.gmra.mxu1 %v662_v14  ;;  %v559_v14 = vmul.f32 %v1779_v3, %v558_v43  ;;  %1784 = vrsqrt.f32 %v335_v51  ;;  %vm583_vm10 = vweird.f32 %v335_v51  ;;  %v640_v23 = vmul.f32 %v2740_v53, %v2554_v27 }
 0x154   :  { %v669_v25 = vpack.c.bf16 %v639_v16, %v637_v56  ;;  %v571_v12 = vsub.f32 1.5, %v570_v19  ;;  %1068 = vmatpush.bf16.msrb.mxu2 %v1675_v10 }
 0x155   :  { %v560_v15 = vmul.f32 0.5, %v559_v14 }
 0x156   :  { %865 = vmatmul.bf16.vlgmr.msra.gmra.mxu3 %v669_v25  ;;  %v572_v5 = vmul.f32 %v1781_v28, %v571_v12 }
 0x157   :  { %v561_v26 = vsub.f32 1.5, %v560_v15 }
 0x158   :  { %v2746_v30 = vpop.f32.mrf.mxu1  ;;  %v1783_v6 = vpop.eup %1782  ;;  %1069 = vmatpush.bf16.msrb.mxu2 %v1674_v22  ;;  %v2755_v2 = vsel %vm575_vm7, %v1781_v28, %v572_v5 }
 0x159   :  { %v562_v1 = vmul.f32 %v1779_v3, %v561_v26  ;;  %v1785_v40 = vpop.eup %1784  ;;  %v588_v36 = vmul.f32 %v1783_v6, %v336_v50  ;;  %v643_v61 = vmul.f32 %v2755_v2, %v2635_v13  ;;  %vm594_vm9 = vweird.f32 %v1783_v6  ;;  %v2766_v13 = vld [vmem:[%s2924_s2] ss:$0 sm:$0xff] }
 0x15a   :  { %v578_v52 = vmul.f32 %v1785_v40, %v335_v51  ;;  %vm584_vm11 = vweird.f32 %v1785_v40  ;;  %vm595_vm12 = vmor %vm593_vm8, %vm594_vm9  ;;  %v817_v56 = vadd.f32 %v2766_v13, %v816_v24  ;;  %v819_v15 = vadd.f32 %v2766_v13, %v818_v44 }
 0x15b   :  { %v2753_v11 = vsel %vm565_vm6, %v1779_v3, %v562_v1  ;;  %vm585_vm0 = vmor %vm583_vm10, %vm584_vm11  ;;  %v636_v50 = vmul.f32 %v2710_v58, %v2986_v8  ;;  %v822_v26 = vadd.f32 %v2766_v13, %v821_v20  ;;  %v638_v58 = vmul.f32 %v2738_v54, %v2558_v46 }
 0x15c   :  { %v641_v9 = vmul.f32 %v2753_v11, %v2631_v45  ;;  %v579_v34 = vmul.f32 %v1785_v40, %v578_v52  ;;  %v642_v27 = vmul.f32 %v2753_v11, %v2633_v41  ;;  %v644_v46 = vmul.f32 %v2755_v2, %v2639_v48 }
 0x15d   :  { %v668_v24 = vpack.c.bf16 %v636_v50, %v634_v55  ;;  %v839_v18 = vadd.f32 %v2766_v13, %v2708_v39  ;;  %v1696_v50 = vld [vmem:[#allocation10 + $0x74] sm:$0xf]  ;;  %v844_v39 = vadd.f32 %v2766_v13, %v2729_v4  ;;  %v847_v4 = vadd.f32 %v2766_v13, %v2733_v38  ;;  %v1630_v38 = vld [vmem:[#allocation10 + $0x48] sm:$0xf0] }
 0x15e   :  { %v671_v32 = vpack.c.bf16 %v643_v61, %v641_v9  ;;  %v580_v63 = vmul.f32 0.5, %v579_v34  ;;  %v670_v61 = vpack.c.bf16 %v640_v23, %v638_v58 }
 0x160   :  { %v2748_v60 = vpop.f32.mrf.mxu1  ;;  %v581_v3 = vsub.f32 1.5, %v580_v63 }
 0x162   :  { %v582_v28 = vmul.f32 %v1785_v40, %v581_v3 }
 0x163   :  { %924 = vmatmul.bf16.gmra.mxu1 %v664_v62  ;;  %v589_v62 = vmul.f32 %v1783_v6, %v588_v36 }
 0x164   :  { %v2772_v7 = vsel %vm585_vm0, %v1785_v40, %v582_v28 }
 0x165   :  { %v590_v47 = vmul.f32 0.5, %v589_v62  ;;  %v645_v29 = vmul.f32 %v2772_v7, %v2671_v59  ;;  %v646_v41 = vmul.f32 %v2772_v7, %v2673_v37 }
 0x166   :  { %870 = vmatmul.bf16.gmra.mxu3 %v671_v32 }
 0x167   :  { %v591_v49 = vsub.f32 1.5, %v590_v47 }
 0x168   :  { %v2761_v31 = vpop.f32.mrf.mxu1 }
 0x169   :  { %v592_v43 = vmul.f32 %v1783_v6, %v591_v49 }
 0x16b   :  { %v2774_v16 = vsel %vm595_vm12, %v1783_v6, %v592_v43 }
 0x16c   :  { %v647_v25 = vmul.f32 %v2774_v16, %v2667_v33  ;;  %v648_v48 = vmul.f32 %v2774_v16, %v2669_v35 }
 0x16e   :  { %v673_v17 = vpack.c.bf16 %v647_v25, %v645_v29 }
 0x170   :  { %v890_v45 = vpop.f32.mrf.mxu1 }
 0x171   :  { %v891_v14 = vadd.f32 %v890_v45, %v817_v56  ;;  %v672_v45 = vpack.c.bf16 %v644_v46, %v642_v27 }
 0x173   :  { %929 = vmatmul.bf16.gmra.mxu1 %v666_v57  ;;  %1786 = vtanh.f32 %v891_v14  ;;  %v823_v57 = vpop.f32.mrf.mxu0 }
 0x174   :  { %v824_v1 = vadd.f32 %v2766_v13, %v823_v57 }
 0x176   :  { %875 = vmatmul.bf16.gmra.mxu3 %v673_v17 }
 0x178   :  { %v892_v19 = vpop.f32.mrf.mxu1 }
 0x179   :  { %v893_v21 = vadd.f32 %v892_v19, %v819_v15  ;;  %v1787_v51 = vpop.eup %1786  ;;  %v674_v19 = vpack.c.bf16 %v648_v48, %v646_v41  ;;  %v1620_v41 = vld [vmem:[#allocation10 + $0x30] sm:$0xf]  ;;  %v852_v48 = vadd.f32 %v2766_v13, %v2748_v60  ;;  %v1614_v60 = vld [vmem:[#allocation10 + $0x28] sm:$0xf0] }
 0x17b   :  { %1788 = vtanh.f32 %v893_v21  ;;  %v826_v12 = vpop.f32.mrf.mxu0  ;;  %v837_v21 = vadd.f32 %v2766_v13, %v2703_v42 }
 0x17c   :  { %v827_v62 = vadd.f32 %v2766_v13, %v826_v12  ;;  %v1646_v12 = vld [vmem:[#allocation10 + $0x68] sm:$0xf0] }
 0x180   :  { %v895_v59 = vpop.f32.mrf.mxu1 }
 0x181   :  { %v1789_v10 = vpop.eup %1788  ;;  %v896_v22 = vadd.f32 %v895_v59, %v822_v26  ;;  %v842_v59 = vadd.f32 %v2766_v13, %v2716_v0  ;;  %v1694_v26 = vld [vmem:[#allocation10 + $0x64] sm:$0xf] }
 0x182   :  { %v981_v33 = vpack.c.bf16 %v1789_v10, %v1787_v51  ;;  %v1654_v51 = vld [vmem:[#allocation10 + $0x78] sm:$0xf0] }
 0x183   :  { %934 = vmatmul.bf16.gmra.mxu1 %v668_v24  ;;  %1790 = vtanh.f32 %v896_v22  ;;  %v828_v36 = vpop.f32.mrf.mxu0  ;;  %v1657_v42 = vor.u32 %v1696_v50, %v1654_v51  ;;  %v1652_v22 = vld [vmem:[#allocation10 + $0x70] sm:$0xf] }
 0x184   :  { %1070 = vmatmul.bf16.vlgmr.msrb.gmra.mxu2 %v981_v33  ;;  %v829_v32 = vadd.f32 %v2766_v13, %v828_v36  ;;  %v1644_v36 = vld [vmem:[#allocation10 + $0x60] sm:$0xf] }
 0x185   :  { %1351 = vmatpush.bf16.msrb.mxu0 %v1657_v42  ;;  %v1604_v42 = vld [vmem:[#allocation10 + $0x10] sm:$0xf] }
 0x188   :  { %v897_v5 = vpop.f32.mrf.mxu1 }
 0x189   :  { %v898_v6 = vadd.f32 %v897_v5, %v824_v1  ;;  %v1791_v40 = vpop.eup %1790  ;;  %v1649_v1 = vor.u32 %v1694_v26, %v1646_v12  ;;  %v1697_v5 = vld [vmem:[#allocation10 + $0x74] sm:$0xf0]  ;;  %v1596_v12 = vld [vmem:[#allocation10] sm:$0xf] }
 0x18b   :  { %1792 = vtanh.f32 %v898_v6  ;;  %v831_v49 = vpop.f32.mrf.mxu0  ;;  %v1653_v6 = vor.u32 %v1697_v5, %v1652_v22  ;;  %1352 = vmatpush.bf16.msrb.mxu0 %v1649_v1  ;;  %v1683_v22 = vld [vmem:[#allocation10 + $0x4] sm:$0xf0] }
 0x18c   :  { %v832_v28 = vadd.f32 %v2766_v13, %v831_v49  ;;  %v849_v49 = vadd.f32 %v2766_v13, %v2746_v30  ;;  %v1688_v30 = vld [vmem:[#allocation10 + $0x34] sm:$0xf]  ;;  %v1597_v5 = vor.u32 %v1683_v22, %v1596_v12 }
 0x18d   :  { %1277 = vmatpush.bf16.msrb.mxu3 %v1653_v6 }
 0x190   :  { %v900_v9 = vpop.f32.mrf.mxu1 }
 0x191   :  { %v1793_v52 = vpop.eup %1792  ;;  %v901_v34 = vadd.f32 %v900_v9, %v827_v62  ;;  %v1695_v9 = vld [vmem:[#allocation10 + $0x64] sm:$0xf0]  ;;  %v1636_v62 = vld [vmem:[#allocation10 + $0x50] sm:$0xf] }
 0x192   :  { %v982_v44 = vpack.c.bf16 %v1793_v52, %v1791_v40  ;;  %v1692_v52 = vld [vmem:[#allocation10 + $0x54] sm:$0xf] }
 0x193   :  { %939 = vmatmul.bf16.gmra.mxu1 %v670_v61  ;;  %1794 = vtanh.f32 %v901_v34  ;;  %v833_v43 = vpop.f32.mrf.mxu0  ;;  %v1645_v61 = vor.u32 %v1695_v9, %v1644_v36  ;;  %v1693_v34 = vld [vmem:[#allocation10 + $0x54] sm:$0xf0]  ;;  %v1598_v36 = vld [vmem:[#allocation10 + $0x8] sm:$0xf0] }
 0x194   :  { %1075 = vmatmul.bf16.gmra.mxu2 %v982_v44  ;;  %v834_v14 = vadd.f32 %v2766_v13, %v833_v43  ;;  %v1638_v44 = vld [vmem:[#allocation10 + $0x58] sm:$0xf0] }
 0x195   :  { %1278 = vmatpush.bf16.msrb.mxu3 %v1645_v61 }
 0x198   :  { %v902_v47 = vpop.f32.mrf.mxu1 }
 0x199   :  { %v903_v63 = vadd.f32 %v902_v47, %v829_v32  ;;  %v1795_v54 = vpop.eup %1794  ;;  %v1641_v32 = vor.u32 %v1692_v52, %v1638_v44 }
 0x19b   :  { %1796 = vtanh.f32 %v903_v63  ;;  %v1637_v63 = vor.u32 %v1693_v34, %v1636_v62  ;;  %1353 = vmatpush.bf16.msrb.mxu0 %v1641_v32 }
 0x19d   :  { %1279 = vmatpush.bf16.msrb.mxu3 %v1637_v63 }
 0x1a0   :  { %v905_v53 = vpop.f32.mrf.mxu1 }
 0x1a1   :  { %v1797_v3 = vpop.eup %1796  ;;  %v906_v56 = vadd.f32 %v905_v53, %v832_v28  ;;  %v1628_v53 = vld [vmem:[#allocation10 + $0x40] sm:$0xf] }
 0x1a2   :  { %v983_v20 = vpack.c.bf16 %v1797_v3, %v1795_v54  ;;  %v1690_v54 = vld [vmem:[#allocation10 + $0x44] sm:$0xf] }
 0x1a3   :  { %944 = vmatmul.bf16.gmra.mxu1 %v672_v45  ;;  %1798 = vtanh.f32 %v906_v56  ;;  %v1633_v3 = vor.u32 %v1690_v54, %v1630_v38  ;;  %v1691_v45 = vld [vmem:[#allocation10 + $0x44] sm:$0xf0] }
 0x1a4   :  { %1080 = vmatmul.bf16.gmra.mxu2 %v983_v20  ;;  %v1629_v20 = vor.u32 %v1691_v45, %v1628_v53 }
 0x1a5   :  { %1354 = vmatpush.bf16.msrb.mxu0 %v1633_v3 }
 0x1a6   :  { %1280 = vmatpush.bf16.msrb.mxu3 %v1629_v20 }
 0x1a8   :  { %v907_v29 = vpop.f32.mrf.mxu1 }
 0x1a9   :  { %v908_v25 = vadd.f32 %v907_v29, %v834_v14  ;;  %v1799_v11 = vpop.eup %1798  ;;  %v856_v14 = vpop.f32.mrf.mxu2 }
 0x1ab   :  { %1800 = vtanh.f32 %v908_v25  ;;  %v1622_v25 = vld [vmem:[#allocation10 + $0x38] sm:$0xf0] }
 0x1b0   :  { %v910_v2 = vpop.f32.mrf.mxu1 }
 0x1b1   :  { %v1801_v15 = vpop.eup %1800  ;;  %v911_v57 = vadd.f32 %v910_v2, %v837_v21  ;;  %v1689_v2 = vld [vmem:[#allocation10 + $0x34] sm:$0xf0] }
 0x1b2   :  { %v984_v17 = vpack.c.bf16 %v1801_v15, %v1799_v11  ;;  %v1625_v11 = vor.u32 %v1688_v30, %v1622_v25  ;;  %v1621_v15 = vor.u32 %v1689_v2, %v1620_v41 }
 0x1b3   :  { %949 = vmatmul.bf16.gmra.mxu1 %v674_v19  ;;  %1802 = vtanh.f32 %v911_v57 }
 0x1b4   :  { %1085 = vmatmul.bf16.gmra.mxu2 %v984_v17  ;;  %1355 = vmatpush.bf16.msrb.mxu0 %v1625_v11  ;;  %v854_v17 = vadd.f32 %v2766_v13, %v2761_v31  ;;  %v1685_v31 = vld [vmem:[#allocation10 + $0x14] sm:$0xf0] }
 0x1b5   :  { %1281 = vmatpush.bf16.msrb.mxu3 %v1621_v15 }
 0x1b8   :  { %v912_v55 = vpop.f32.mrf.mxu1 }
 0x1b9   :  { %v913_v8 = vadd.f32 %v912_v55, %v839_v18  ;;  %v1803_v37 = vpop.eup %1802  ;;  %v858_v18 = vpop.f32.mrf.mxu2  ;;  %v1612_v55 = vld [vmem:[#allocation10 + $0x20] sm:$0xf] }
 0x1bb   :  { %1804 = vtanh.f32 %v913_v8  ;;  %v1687_v8 = vld [vmem:[#allocation10 + $0x24] sm:$0xf0] }
 0x1c0   :  { %v915_v35 = vpop.f32.mrf.mxu1 }
 0x1c1   :  { %v1805_v7 = vpop.eup %1804  ;;  %v916_v10 = vadd.f32 %v915_v35, %v842_v59  ;;  %v1613_v35 = vor.u32 %v1687_v8, %v1612_v55 }
 0x1c2   :  { %v985_v16 = vpack.c.bf16 %v1805_v7, %v1803_v37  ;;  %v1686_v37 = vld [vmem:[#allocation10 + $0x24] sm:$0xf] }
 0x1c3   :  { %1806 = vtanh.f32 %v916_v10  ;;  %v1617_v7 = vor.u32 %v1686_v37, %v1614_v60  ;;  %1282 = vmatpush.bf16.msrb.mxu3 %v1613_v35  ;;  %v1605_v10 = vor.u32 %v1685_v31, %v1604_v42 }
 0x1c4   :  { %1090 = vmatmul.bf16.gmra.mxu2 %v985_v16 }
 0x1c5   :  { %1356 = vmatpush.bf16.msrb.mxu0 %v1617_v7 }
 0x1c6   :  { %v861_v1 = vpop.f32.mrf.mxu2 }
 0x1c7   :  { %1283 = vmatpush.bf16.msrb.mxu3 %v1605_v10  ;;  %v862_v32 = vadd.f32 %v2766_v13, %v861_v1 }
 0x1c8   :  { %v917_v24 = vpop.f32.mrf.mxu1 }
 0x1c9   :  { %v918_v33 = vadd.f32 %v917_v24, %v844_v39  ;;  %v1807_v0 = vpop.eup %1806  ;;  %v1684_v39 = vld [vmem:[#allocation10 + $0x14] sm:$0xf]  ;;  %v1606_v24 = vld [vmem:[#allocation10 + $0x18] sm:$0xf0] }
 0x1ca   :  { %v1609_v26 = vor.u32 %v1684_v39, %v1606_v24 }
 0x1cb   :  { %1808 = vtanh.f32 %v918_v33  ;;  %v857_v33 = vadd.f32 %v2766_v13, %v856_v14  ;;  %1284 = vmatpush.bf16.msrb.mxu3 %v1597_v5 }
 0x1cc   :  { %1357 = vmatpush.bf16.msrb.mxu0 %v1609_v26 }
 0x1ce   :  { %v863_v52 = vpop.f32.mrf.mxu2 }
 0x1cf   :  { %v864_v63 = vadd.f32 %v2766_v13, %v863_v52 }
 0x1d0   :  { %v920_v58 = vpop.f32.mrf.mxu1 }
 0x1d1   :  { %v1809_v23 = vpop.eup %1808  ;;  %v921_v47 = vadd.f32 %v920_v58, %v847_v4 }
 0x1d2   :  { %v986_v40 = vpack.c.bf16 %v1809_v23, %v1807_v0  ;;  %v859_v0 = vadd.f32 %v2766_v13, %v858_v18 }
 0x1d3   :  { %1810 = vtanh.f32 %v921_v47 }
 0x1d4   :  { %1095 = vmatmul.bf16.gmra.mxu2 %v986_v40  ;;  %v1682_v40 = vld [vmem:[#allocation10 + $0x4] sm:$0xf] }
 0x1d5   :  { %v1601_v9 = vor.u32 %v1682_v40, %v1598_v36 }
 0x1d7   :  { %1358 = vmatpush.bf16.msrb.mxu0 %v1601_v9 }
 0x1d8   :  { %v922_v27 = vpop.f32.mrf.mxu1 }
 0x1d9   :  { %v923_v46 = vadd.f32 %v922_v27, %v849_v49  ;;  %v1811_v28 = vpop.eup %1810  ;;  %v866_v62 = vpop.f32.mrf.mxu3 }
 0x1da   :  { %v867_v14 = vadd.f32 %v2766_v13, %v866_v62 }
 0x1db   :  { %1812 = vtanh.f32 %v923_v46  ;;  %v2823_v46 = vld [vmem:[#allocation8] ss:$0 sm:$0xff] }
 0x1e0   :  { %v925_v43 = vpop.f32.mrf.mxu1 }
 0x1e1   :  { %v1813_v56 = vpop.eup %1812  ;;  %v926_v19 = vadd.f32 %v925_v43, %v852_v48  ;;  %v868_v38 = vpop.f32.mrf.mxu3 }
 0x1e2   :  { %v987_v29 = vpack.c.bf16 %v1813_v56, %v1811_v28  ;;  %v869_v41 = vadd.f32 %v2766_v13, %v868_v38 }
 0x1e3   :  { %1814 = vtanh.f32 %v926_v19 }
 0x1e4   :  { %1100 = vmatmul.bf16.gmra.mxu2 %v987_v29 }
 0x1e8   :  { %v927_v21 = vpop.f32.mrf.mxu1 }
 0x1e9   :  { %v928_v57 = vadd.f32 %v927_v21, %v854_v17  ;;  %v1815_v16 = vpop.eup %1814  ;;  %v871_v29 = vpop.f32.mrf.mxu3 }
 0x1ea   :  { %v872_v60 = vadd.f32 %v2766_v13, %v871_v29 }
 0x1eb   :  { %1816 = vtanh.f32 %v928_v57 }
 0x1f0   :  { %v930_v50 = vpop.f32.mrf.mxu1 }
 0x1f1   :  { %v1817_v51 = vpop.eup %1816  ;;  %v931_v6 = vadd.f32 %v930_v50, %v857_v33  ;;  %v873_v18 = vpop.f32.mrf.mxu3 }
 0x1f2   :  { %v988_v59 = vpack.c.bf16 %v1817_v51, %v1815_v16  ;;  %v874_v50 = vadd.f32 %v2766_v13, %v873_v18 }
 0x1f3   :  { %1818 = vtanh.f32 %v931_v6 }
 0x1f4   :  { %1105 = vmatmul.bf16.gmra.mxu2 %v988_v59 }
 0x1f8   :  { %v932_v58 = vpop.f32.mrf.mxu1 }
 0x1f9   :  { %v933_v23 = vadd.f32 %v932_v58, %v859_v0  ;;  %v1819_v4 = vpop.eup %1818  ;;  %v876_v39 = vpop.f32.mrf.mxu3 }
 0x1fa   :  { %v877_v6 = vadd.f32 %v2766_v13, %v876_v39 }
 0x1fb   :  { %1820 = vtanh.f32 %v933_v23 }
 0x200   :  { %v935_v61 = vpop.f32.mrf.mxu1 }
 0x201   :  { %v1821_v44 = vpop.eup %1820  ;;  %v936_v47 = vadd.f32 %v935_v61, %v862_v32  ;;  %v878_v0 = vpop.f32.mrf.mxu3 }
 0x202   :  { %v989_v34 = vpack.c.bf16 %v1821_v44, %v1819_v4  ;;  %v879_v40 = vadd.f32 %v2766_v13, %v878_v0 }
 0x203   :  { %1822 = vtanh.f32 %v936_v47 }
 0x204   :  { %1110 = vmatmul.bf16.gmra.mxu2 %v989_v34 }
 0x207   :  { %v1071_v49 = vpop.f32.mrf.mxu2 }
 0x208   :  { %v937_v27 = vpop.f32.mrf.mxu1  ;;  %v1072_v53 = vadd.f32 %v2823_v46, %v1071_v49 }
 0x209   :  { %v938_v54 = vadd.f32 %v937_v27, %v864_v63  ;;  %v1823_v45 = vpop.eup %1822 }
 0x20b   :  { %1824 = vtanh.f32 %v938_v54 }
 0x20c   :  { %1826 = vtanh.f32 %v1072_v53 }
 0x20f   :  { %v1073_v3 = vpop.f32.mrf.mxu2 }
 0x210   :  { %v1074_v20 = vadd.f32 %v2823_v46, %v1073_v3  ;;  %v940_v28 = vpop.f32.mrf.mxu1 }
 0x211   :  { %v1825_v43 = vpop.eup %1824  ;;  %v941_v30 = vadd.f32 %v940_v28, %v867_v14 }
 0x212   :  { %1828 = vtanh.f32 %v1074_v20  ;;  %v990_v56 = vpack.c.bf16 %v1825_v43, %v1823_v45  ;;  %v1827_v25 = vpop.eup %1826 }
 0x213   :  { %1830 = vtanh.f32 %v941_v30 }
 0x214   :  { %1115 = vmatmul.bf16.gmra.mxu2 %v990_v56 }
 0x217   :  { %v1076_v48 = vpop.f32.mrf.mxu2 }
 0x218   :  { %v1829_v11 = vpop.eup %1828  ;;  %v942_v2 = vpop.f32.mrf.mxu1  ;;  %v1077_v17 = vadd.f32 %v2823_v46, %v1076_v48 }
 0x219   :  { %v943_v15 = vadd.f32 %v942_v2, %v869_v41  ;;  %v1162_v19 = vpack.c.bf16 %v1829_v11, %v1827_v25  ;;  %v1831_v57 = vpop.eup %1830 }
 0x21b   :  { %1832 = vtanh.f32 %v943_v15  ;;  %1285 = vmatmul.bf16.vlgmr.msrb.gmra.mxu3 %v1162_v19  ;;  %1359 = vmatmul.bf16.vlgmr.msrb.gmra.mxu0 %v1162_v19 }
 0x21c   :  { %1834 = vtanh.f32 %v1077_v17 }
 0x21f   :  { %v1078_v21 = vpop.f32.mrf.mxu2 }
 0x220   :  { %v1079_v55 = vadd.f32 %v2823_v46, %v1078_v21  ;;  %v945_v8 = vpop.f32.mrf.mxu1 }
 0x221   :  { %v1833_v37 = vpop.eup %1832  ;;  %v946_v7 = vadd.f32 %v945_v8, %v872_v60 }
 0x222   :  { %1836 = vtanh.f32 %v1079_v55  ;;  %v991_v35 = vpack.c.bf16 %v1833_v37, %v1831_v57  ;;  %v1835_v16 = vpop.eup %1834 }
 0x223   :  { %1838 = vtanh.f32 %v946_v7 }
 0x224   :  { %1120 = vmatmul.bf16.gmra.mxu2 %v991_v35 }
 0x227   :  { %v1081_v51 = vpop.f32.mrf.mxu2 }
 0x228   :  { %v1837_v59 = vpop.eup %1836  ;;  %v947_v42 = vpop.f32.mrf.mxu1  ;;  %v1082_v24 = vadd.f32 %v2823_v46, %v1081_v51 }
 0x229   :  { %v948_v31 = vadd.f32 %v947_v42, %v874_v50  ;;  %v1163_v10 = vpack.c.bf16 %v1837_v59, %v1835_v16  ;;  %v1839_v26 = vpop.eup %1838 }
 0x22b   :  { %1840 = vtanh.f32 %v948_v31  ;;  %1290 = vmatmul.bf16.gmra.mxu3 %v1163_v10  ;;  %1364 = vmatmul.bf16.gmra.mxu0 %v1163_v10  ;;  %v1191_v10 = vld [vmem:[%s2928_s6] sm:$0x3]  ;;  %s2051_s6 = smov [#allocation11]  }
 0x22c   :  { %1842 = vtanh.f32 %v1082_v24  ;;  %s1481_s28 = sshll.u32 %s2051_s6, 4  ;;  %s1482_s28 = int_to_ptr.vmem [resolvable:$true] %s1481_s28 }
 0x22f   :  { %v1083_v33 = vpop.f32.mrf.mxu2 }
 0x230   :  { %v1084_v12 = vadd.f32 %v2823_v46, %v1083_v33  ;;  %v950_v22 = vpop.f32.mrf.mxu1  ;;  %v2852_v33 = vperm.slane %v1191_v10, 1 }
 0x231   :  { %v1841_v1 = vpop.eup %1840  ;;  %v951_v58 = vadd.f32 %v950_v22, %v877_v6 }
 0x232   :  { %1844 = vtanh.f32 %v1084_v12  ;;  %v992_v5 = vpack.c.bf16 %v1841_v1, %v1839_v26  ;;  %v1843_v23 = vpop.eup %1842  ;;  %v2854_v26 = vperm.slane %v1191_v10, 0 }
 0x233   :  { %1846 = vtanh.f32 %v951_v58 }
 0x234   :  { %1125 = vmatmul.bf16.gmra.mxu2 %v992_v5 }
 0x237   :  { %v1086_v36 = vpop.f32.mrf.mxu2 }
 0x238   :  { %v1845_v9 = vpop.eup %1844  ;;  %v952_v52 = vpop.f32.mrf.mxu1  ;;  %v1087_v44 = vadd.f32 %v2823_v46, %v1086_v36 }
 0x239   :  { %v953_v4 = vadd.f32 %v952_v52, %v879_v40  ;;  %v1164_v61 = vpack.c.bf16 %v1845_v9, %v1843_v23  ;;  %v1847_v34 = vpop.eup %1846 }
 0x23b   :  { %1848 = vtanh.f32 %v953_v4  ;;  %1295 = vmatmul.bf16.gmra.mxu3 %v1164_v61  ;;  %1369 = vmatmul.bf16.gmra.mxu0 %v1164_v61 }
 0x23c   :  { %1850 = vtanh.f32 %v1087_v44 }
 0x23f   :  { %v1088_v62 = vpop.f32.mrf.mxu2 }
 0x240   :  { %v1089_v32 = vadd.f32 %v2823_v46, %v1088_v62 }
 0x241   :  { %v1849_v47 = vpop.eup %1848 }
 0x242   :  { %1852 = vtanh.f32 %v1089_v32  ;;  %v993_v63 = vpack.c.bf16 %v1849_v47, %v1847_v34  ;;  %v1851_v13 = vpop.eup %1850 }
 0x244   :  { %1130 = vmatmul.bf16.gmra.mxu2 %v993_v63 }
 0x247   :  { %v1091_v49 = vpop.f32.mrf.mxu2 }
 0x248   :  { %v1853_v27 = vpop.eup %1852  ;;  %v1092_v38 = vadd.f32 %v2823_v46, %v1091_v49 }
 0x249   :  { %v1165_v54 = vpack.c.bf16 %v1853_v27, %v1851_v13 }
 0x24a   :  { %1854 = vtanh.f32 %v1092_v38 }
 0x24b   :  { %1300 = vmatmul.bf16.gmra.mxu3 %v1165_v54  ;;  %1374 = vmatmul.bf16.gmra.mxu0 %v1165_v54 }
 0x24f   :  { %v1093_v53 = vpop.f32.mrf.mxu2 }
 0x250   :  { %v1094_v3 = vadd.f32 %v2823_v46, %v1093_v53  ;;  %v1855_v45 = vpop.eup %1854 }
 0x252   :  { %1856 = vtanh.f32 %v1094_v3 }
 0x257   :  { %v1096_v20 = vpop.f32.mrf.mxu2 }
 0x258   :  { %v1857_v28 = vpop.eup %1856  ;;  %v1097_v56 = vadd.f32 %v2823_v46, %v1096_v20 }
 0x259   :  { %v1166_v43 = vpack.c.bf16 %v1857_v28, %v1855_v45 }
 0x25a   :  { %1858 = vtanh.f32 %v1097_v56 }
 0x25b   :  { %1305 = vmatmul.bf16.gmra.mxu3 %v1166_v43  ;;  %1379 = vmatmul.bf16.gmra.mxu0 %v1166_v43 }
 0x25f   :  { %v1098_v14 = vpop.f32.mrf.mxu2 }
 0x260   :  { %v1099_v29 = vadd.f32 %v2823_v46, %v1098_v14  ;;  %v1859_v30 = vpop.eup %1858 }
 0x262   :  { %1860 = vtanh.f32 %v1099_v29 }
 0x267   :  { %v1101_v25 = vpop.f32.mrf.mxu2 }
 0x268   :  { %v1861_v41 = vpop.eup %1860  ;;  %v1102_v11 = vadd.f32 %v2823_v46, %v1101_v25 }
 0x269   :  { %v1167_v48 = vpack.c.bf16 %v1861_v41, %v1859_v30 }
 0x26a   :  { %1862 = vtanh.f32 %v1102_v11 }
 0x26b   :  { %1310 = vmatmul.bf16.gmra.mxu3 %v1167_v48  ;;  %1384 = vmatmul.bf16.gmra.mxu0 %v1167_v48 }
 0x26f   :  { %v1103_v2 = vpop.f32.mrf.mxu2 }
 0x270   :  { %v1104_v15 = vadd.f32 %v2823_v46, %v1103_v2  ;;  %v1863_v19 = vpop.eup %1862 }
 0x272   :  { %1864 = vtanh.f32 %v1104_v15 }
 0x277   :  { %v1106_v17 = vpop.f32.mrf.mxu2 }
 0x278   :  { %v1865_v21 = vpop.eup %1864  ;;  %v1107_v18 = vadd.f32 %v2823_v46, %v1106_v17 }
 0x279   :  { %v1168_v57 = vpack.c.bf16 %v1865_v21, %v1863_v19 }
 0x27a   :  { %1866 = vtanh.f32 %v1107_v18 }
 0x27b   :  { %1315 = vmatmul.bf16.gmra.mxu3 %v1168_v57  ;;  %1389 = vmatmul.bf16.gmra.mxu0 %v1168_v57 }
 0x27f   :  { %v1108_v55 = vpop.f32.mrf.mxu2 }
 0x280   :  { %v1109_v8 = vadd.f32 %v2823_v46, %v1108_v55  ;;  %v1867_v37 = vpop.eup %1866 }
 0x282   :  { %1868 = vtanh.f32 %v1109_v8 }
 0x287   :  { %v1111_v35 = vpop.f32.mrf.mxu2 }
 0x288   :  { %v1869_v60 = vpop.eup %1868  ;;  %v1112_v16 = vadd.f32 %v2823_v46, %v1111_v35 }
 0x289   :  { %v1169_v7 = vpack.c.bf16 %v1869_v60, %v1867_v37 }
 0x28a   :  { %1870 = vtanh.f32 %v1112_v16 }
 0x28b   :  { %1320 = vmatmul.bf16.gmra.mxu3 %v1169_v7  ;;  %1394 = vmatmul.bf16.gmra.mxu0 %v1169_v7 }
 0x28f   :  { %v1113_v50 = vpop.f32.mrf.mxu2 }
 0x290   :  { %v1114_v51 = vadd.f32 %v2823_v46, %v1113_v50  ;;  %v1871_v59 = vpop.eup %1870 }
 0x292   :  { %1872 = vtanh.f32 %v1114_v51 }
 0x297   :  { %v1116_v42 = vpop.f32.mrf.mxu2 }
 0x298   :  { %v1873_v31 = vpop.eup %1872  ;;  %v1360_v39 = vpop.f32.mrf.mxu0  ;;  %v1117_v12 = vadd.f32 %v2823_v46, %v1116_v42 }
 0x299   :  { %v1170_v24 = vpack.c.bf16 %v1873_v31, %v1871_v59  ;;  %v1361_v1 = vadd.f32 %v1360_v39, %v2852_v33 }
 0x29a   :  { %1874 = vtanh.f32 %v1117_v12 }
 0x29b   :  { %1325 = vmatmul.bf16.gmra.mxu3 %v1170_v24  ;;  %1399 = vmatmul.bf16.gmra.mxu0 %v1170_v24 }
 0x29e   :  { %v1286_v22 = vpop.f32.mrf.mxu3 }
 0x29f   :  { %v1287_v5 = vadd.f32 %v1286_v22, %v2854_v26  ;;  %v1118_v6 = vpop.f32.mrf.mxu2 }
 0x2a0   :  { %v1119_v0 = vadd.f32 %v2823_v46, %v1118_v6  ;;  %v1362_v58 = vpop.f32.mrf.mxu0  ;;  %v1875_v36 = vpop.eup %1874 }
 0x2a1   :  { %v1425_v23 = vpack.c.bf16 %v1361_v1, %v1287_v5  ;;  %v1363_v9 = vadd.f32 %v1362_v58, %v2852_v33 }
 0x2a2   :  { %1876 = vtanh.f32 %v1119_v0 }
 0x2a3   :  { %1451 = vst [vmem:[#allocation11] sm:$0xff] %v1425_v23 }
 0x2a6   :  { %v1288_v40 = vpop.f32.mrf.mxu3 }
 0x2a7   :  { %v1289_v52 = vadd.f32 %v1288_v40, %v2854_v26  ;;  %v1121_v4 = vpop.f32.mrf.mxu2 }
 0x2a8   :  { %v1877_v61 = vpop.eup %1876  ;;  %v1365_v44 = vpop.f32.mrf.mxu0  ;;  %v1122_v32 = vadd.f32 %v2823_v46, %v1121_v4 }
 0x2a9   :  { %v1426_v62 = vpack.c.bf16 %v1363_v9, %v1289_v52  ;;  %v1171_v34 = vpack.c.bf16 %v1877_v61, %v1875_v36  ;;  %v1366_v63 = vadd.f32 %v1365_v44, %v2852_v33 }
 0x2aa   :  { %1878 = vtanh.f32 %v1122_v32 }
 0x2ab   :  { %1452 = vst [vmem:[#allocation11 + $0x8] sm:$0xff] %v1426_v62  ;;  %1330 = vmatmul.bf16.gmra.mxu3 %v1171_v34  ;;  %1404 = vmatmul.bf16.gmra.mxu0 %v1171_v34 }
 0x2ae   :  { %v1291_v47 = vpop.f32.mrf.mxu3 }
 0x2af   :  { %v1292_v13 = vadd.f32 %v1291_v47, %v2854_v26  ;;  %v1123_v49 = vpop.f32.mrf.mxu2 }
 0x2b0   :  { %v1124_v27 = vadd.f32 %v2823_v46, %v1123_v49  ;;  %v1367_v54 = vpop.f32.mrf.mxu0  ;;  %v1879_v3 = vpop.eup %1878 }
 0x2b1   :  { %v1427_v38 = vpack.c.bf16 %v1366_v63, %v1292_v13  ;;  %v1368_v45 = vadd.f32 %v1367_v54, %v2852_v33 }
 0x2b2   :  { %1880 = vtanh.f32 %v1124_v27 }
 0x2b3   :  { %1453 = vst [vmem:[#allocation11 + $0x10] sm:$0xff] %v1427_v38 }
 0x2b6   :  { %v1293_v53 = vpop.f32.mrf.mxu3 }
 0x2b7   :  { %v1294_v20 = vadd.f32 %v1293_v53, %v2854_v26  ;;  %v1126_v28 = vpop.f32.mrf.mxu2 }
 0x2b8   :  { %v1881_v43 = vpop.eup %1880  ;;  %v1370_v56 = vpop.f32.mrf.mxu0  ;;  %v1127_v30 = vadd.f32 %v2823_v46, %v1126_v28 }
 0x2b9   :  { %v1428_v14 = vpack.c.bf16 %v1368_v45, %v1294_v20  ;;  %v1172_v29 = vpack.c.bf16 %v1881_v43, %v1879_v3  ;;  %v1371_v41 = vadd.f32 %v1370_v56, %v2852_v33 }
 0x2ba   :  { %1882 = vtanh.f32 %v1127_v30 }
 0x2bb   :  { %1454 = vst [vmem:[#allocation11 + $0x18] sm:$0xff] %v1428_v14  ;;  %1335 = vmatmul.bf16.gmra.mxu3 %v1172_v29  ;;  %1409 = vmatmul.bf16.gmra.mxu0 %v1172_v29 }
 0x2be   :  { %v1296_v25 = vpop.f32.mrf.mxu3 }
 0x2bf   :  { %v1297_v48 = vadd.f32 %v1296_v25, %v2854_v26  ;;  %v1128_v11 = vpop.f32.mrf.mxu2 }
 0x2c0   :  { %v1129_v2 = vadd.f32 %v2823_v46, %v1128_v11  ;;  %v1372_v15 = vpop.f32.mrf.mxu0  ;;  %v1883_v21 = vpop.eup %1882 }
 0x2c1   :  { %v1429_v19 = vpack.c.bf16 %v1371_v41, %v1297_v48  ;;  %v1373_v57 = vadd.f32 %v1372_v15, %v2852_v33 }
 0x2c2   :  { %1884 = vtanh.f32 %v1129_v2 }
 0x2c3   :  { %1455 = vst [vmem:[#allocation11 + $0x20] sm:$0xff] %v1429_v19 }
 0x2c6   :  { %v1298_v17 = vpop.f32.mrf.mxu3 }
 0x2c7   :  { %v1299_v18 = vadd.f32 %v1298_v17, %v2854_v26  ;;  %v1131_v55 = vpop.f32.mrf.mxu2 }
 0x2c8   :  { %v1885_v8 = vpop.eup %1884  ;;  %v1375_v37 = vpop.f32.mrf.mxu0  ;;  %v1132_v7 = vadd.f32 %v2823_v46, %v1131_v55 }
 0x2c9   :  { %v1430_v35 = vpack.c.bf16 %v1373_v57, %v1299_v18  ;;  %v1173_v60 = vpack.c.bf16 %v1885_v8, %v1883_v21  ;;  %v1376_v50 = vadd.f32 %v1375_v37, %v2852_v33 }
 0x2ca   :  { %1886 = vtanh.f32 %v1132_v7 }
 0x2cb   :  { %1456 = vst [vmem:[#allocation11 + $0x28] sm:$0xff] %v1430_v35  ;;  %1340 = vmatmul.bf16.gmra.mxu3 %v1173_v60  ;;  %1414 = vmatmul.bf16.gmra.mxu0 %v1173_v60 }
 0x2ce   :  { %v1301_v16 = vpop.f32.mrf.mxu3 }
 0x2cf   :  { %v1302_v51 = vadd.f32 %v1301_v16, %v2854_v26  ;;  %v1133_v59 = vpop.f32.mrf.mxu2 }
 0x2d0   :  { %v1134_v42 = vadd.f32 %v2823_v46, %v1133_v59  ;;  %v1377_v31 = vpop.f32.mrf.mxu0  ;;  %v1887_v24 = vpop.eup %1886 }
 0x2d1   :  { %v1431_v10 = vpack.c.bf16 %v1376_v50, %v1302_v51  ;;  %v1378_v12 = vadd.f32 %v1377_v31, %v2852_v33 }
 0x2d2   :  { %1888 = vtanh.f32 %v1134_v42 }
 0x2d3   :  { %1457 = vst [vmem:[#allocation11 + $0x30] sm:$0xff] %v1431_v10 }
 0x2d6   :  { %v1303_v39 = vpop.f32.mrf.mxu3 }
 0x2d7   :  { %v1304_v22 = vadd.f32 %v1303_v39, %v2854_v26 }
 0x2d8   :  { %v1889_v1 = vpop.eup %1888  ;;  %v1380_v5 = vpop.f32.mrf.mxu0 }
 0x2d9   :  { %v1432_v6 = vpack.c.bf16 %v1378_v12, %v1304_v22  ;;  %v1174_v0 = vpack.c.bf16 %v1889_v1, %v1887_v24  ;;  %v1381_v46 = vadd.f32 %v1380_v5, %v2852_v33 }
 0x2db   :  { %1458 = vst [vmem:[#allocation11 + $0x38] sm:$0xff] %v1432_v6  ;;  %1345 = vmatmul.bf16.gmra.mxu3 %v1174_v0  ;;  %1419 = vmatmul.bf16.gmra.mxu0 %v1174_v0 }
 0x2de   :  { %v1306_v58 = vpop.f32.mrf.mxu3 }
 0x2df   :  { %v1307_v23 = vadd.f32 %v1306_v58, %v2854_v26 }
 0x2e0   :  { %v1382_v40 = vpop.f32.mrf.mxu0 }
 0x2e1   :  { %v1433_v36 = vpack.c.bf16 %v1381_v46, %v1307_v23  ;;  %v1383_v52 = vadd.f32 %v1382_v40, %v2852_v33 }
 0x2e3   :  { %1459 = vst [vmem:[#allocation11 + $0x40] sm:$0xff] %v1433_v36 }
 0x2e6   :  { %v1308_v9 = vpop.f32.mrf.mxu3 }
 0x2e7   :  { %v1309_v4 = vadd.f32 %v1308_v9, %v2854_v26 }
 0x2e8   :  { %v1385_v61 = vpop.f32.mrf.mxu0 }
 0x2e9   :  { %v1434_v44 = vpack.c.bf16 %v1383_v52, %v1309_v4  ;;  %v1386_v34 = vadd.f32 %v1385_v61, %v2852_v33 }
 0x2eb   :  { %1460 = vst [vmem:[#allocation11 + $0x48] sm:$0xff] %v1434_v44 }
 0x2ee   :  { %v1311_v62 = vpop.f32.mrf.mxu3 }
 0x2ef   :  { %v1312_v32 = vadd.f32 %v1311_v62, %v2854_v26 }
 0x2f0   :  { %v1387_v47 = vpop.f32.mrf.mxu0 }
 0x2f1   :  { %v1435_v63 = vpack.c.bf16 %v1386_v34, %v1312_v32  ;;  %v1388_v49 = vadd.f32 %v1387_v47, %v2852_v33 }
 0x2f3   :  { %1461 = vst [vmem:[#allocation11 + $0x50] sm:$0xff] %v1435_v63 }
 0x2f6   :  { %v1313_v13 = vpop.f32.mrf.mxu3 }
 0x2f7   :  { %v1314_v27 = vadd.f32 %v1313_v13, %v2854_v26 }
 0x2f8   :  { %v1390_v54 = vpop.f32.mrf.mxu0 }
 0x2f9   :  { %v1436_v38 = vpack.c.bf16 %v1388_v49, %v1314_v27  ;;  %v1391_v3 = vadd.f32 %v1390_v54, %v2852_v33 }
 0x2fb   :  { %1462 = vst [vmem:[#allocation11 + $0x58] sm:$0xff] %v1436_v38 }
 0x2fe   :  { %v1316_v53 = vpop.f32.mrf.mxu3 }
 0x2ff   :  { %v1317_v45 = vadd.f32 %v1316_v53, %v2854_v26 }
 0x300   :  { %v1392_v20 = vpop.f32.mrf.mxu0 }
 0x301   :  { %v1437_v28 = vpack.c.bf16 %v1391_v3, %v1317_v45  ;;  %v1393_v56 = vadd.f32 %v1392_v20, %v2852_v33 }
 0x303   :  { %1463 = vst [vmem:[#allocation11 + $0x60] sm:$0xff] %v1437_v28 }
 0x306   :  { %v1318_v43 = vpop.f32.mrf.mxu3 }
 0x307   :  { %v1319_v14 = vadd.f32 %v1318_v43, %v2854_v26 }
 0x308   :  { %v1395_v29 = vpop.f32.mrf.mxu0 }
 0x309   :  { %v1438_v30 = vpack.c.bf16 %v1393_v56, %v1319_v14  ;;  %v1396_v41 = vadd.f32 %v1395_v29, %v2852_v33 }
 0x30b   :  { %1464 = vst [vmem:[#allocation11 + $0x68] sm:$0xff] %v1438_v30 }
 0x30e   :  { %v1321_v25 = vpop.f32.mrf.mxu3 }
 0x30f   :  { %v1322_v48 = vadd.f32 %v1321_v25, %v2854_v26 }
 0x310   :  { %v1397_v11 = vpop.f32.mrf.mxu0 }
 0x311   :  { %v1439_v2 = vpack.c.bf16 %v1396_v41, %v1322_v48  ;;  %v1398_v19 = vadd.f32 %v1397_v11, %v2852_v33 }
 0x313   :  { %1465 = vst [vmem:[#allocation11 + $0x70] sm:$0xff] %v1439_v2 }
 0x316   :  { %v1323_v15 = vpop.f32.mrf.mxu3 }
 0x317   :  { %v1324_v17 = vadd.f32 %v1323_v15, %v2854_v26 }
 0x318   :  { %v1400_v21 = vpop.f32.mrf.mxu0 }
 0x319   :  { %v1440_v57 = vpack.c.bf16 %v1398_v19, %v1324_v17  ;;  %v1401_v55 = vadd.f32 %v1400_v21, %v2852_v33 }
 0x31b   :  { %1466 = vst [vmem:[#allocation11 + $0x78] sm:$0xff] %v1440_v57 }
 0x31e   :  { %v1326_v18 = vpop.f32.mrf.mxu3 }
 0x31f   :  { %v1327_v8 = vadd.f32 %v1326_v18, %v2854_v26 }
 0x320   :  { %v1402_v37 = vpop.f32.mrf.mxu0 }
 0x321   :  { %v1441_v35 = vpack.c.bf16 %v1401_v55, %v1327_v8  ;;  %v1403_v7 = vadd.f32 %v1402_v37, %v2852_v33 }
 0x323   :  { %1467 = vst [vmem:[#allocation11 + $0x80] sm:$0xff] %v1441_v35 }
 0x326   :  { %v1328_v60 = vpop.f32.mrf.mxu3 }
 0x327   :  { %v1329_v16 = vadd.f32 %v1328_v60, %v2854_v26 }
 0x328   :  { %v1405_v50 = vpop.f32.mrf.mxu0 }
 0x329   :  { %v1442_v51 = vpack.c.bf16 %v1403_v7, %v1329_v16  ;;  %v1406_v42 = vadd.f32 %v1405_v50, %v2852_v33 }
 0x32b   :  { %1468 = vst [vmem:[#allocation11 + $0x88] sm:$0xff] %v1442_v51 }
 0x32e   :  { %v1331_v59 = vpop.f32.mrf.mxu3 }
 0x32f   :  { %v1332_v31 = vadd.f32 %v1331_v59, %v2854_v26 }
 0x330   :  { %v1407_v10 = vpop.f32.mrf.mxu0 }
 0x331   :  { %v1443_v39 = vpack.c.bf16 %v1406_v42, %v1332_v31  ;;  %v1408_v12 = vadd.f32 %v1407_v10, %v2852_v33 }
 0x333   :  { %1469 = vst [vmem:[#allocation11 + $0x90] sm:$0xff] %v1443_v39 }
 0x336   :  { %v1333_v24 = vpop.f32.mrf.mxu3 }
 0x337   :  { %v1334_v22 = vadd.f32 %v1333_v24, %v2854_v26 }
 0x338   :  { %v1410_v1 = vpop.f32.mrf.mxu0 }
 0x339   :  { %v1444_v5 = vpack.c.bf16 %v1408_v12, %v1334_v22  ;;  %v1411_v0 = vadd.f32 %v1410_v1, %v2852_v33 }
 0x33b   :  { %1470 = vst [vmem:[#allocation11 + $0x98] sm:$0xff] %v1444_v5 }
 0x33e   :  { %v1336_v6 = vpop.f32.mrf.mxu3 }
 0x33f   :  { %v1337_v58 = vadd.f32 %v1336_v6, %v2854_v26 }
 0x340   :  { %v1412_v46 = vpop.f32.mrf.mxu0 }
 0x341   :  { %v1445_v23 = vpack.c.bf16 %v1411_v0, %v1337_v58  ;;  %v1413_v36 = vadd.f32 %v1412_v46, %v2852_v33 }
 0x343   :  { %1471 = vst [vmem:[#allocation11 + $0xa0] sm:$0xff] %v1445_v23 }
 0x346   :  { %v1338_v40 = vpop.f32.mrf.mxu3 }
 0x347   :  { %v1339_v9 = vadd.f32 %v1338_v40, %v2854_v26 }
 0x348   :  { %v1415_v52 = vpop.f32.mrf.mxu0 }
 0x349   :  { %v1446_v4 = vpack.c.bf16 %v1413_v36, %v1339_v9  ;;  %v1416_v44 = vadd.f32 %v1415_v52, %v2852_v33 }
 0x34b   :  { %1472 = vst [vmem:[#allocation11 + $0xa8] sm:$0xff] %v1446_v4 }
 0x34e   :  { %v1341_v61 = vpop.f32.mrf.mxu3 }
 0x34f   :  { %v1342_v62 = vadd.f32 %v1341_v61, %v2854_v26 }
 0x350   :  { %v1417_v34 = vpop.f32.mrf.mxu0 }
 0x351   :  { %v1447_v32 = vpack.c.bf16 %v1416_v44, %v1342_v62  ;;  %v1418_v63 = vadd.f32 %v1417_v34, %v2852_v33 }
 0x353   :  { %1473 = vst [vmem:[#allocation11 + $0xb0] sm:$0xff] %v1447_v32 }
 0x356   :  { %v1343_v47 = vpop.f32.mrf.mxu3 }
 0x357   :  { %v1344_v13 = vadd.f32 %v1343_v47, %v2854_v26 }
 0x358   :  { %v1420_v27 = vpop.f32.mrf.mxu0 }
 0x359   :  { %v1448_v49 = vpack.c.bf16 %v1418_v63, %v1344_v13  ;;  %v1421_v38 = vadd.f32 %v1420_v27, %v2852_v33 }
 0x35b   :  { %1474 = vst [vmem:[#allocation11 + $0xb8] sm:$0xff] %v1448_v49 }
 0x35e   :  { %v1346_v54 = vpop.f32.mrf.mxu3 }
 0x35f   :  { %v1347_v53 = vadd.f32 %v1346_v54, %v2854_v26 }
 0x360   :  { %v1422_v45 = vpop.f32.mrf.mxu0 }
 0x361   :  { %v1449_v3 = vpack.c.bf16 %v1421_v38, %v1347_v53  ;;  %v1423_v28 = vadd.f32 %v1422_v45, %v2852_v33 }
 0x363   :  { %1475 = vst [vmem:[#allocation11 + $0xc0] sm:$0xff] %v1449_v3 }
 0x366   :  { %v1348_v20 = vpop.f32.mrf.mxu3 }
 0x367   :  { %v1349_v43 = vadd.f32 %v1348_v20, %v2854_v26 }
 0x369   :  { %v1450_v56 = vpack.c.bf16 %v1423_v28, %v1349_v43 }
 0x36b   :  { %1476 = vst [vmem:[#allocation11 + $0xc8] sm:$0xff] %v1450_v56 }
 0x36c   :  { %1489 = dma.vmem_to_hbm [thread:$0]  %s1482_s28, 3328, %s1484_s8, [#allocation4], %s2047_s19, %s2047_s19, %s2048_s20  }
 0x36d   :  { %2040 = dma.done.wait [#allocation4], 3328  }
 0x36e   :  { %2041 = vsyncadd [#allocation4], 4294963968 }
 0x36f   :  { %1494 = vsyncpa [#allocation3], 1 }
 0x370   :  { %1495 = vsyncpa [#allocation6], 1 }
 0x371   :  { %1496 = vsyncpa [#allocation9], 1 }
 0x372   :  { %1497 = vsyncpa [#allocation4], 1 }

</bundles_post_ra>
